<compile_context>
chip_gen: v5e
topology: v5e:2x2
jax: 0.10.0
libtpu: 0.0.40
codegen_flags: <defaults>
</compile_context>

<pallas_src>
import functools

import jax
import jax.numpy as jnp
from jax.experimental import pallas as pl
from jax.experimental.pallas import tpu as pltpu

HIDDEN = 750
HIDDEN_PAD = 768      # pad 750 -> 768 (multiple of 128) with zero weights; exact.
HEAD_PAD = 128        # lane-dense width for the head matmuls / outputs
MAX_BATCH_TILE = 256  # MXU M-dimension on v6e/v7x (two passes on v5e's 4x128 MXU)


def _round_up(x, m):
    return ((x + m - 1) // m) * m


def _pad_cols(x, n):
    return jnp.pad(x, ((0, 0), (0, n - x.shape[1])))


def _pad_rows(x, n):
    return jnp.pad(x, ((0, n - x.shape[0]), (0, 0)))


def _vae_forward_kernel(sa_ref, state_ref, eps_ref,
                        we1_ref, be1_ref,
                        we2_ref, be2_ref,
                        wh_ref, bh_ref,
                        wd1s_ref, wd1z_ref, bd1_ref,
                        wd2_ref, bd2_ref,
                        wd3_ref, bd3_ref,
                        u_ref, ms_ref,
                        *, max_action, latent_dim):
    f32 = jnp.float32
    L = latent_dim

    def mm(x, w_ref, b_ref):
        # Cast activations to the stored weight dtype (no-op for f32 weights,
        # native bf16 MXU path for bf16 weights); accumulate in f32.
        y = jnp.dot(x.astype(w_ref.dtype), w_ref[...], preferred_element_type=f32)
        return y + b_ref[...]

    state = state_ref[...]
    eps = eps_ref[...]

    # --- encoder ---  e1 takes the host-side concat(state, action)
    h = jnp.maximum(mm(sa_ref[...], we1_ref, be1_ref), 0.0)
    h = jnp.maximum(mm(h, we2_ref, be2_ref), 0.0)

    # --- fused mean / log_std heads ---
    # w_heads columns: [0, L) = mean, [L, 2L) = log_std, rest are zero.
    head = mm(h, wh_ref, bh_ref)                         # [M, 128]
    std_full = jnp.exp(jnp.clip(head, -4.0, 15.0))       # only cols [L, 2L) used
    mean = head[:, :L]                                   # [M, L]
    std = std_full[:, L:2 * L]                           # [M, L]
    z = mean + std * eps                                 # reparameterization

    # Lane-dense packed output slab: cols [0,L)=mean, [L,2L)=std, rest 0.
    col = jax.lax.broadcasted_iota(jnp.int32, head.shape, 1)
    is_std_col = jnp.logical_and(col >= L, col < 2 * L)
    ms_ref[...] = jnp.where(is_std_col, std_full, head)

    # --- decoder ---  d1(cat(state, z)) == state @ Wd1_s + z @ Wd1_z + b_d1
    a = (jnp.dot(state.astype(wd1s_ref.dtype), wd1s_ref[...],
                 preferred_element_type=f32)
         + jnp.dot(z.astype(wd1z_ref.dtype), wd1z_ref[...],
                   preferred_element_type=f32)
         + bd1_ref[...])
    a = jnp.maximum(a, 0.0)
    a = jnp.maximum(mm(a, wd2_ref, bd2_ref), 0.0)
    # d3 weights padded to 128 output lanes (extra lanes: tanh(0) * max = 0).
    u_ref[...] = max_action * jnp.tanh(mm(a, wd3_ref, bd3_ref))


def init_vae_params(key, state_dim, action_dim, latent_dim):
    """Deterministic init mimicking torch.nn.Linear default (uniform +-1/sqrt(fan_in))."""
    def linear(k, fan_in, fan_out):
        k1, k2 = jax.random.split(k)
        bound = 1.0 / (fan_in ** 0.5)
        w = jax.random.uniform(k1, (fan_in, fan_out), jnp.float32, -bound, bound)
        b = jax.random.uniform(k2, (1, fan_out), jnp.float32, -bound, bound)
        return w, b

    keys = jax.random.split(key, 7)
    p = {}
    p["e1_w"], p["e1_b"] = linear(keys[0], state_dim + action_dim, HIDDEN)
    p["e2_w"], p["e2_b"] = linear(keys[1], HIDDEN, HIDDEN)
    p["mean_w"], p["mean_b"] = linear(keys[2], HIDDEN, latent_dim)
    p["ls_w"], p["ls_b"] = linear(keys[3], HIDDEN, latent_dim)
    p["d1_w"], p["d1_b"] = linear(keys[4], state_dim + latent_dim, HIDDEN)
    p["d2_w"], p["d2_b"] = linear(keys[5], HIDDEN, HIDDEN)
    p["d3_w"], p["d3_b"] = linear(keys[6], HIDDEN, action_dim)
    return p


def vae_forward_pallas(params, state, action, eps, *, max_action, latent_dim,
                       weight_dtype=jnp.float32):
    """Runs the VAE forward pass as a single Pallas TPU kernel.

    Returns (u, mean, std), matching the PyTorch module's forward().
    weight_dtype=jnp.bfloat16 halves weight HBM traffic (f32 accumulation kept).
    """
    B, sd = state.shape
    ad = action.shape[1]
    L = latent_dim
    H = HIDDEN_PAD
    assert 2 * L <= HEAD_PAD and ad <= HEAD_PAD

    # Adaptive batch tiling: one grid step for small batches, 256-row tiles
    # (parallel grid -> megacore sharding on v7x) for large batches.
    tile = min(MAX_BATCH_TILE, _round_up(B, 8))
    Bp = _round_up(B, tile)
    pad_b = Bp - B

    sa = jnp.pad(jnp.concatenate([state, action], axis=1), ((0, pad_b), (0, 0)))
    state_p = jnp.pad(state, ((0, pad_b), (0, 0)))
    eps_p = jnp.pad(eps, ((0, pad_b), (0, 0)))

    wdt = weight_dtype
    # Encoder weights (hidden 750 -> 768 zero padding is exact: padded units are
    # relu(0)=0 and their outgoing weights are 0). Biases stay f32.
    we1 = _pad_cols(params["e1_w"], H).astype(wdt)
    be1 = _pad_cols(params["e1_b"], H)
    we2 = _pad_cols(_pad_rows(params["e2_w"], H), H).astype(wdt)
    be2 = _pad_cols(params["e2_b"], H)
    # Fused heads [H, 128]: cols [0,L)=mean, [L,2L)=log_std, rest zero.
    wh = jnp.zeros((H, HEAD_PAD), jnp.float32)
    wh = wh.at[:HIDDEN, :L].set(params["mean_w"])
    wh = wh.at[:HIDDEN, L:2 * L].set(params["ls_w"])
    wh = wh.astype(wdt)
    bh = jnp.zeros((1, HEAD_PAD), jnp.float32)
    bh = bh.at[:, :L].set(params["mean_b"])
    bh = bh.at[:, L:2 * L].set(params["ls_b"])
    # Decoder weights (d1 split so concat(state, z) becomes two matmuls).
    wd1s = _pad_cols(params["d1_w"][:sd], H).astype(wdt)
    wd1z = _pad_cols(params["d1_w"][sd:], H).astype(wdt)
    bd1 = _pad_cols(params["d1_b"], H)
    wd2 = _pad_cols(_pad_rows(params["d2_w"], H), H).astype(wdt)
    bd2 = _pad_cols(params["d2_b"], H)
    wd3 = _pad_cols(_pad_rows(params["d3_w"], H), HEAD_PAD).astype(wdt)
    bd3 = _pad_cols(params["d3_b"], HEAD_PAD)

    weights = [we1, be1, we2, be2, wh, bh, wd1s, wd1z, bd1, wd2, bd2, wd3, bd3]

    def batch_spec(cols):
        return pl.BlockSpec((tile, cols), lambda i: (i, 0))

    def full_spec(arr):
        return pl.BlockSpec(arr.shape, lambda i: (0, 0))

    in_specs = ([batch_spec(sd + ad), batch_spec(sd), batch_spec(L)]
                + [full_spec(w) for w in weights])
    out_specs = [batch_spec(HEAD_PAD), batch_spec(HEAD_PAD)]
    out_shape = (jax.ShapeDtypeStruct((Bp, HEAD_PAD), jnp.float32),
                 jax.ShapeDtypeStruct((Bp, HEAD_PAD), jnp.float32))

    flops = 2 * Bp * ((sd + ad) * H + H * H + H * HEAD_PAD
                      + sd * H + L * H + H * H + H * HEAD_PAD)
    transcendentals = 2 * Bp * HEAD_PAD  # full-width exp + tanh
    bytes_accessed = int(sum(w.size * w.dtype.itemsize for w in weights)
                         + (sa.size + state_p.size + eps_p.size) * 4
                         + 2 * Bp * HEAD_PAD * 4)

    kernel = functools.partial(_vae_forward_kernel,
                               max_action=float(max_action), latent_dim=L)

    u_p, ms_p = pl.pallas_call(
        kernel,
        out_shape=out_shape,
        grid=(Bp // tile,),
        in_specs=in_specs,
        out_specs=out_specs,
        compiler_params=pltpu.CompilerParams(
            dimension_semantics=("parallel",),
            vmem_limit_bytes=32 << 20,
        ),
        cost_estimate=pl.CostEstimate(flops=flops,
                                      transcendentals=transcendentals,
                                      bytes_accessed=bytes_accessed),
    )(sa, state_p, eps_p, *weights)

    u = u_p[:B, :ad]
    mean = ms_p[:B, :L]
    std = ms_p[:B, L:2 * L]
    return u, mean, std


def vae_forward_ref(params, state, action, eps, *, max_action):
    """Pure-JAX reference (mirrors the PyTorch forward exactly)."""
    x = jnp.concatenate([state, action], axis=1)
    h = jax.nn.relu(x @ params["e1_w"] + params["e1_b"])
    h = jax.nn.relu(h @ params["e2_w"] + params["e2_b"])
    mean = h @ params["mean_w"] + params["mean_b"]
    log_std = jnp.clip(h @ params["ls_w"] + params["ls_b"], -4.0, 15.0)
    std = jnp.exp(log_std)
    z = mean + std * eps
    a = jax.nn.relu(jnp.concatenate([state, z], axis=1) @ params["d1_w"] + params["d1_b"])
    a = jax.nn.relu(a @ params["d2_w"] + params["d2_b"])
    u = max_action * jnp.tanh(a @ params["d3_w"] + params["d3_b"])
    return u, mean, std


if __name__ == "__main__":
    state_dim, action_dim, latent_dim = 8, 4, 4
    max_action = 1.0

    key = jax.random.PRNGKey(0)
    k_params, k_state, k_action, k_eps = jax.random.split(key, 4)
    params = init_vae_params(k_params, state_dim, action_dim, latent_dim)

    # --- small batch (single grid step), f32 weights: exact check ---
    batch = 2
    state = jax.random.normal(k_state, (batch, state_dim), jnp.float32)
    action = jax.random.normal(k_action, (batch, action_dim), jnp.float32)
    # Standard-normal noise for the reparameterization trick (passed in, not
    # sampled inside the kernel, so the forward is deterministic here).
    eps = jax.random.normal(k_eps, (batch, latent_dim), jnp.float32)

    u, mean, std = vae_forward_pallas(
        params, state, action, eps, max_action=max_action, latent_dim=latent_dim)
    jax.block_until_ready((u, mean, std))
    u_ref, mean_ref, std_ref = vae_forward_ref(
        params, state, action, eps, max_action=max_action)

    assert u.shape == (batch, action_dim)
    assert mean.shape == (batch, latent_dim)
    assert std.shape == (batch, latent_dim)
    assert jnp.allclose(u, u_ref, atol=1e-5, rtol=1e-5)
    assert jnp.allclose(mean, mean_ref, atol=1e-5, rtol=1e-5)
    assert jnp.allclose(std, std_ref, atol=1e-5, rtol=1e-5)

    # --- larger batch (multi-step parallel grid, 256-row tiles), f32 weights ---
    batch2 = 300
    ks2, ka2, ke2 = jax.random.split(jax.random.PRNGKey(1), 3)
    state2 = jax.random.normal(ks2, (batch2, state_dim), jnp.float32)
    action2 = jax.random.normal(ka2, (batch2, action_dim), jnp.float32)
    eps2 = jax.random.normal(ke2, (batch2, latent_dim), jnp.float32)
    u2, mean2, std2 = vae_forward_pallas(
        params, state2, action2, eps2, max_action=max_action, latent_dim=latent_dim)
    jax.block_until_ready((u2, mean2, std2))
    u2_ref, mean2_ref, std2_ref = vae_forward_ref(
        params, state2, action2, eps2, max_action=max_action)
    assert jnp.allclose(u2, u2_ref, atol=1e-4, rtol=1e-4)
    assert jnp.allclose(mean2, mean2_ref, atol=1e-4, rtol=1e-4)
    assert jnp.allclose(std2, std2_ref, atol=1e-4, rtol=1e-4)

    # --- bf16 weight storage (halved weight DMA, f32 accumulation): loose check ---
    u3, mean3, std3 = vae_forward_pallas(
        params, state2, action2, eps2, max_action=max_action,
        latent_dim=latent_dim, weight_dtype=jnp.bfloat16)
    jax.block_until_ready((u3, mean3, std3))
    assert jnp.allclose(u3, u2_ref, atol=5e-2, rtol=5e-2)
    assert jnp.allclose(mean3, mean2_ref, atol=5e-2, rtol=5e-2)
    assert jnp.allclose(std3, std2_ref, atol=7e-2, rtol=7e-2)

    print("KERNEL_OK")
</pallas_src>

<mosaic_0001>
module attributes {stable_mosaic.version = 11 : i64} {
  func.func @_vae_forward_kernel(%arg0: i32, %arg1: memref<8x12xf32, #tpu.memory_space<vmem>>, %arg2: memref<8x8xf32, #tpu.memory_space<vmem>>, %arg3: memref<8x4xf32, #tpu.memory_space<vmem>>, %arg4: memref<12x768xf32, #tpu.memory_space<vmem>>, %arg5: memref<1x768xf32, #tpu.memory_space<vmem>>, %arg6: memref<768x768xf32, #tpu.memory_space<vmem>>, %arg7: memref<1x768xf32, #tpu.memory_space<vmem>>, %arg8: memref<768x128xf32, #tpu.memory_space<vmem>>, %arg9: memref<1x128xf32, #tpu.memory_space<vmem>>, %arg10: memref<8x768xf32, #tpu.memory_space<vmem>>, %arg11: memref<4x768xf32, #tpu.memory_space<vmem>>, %arg12: memref<1x768xf32, #tpu.memory_space<vmem>>, %arg13: memref<768x768xf32, #tpu.memory_space<vmem>>, %arg14: memref<1x768xf32, #tpu.memory_space<vmem>>, %arg15: memref<768x128xf32, #tpu.memory_space<vmem>>, %arg16: memref<1x128xf32, #tpu.memory_space<vmem>>, %arg17: memref<8x128xf32, #tpu.memory_space<vmem>>, %arg18: memref<8x128xf32, #tpu.memory_space<vmem>>) attributes {dimension_semantics = [#tpu.dimension_semantics<parallel>], iteration_bounds = array<i64: 1>, scalar_prefetch = 0 : i64, scratch_operands = 0 : i64, tpu.core_type = #tpu.core_type<tc>, window_params = [{transform_indices = @transform_0, window_bounds = array<i64: 8, 12>}, {transform_indices = @transform_1, window_bounds = array<i64: 8, 8>}, {transform_indices = @transform_2, window_bounds = array<i64: 8, 4>}, {pipeline_mode = #tpu.pipeline_mode<synchronous>, transform_indices = @transform_3, window_bounds = array<i64: 12, 768>}, {pipeline_mode = #tpu.pipeline_mode<synchronous>, transform_indices = @transform_4, window_bounds = array<i64: 1, 768>}, {pipeline_mode = #tpu.pipeline_mode<synchronous>, transform_indices = @transform_5, window_bounds = array<i64: 768, 768>}, {pipeline_mode = #tpu.pipeline_mode<synchronous>, transform_indices = @transform_6, window_bounds = array<i64: 1, 768>}, {pipeline_mode = #tpu.pipeline_mode<synchronous>, transform_indices = @transform_7, window_bounds = array<i64: 768, 128>}, {pipeline_mode = #tpu.pipeline_mode<synchronous>, transform_indices = @transform_8, window_bounds = array<i64: 1, 128>}, {pipeline_mode = #tpu.pipeline_mode<synchronous>, transform_indices = @transform_9, window_bounds = array<i64: 8, 768>}, {pipeline_mode = #tpu.pipeline_mode<synchronous>, transform_indices = @transform_10, window_bounds = array<i64: 4, 768>}, {pipeline_mode = #tpu.pipeline_mode<synchronous>, transform_indices = @transform_11, window_bounds = array<i64: 1, 768>}, {pipeline_mode = #tpu.pipeline_mode<synchronous>, transform_indices = @transform_12, window_bounds = array<i64: 768, 768>}, {pipeline_mode = #tpu.pipeline_mode<synchronous>, transform_indices = @transform_13, window_bounds = array<i64: 1, 768>}, {pipeline_mode = #tpu.pipeline_mode<synchronous>, transform_indices = @transform_14, window_bounds = array<i64: 768, 128>}, {pipeline_mode = #tpu.pipeline_mode<synchronous>, transform_indices = @transform_15, window_bounds = array<i64: 1, 128>}, {transform_indices = @transform_16, window_bounds = array<i64: 8, 128>}, {transform_indices = @transform_17, window_bounds = array<i64: 8, 128>}]} {
    %c0 = arith.constant 0 : index
    %c0_0 = arith.constant 0 : index
    %0 = vector.load %arg2[%c0, %c0_0] : memref<8x8xf32, #tpu.memory_space<vmem>>, vector<8x8xf32>
    %c0_1 = arith.constant 0 : index
    %c0_2 = arith.constant 0 : index
    %1 = vector.load %arg3[%c0_1, %c0_2] : memref<8x4xf32, #tpu.memory_space<vmem>>, vector<8x4xf32>
    %c0_3 = arith.constant 0 : index
    %c0_4 = arith.constant 0 : index
    %2 = vector.load %arg1[%c0_3, %c0_4] : memref<8x12xf32, #tpu.memory_space<vmem>>, vector<8x12xf32>
    %c0_5 = arith.constant 0 : index
    %c0_6 = arith.constant 0 : index
    %3 = vector.load %arg4[%c0_5, %c0_6] : memref<12x768xf32, #tpu.memory_space<vmem>>, vector<12x768xf32>
    %cst = arith.constant dense<0.000000e+00> : vector<8x768xf32>
    %4 = tpu.matmul %2, %3, %cst {dimension_numbers = #tpu.dot_dimension_numbers<[1], [0], [0], [1], [0, 0, 1, 1], [], []>} : vector<8x12xf32>, vector<12x768xf32>, vector<8x768xf32> -> vector<8x768xf32>
    %c0_7 = arith.constant 0 : index
    %c0_8 = arith.constant 0 : index
    %5 = vector.load %arg5[%c0_7, %c0_8] : memref<1x768xf32, #tpu.memory_space<vmem>>, vector<1x768xf32>
    %6 = vector.broadcast %5 : vector<1x768xf32> to vector<8x768xf32>
    %7 = arith.addf %4, %6 : vector<8x768xf32>
    %cst_9 = arith.constant 0.000000e+00 : f32
    %8 = vector.broadcast %cst_9 : f32 to vector<8x768xf32>
    %9 = arith.maximumf %7, %8 : vector<8x768xf32>
    %c0_10 = arith.constant 0 : index
    %c0_11 = arith.constant 0 : index
    %10 = vector.load %arg6[%c0_10, %c0_11] : memref<768x768xf32, #tpu.memory_space<vmem>>, vector<768x768xf32>
    %cst_12 = arith.constant dense<0.000000e+00> : vector<8x768xf32>
    %11 = tpu.matmul %9, %10, %cst_12 {dimension_numbers = #tpu.dot_dimension_numbers<[1], [0], [0], [1], [0, 0, 1, 1], [], []>} : vector<8x768xf32>, vector<768x768xf32>, vector<8x768xf32> -> vector<8x768xf32>
    %c0_13 = arith.constant 0 : index
    %c0_14 = arith.constant 0 : index
    %12 = vector.load %arg7[%c0_13, %c0_14] : memref<1x768xf32, #tpu.memory_space<vmem>>, vector<1x768xf32>
    %13 = vector.broadcast %12 : vector<1x768xf32> to vector<8x768xf32>
    %14 = arith.addf %11, %13 : vector<8x768xf32>
    %cst_15 = arith.constant 0.000000e+00 : f32
    %15 = vector.broadcast %cst_15 : f32 to vector<8x768xf32>
    %16 = arith.maximumf %14, %15 : vector<8x768xf32>
    %c0_16 = arith.constant 0 : index
    %c0_17 = arith.constant 0 : index
    %17 = vector.load %arg8[%c0_16, %c0_17] : memref<768x128xf32, #tpu.memory_space<vmem>>, vector<768x128xf32>
    %cst_18 = arith.constant dense<0.000000e+00> : vector<8x128xf32>
    %18 = tpu.matmul %16, %17, %cst_18 {dimension_numbers = #tpu.dot_dimension_numbers<[1], [0], [0], [1], [0, 0, 1, 1], [], []>} : vector<8x768xf32>, vector<768x128xf32>, vector<8x128xf32> -> vector<8x128xf32>
    %c0_19 = arith.constant 0 : index
    %c0_20 = arith.constant 0 : index
    %19 = vector.load %arg9[%c0_19, %c0_20] : memref<1x128xf32, #tpu.memory_space<vmem>>, vector<1x128xf32>
    %20 = vector.broadcast %19 : vector<1x128xf32> to vector<8x128xf32>
    %21 = arith.addf %18, %20 : vector<8x128xf32>
    %cst_21 = arith.constant -4.000000e+00 : f32
    %cst_22 = arith.constant 1.500000e+01 : f32
    %22 = vector.broadcast %cst_21 : f32 to vector<8x128xf32>
    %23 = arith.maximumf %22, %21 : vector<8x128xf32>
    %24 = vector.broadcast %cst_22 : f32 to vector<8x128xf32>
    %25 = arith.minimumf %24, %23 : vector<8x128xf32>
    %26 = math.exp %25 : vector<8x128xf32>
    %27 = vector.extract_strided_slice %21 {offsets = [0, 0], sizes = [8, 4], strides = [1, 1]} : vector<8x128xf32> to vector<8x4xf32>
    %28 = vector.extract_strided_slice %26 {offsets = [0, 4], sizes = [8, 4], strides = [1, 1]} : vector<8x128xf32> to vector<8x4xf32>
    %29 = arith.mulf %28, %1 : vector<8x4xf32>
    %30 = arith.addf %27, %29 : vector<8x4xf32>
    %31 = tpu.iota {dimensions = array<i32: 1>} : vector<8x128xi32>
    %c4_i32 = arith.constant 4 : i32
    %32 = vector.broadcast %c4_i32 : i32 to vector<8x128xi32>
    %33 = arith.cmpi sge, %31, %32 : vector<8x128xi32>
    %c8_i32 = arith.constant 8 : i32
    %34 = vector.broadcast %c8_i32 : i32 to vector<8x128xi32>
    %35 = arith.cmpi slt, %31, %34 : vector<8x128xi32>
    %36 = arith.andi %33, %35 : vector<8x128xi1>
    %37 = arith.select %36, %26, %21 : vector<8x128xi1>, vector<8x128xf32>
    %c0_23 = arith.constant 0 : index
    %c0_24 = arith.constant 0 : index
    %38 = vector.load %arg18[%c0_23, %c0_24] : memref<8x128xf32, #tpu.memory_space<vmem>>, vector<8x128xf32>
    tpu.vector_store %arg18[%c0_23, %c0_24], %37 {strides = array<i32>} : memref<8x128xf32, #tpu.memory_space<vmem>>, vector<8x128xf32>,
    %c0_25 = arith.constant 0 : index
    %c0_26 = arith.constant 0 : index
    %39 = vector.load %arg10[%c0_25, %c0_26] : memref<8x768xf32, #tpu.memory_space<vmem>>, vector<8x768xf32>
    %cst_27 = arith.constant dense<0.000000e+00> : vector<8x768xf32>
    %40 = tpu.matmul %0, %39, %cst_27 {dimension_numbers = #tpu.dot_dimension_numbers<[1], [0], [0], [1], [0, 0, 1, 1], [], []>} : vector<8x8xf32>, vector<8x768xf32>, vector<8x768xf32> -> vector<8x768xf32>
    %c0_28 = arith.constant 0 : index
    %c0_29 = arith.constant 0 : index
    %41 = vector.load %arg11[%c0_28, %c0_29] : memref<4x768xf32, #tpu.memory_space<vmem>>, vector<4x768xf32>
    %cst_30 = arith.constant dense<0.000000e+00> : vector<8x768xf32>
    %42 = tpu.matmul %30, %41, %cst_30 {dimension_numbers = #tpu.dot_dimension_numbers<[1], [0], [0], [1], [0, 0, 1, 1], [], []>} : vector<8x4xf32>, vector<4x768xf32>, vector<8x768xf32> -> vector<8x768xf32>
    %43 = arith.addf %40, %42 : vector<8x768xf32>
    %c0_31 = arith.constant 0 : index
    %c0_32 = arith.constant 0 : index
    %44 = vector.load %arg12[%c0_31, %c0_32] : memref<1x768xf32, #tpu.memory_space<vmem>>, vector<1x768xf32>
    %45 = vector.broadcast %44 : vector<1x768xf32> to vector<8x768xf32>
    %46 = arith.addf %43, %45 : vector<8x768xf32>
    %cst_33 = arith.constant 0.000000e+00 : f32
    %47 = vector.broadcast %cst_33 : f32 to vector<8x768xf32>
    %48 = arith.maximumf %46, %47 : vector<8x768xf32>
    %c0_34 = arith.constant 0 : index
    %c0_35 = arith.constant 0 : index
    %49 = vector.load %arg13[%c0_34, %c0_35] : memref<768x768xf32, #tpu.memory_space<vmem>>, vector<768x768xf32>
    %cst_36 = arith.constant dense<0.000000e+00> : vector<8x768xf32>
    %50 = tpu.matmul %48, %49, %cst_36 {dimension_numbers = #tpu.dot_dimension_numbers<[1], [0], [0], [1], [0, 0, 1, 1], [], []>} : vector<8x768xf32>, vector<768x768xf32>, vector<8x768xf32> -> vector<8x768xf32>
    %c0_37 = arith.constant 0 : index
    %c0_38 = arith.constant 0 : index
    %51 = vector.load %arg14[%c0_37, %c0_38] : memref<1x768xf32, #tpu.memory_space<vmem>>, vector<1x768xf32>
    %52 = vector.broadcast %51 : vector<1x768xf32> to vector<8x768xf32>
    %53 = arith.addf %50, %52 : vector<8x768xf32>
    %cst_39 = arith.constant 0.000000e+00 : f32
    %54 = vector.broadcast %cst_39 : f32 to vector<8x768xf32>
    %55 = arith.maximumf %53, %54 : vector<8x768xf32>
    %c0_40 = arith.constant 0 : index
    %c0_41 = arith.constant 0 : index
    %56 = vector.load %arg15[%c0_40, %c0_41] : memref<768x128xf32, #tpu.memory_space<vmem>>, vector<768x128xf32>
    %cst_42 = arith.constant dense<0.000000e+00> : vector<8x128xf32>
    %57 = tpu.matmul %55, %56, %cst_42 {dimension_numbers = #tpu.dot_dimension_numbers<[1], [0], [0], [1], [0, 0, 1, 1], [], []>} : vector<8x768xf32>, vector<768x128xf32>, vector<8x128xf32> -> vector<8x128xf32>
    %c0_43 = arith.constant 0 : index
    %c0_44 = arith.constant 0 : index
    %58 = vector.load %arg16[%c0_43, %c0_44] : memref<1x128xf32, #tpu.memory_space<vmem>>, vector<1x128xf32>
    %59 = vector.broadcast %58 : vector<1x128xf32> to vector<8x128xf32>
    %60 = arith.addf %57, %59 : vector<8x128xf32>
    %61 = math.tanh %60 : vector<8x128xf32>
    %cst_45 = arith.constant 1.000000e+00 : f32
    %62 = vector.broadcast %cst_45 : f32 to vector<8x128xf32>
    %63 = arith.mulf %62, %61 : vector<8x128xf32>
    %c0_46 = arith.constant 0 : index
    %c0_47 = arith.constant 0 : index
    %64 = vector.load %arg17[%c0_46, %c0_47] : memref<8x128xf32, #tpu.memory_space<vmem>>, vector<8x128xf32>
    tpu.vector_store %arg17[%c0_46, %c0_47], %63 {strides = array<i32>} : memref<8x128xf32, #tpu.memory_space<vmem>>, vector<8x128xf32>,
    return
  }
  func.func @transform_0(%arg0: i32) -> (i32, i32) {
    %c0_i32 = arith.constant 0 : i32
    %c0_i32_0 = arith.constant 0 : i32
    return %arg0, %c0_i32 : i32, i32
  }
  func.func @transform_1(%arg0: i32) -> (i32, i32) {
    %c0_i32 = arith.constant 0 : i32
    %c0_i32_0 = arith.constant 0 : i32
    return %arg0, %c0_i32 : i32, i32
  }
  func.func @transform_2(%arg0: i32) -> (i32, i32) {
    %c0_i32 = arith.constant 0 : i32
    %c0_i32_0 = arith.constant 0 : i32
    return %arg0, %c0_i32 : i32, i32
  }
  func.func @transform_3(%arg0: i32) -> (i32, i32) {
    %c0_i32 = arith.constant 0 : i32
    %c0_i32_0 = arith.constant 0 : i32
    %c0_i32_1 = arith.constant 0 : i32
    return %c0_i32, %c0_i32_0 : i32, i32
  }
  func.func @transform_4(%arg0: i32) -> (i32, i32) {
    %c0_i32 = arith.constant 0 : i32
    %c0_i32_0 = arith.constant 0 : i32
    %c0_i32_1 = arith.constant 0 : i32
    return %c0_i32, %c0_i32_0 : i32, i32
  }
  func.func @transform_5(%arg0: i32) -> (i32, i32) {
    %c0_i32 = arith.constant 0 : i32
    %c0_i32_0 = arith.constant 0 : i32
    %c0_i32_1 = arith.constant 0 : i32
    return %c0_i32, %c0_i32_0 : i32, i32
  }
  func.func @transform_6(%arg0: i32) -> (i32, i32) {
    %c0_i32 = arith.constant 0 : i32
    %c0_i32_0 = arith.constant 0 : i32
    %c0_i32_1 = arith.constant 0 : i32
    return %c0_i32, %c0_i32_0 : i32, i32
  }
  func.func @transform_7(%arg0: i32) -> (i32, i32) {
    %c0_i32 = arith.constant 0 : i32
    %c0_i32_0 = arith.constant 0 : i32
    %c0_i32_1 = arith.constant 0 : i32
    return %c0_i32, %c0_i32_0 : i32, i32
  }
  func.func @transform_8(%arg0: i32) -> (i32, i32) {
    %c0_i32 = arith.constant 0 : i32
    %c0_i32_0 = arith.constant 0 : i32
    %c0_i32_1 = arith.constant 0 : i32
    return %c0_i32, %c0_i32_0 : i32, i32
  }
  func.func @transform_9(%arg0: i32) -> (i32, i32) {
    %c0_i32 = arith.constant 0 : i32
    %c0_i32_0 = arith.constant 0 : i32
    %c0_i32_1 = arith.constant 0 : i32
    return %c0_i32, %c0_i32_0 : i32, i32
  }
  func.func @transform_10(%arg0: i32) -> (i32, i32) {
    %c0_i32 = arith.constant 0 : i32
    %c0_i32_0 = arith.constant 0 : i32
    %c0_i32_1 = arith.constant 0 : i32
    return %c0_i32, %c0_i32_0 : i32, i32
  }
  func.func @transform_11(%arg0: i32) -> (i32, i32) {
    %c0_i32 = arith.constant 0 : i32
    %c0_i32_0 = arith.constant 0 : i32
    %c0_i32_1 = arith.constant 0 : i32
    return %c0_i32, %c0_i32_0 : i32, i32
  }
  func.func @transform_12(%arg0: i32) -> (i32, i32) {
    %c0_i32 = arith.constant 0 : i32
    %c0_i32_0 = arith.constant 0 : i32
    %c0_i32_1 = arith.constant 0 : i32
    return %c0_i32, %c0_i32_0 : i32, i32
  }
  func.func @transform_13(%arg0: i32) -> (i32, i32) {
    %c0_i32 = arith.constant 0 : i32
    %c0_i32_0 = arith.constant 0 : i32
    %c0_i32_1 = arith.constant 0 : i32
    return %c0_i32, %c0_i32_0 : i32, i32
  }
  func.func @transform_14(%arg0: i32) -> (i32, i32) {
    %c0_i32 = arith.constant 0 : i32
    %c0_i32_0 = arith.constant 0 : i32
    %c0_i32_1 = arith.constant 0 : i32
    return %c0_i32, %c0_i32_0 : i32, i32
  }
  func.func @transform_15(%arg0: i32) -> (i32, i32) {
    %c0_i32 = arith.constant 0 : i32
    %c0_i32_0 = arith.constant 0 : i32
    %c0_i32_1 = arith.constant 0 : i32
    return %c0_i32, %c0_i32_0 : i32, i32
  }
  func.func @transform_16(%arg0: i32) -> (i32, i32) {
    %c0_i32 = arith.constant 0 : i32
    %c0_i32_0 = arith.constant 0 : i32
    return %arg0, %c0_i32 : i32, i32
  }
  func.func @transform_17(%arg0: i32) -> (i32, i32) {
    %c0_i32 = arith.constant 0 : i32
    %c0_i32_0 = arith.constant 0 : i32
    return %arg0, %c0_i32 : i32, i32
  }
}

</mosaic_0001>

<bundles_post_ra>
// kernel: tpu_custom_call.1
= control target key start
LH: loop header
LB: loop body
LE: loop exit
PB: predicated region body
PF: predicated region fallthrough
CT: control target
= control target key end

     0   :  { %s4771_s0 = inlined_call_operand.hbm [shape: f32[8,12], index: 0, kind: input, shape index: {}]   ;;  %s4772_s1 = inlined_call_operand.hbm [shape: f32[8,8], index: 1, kind: input, shape index: {}]   ;;  %s4773_s2 = inlined_call_operand.vmem [shape: f32[8,4], index: 2, kind: input, shape index: {}]   ;;  %s4774_s3 = inlined_call_operand.hbm [shape: f32[12,768], index: 3, kind: input, shape index: {}]   ;;  %s4775_s4 = inlined_call_operand.hbm [shape: f32[1,768], index: 4, kind: input, shape index: {}]   ;;  %s4776_s5 = inlined_call_operand.hbm [shape: f32[768,768], index: 5, kind: input, shape index: {}]   ;;  %s4777_s6 = inlined_call_operand.hbm [shape: f32[1,768], index: 6, kind: input, shape index: {}]   ;;  %s4778_s7 = inlined_call_operand.hbm [shape: f32[768,128], index: 7, kind: input, shape index: {}]   ;;  %s4779_s8 = inlined_call_operand.hbm [shape: f32[1,128], index: 8, kind: input, shape index: {}]   ;;  %s4780_s9 = inlined_call_operand.hbm [shape: f32[8,768], index: 9, kind: input, shape index: {}]   ;;  %s4781_s10 = inlined_call_operand.hbm [shape: f32[4,768], index: 10, kind: input, shape index: {}]   ;;  %s4782_s11 = inlined_call_operand.hbm [shape: f32[1,768], index: 11, kind: input, shape index: {}]   ;;  %s4783_s12 = inlined_call_operand.hbm [shape: f32[768,768], index: 12, kind: input, shape index: {}]   ;;  %s4784_s13 = inlined_call_operand.hbm [shape: f32[1,768], index: 13, kind: input, shape index: {}]   ;;  %s4785_s14 = inlined_call_operand.hbm [shape: f32[768,128], index: 14, kind: input, shape index: {}]   ;;  %s4786_s15 = inlined_call_operand.hbm [shape: f32[1,128], index: 15, kind: input, shape index: {}]   ;;  %s4787_s16 = inlined_call_operand.hbm [shape: f32[8,128], index: 16, kind: output, shape index: {0}]   ;;  %s4788_s17 = inlined_call_operand.hbm [shape: f32[8,128], index: 17, kind: output, shape index: {1}]  }
   0x1   :  { %4789 = sst [smem:[#allocation39_spill]] %s4771_s0 }
   0x2   :  { %4790 = sst [smem:[#allocation40_spill]] %s4772_s1 }
   0x3   :  { %23 = vsyncpa [#allocation3], 0 }
   0x4   :  { %24 = vsyncpa [#allocation6], 0 }
   0x5   :  { %25 = vsyncpa [#allocation9], 0 }
   0x6   :  { %26 = vsyncpa [#allocation12], 0 }
   0x7   :  { %27 = vsyncpa [#allocation15], 0 }
   0x8   :  { %28 = vsyncpa [#allocation18], 0 }
   0x9   :  { %29 = vsyncpa [#allocation21], 0 }
   0xa   :  { %30 = vsyncpa [#allocation24], 0 }
   0xb   :  { %31 = vsyncpa [#allocation4], 0  ;;  %s4791_s26 = sld [smem:[#allocation40_spill]] }
  0x11   :  { %s49_s27 = sshll.u32 %s4791_s26, 4  ;;  %s50_s27 = int_to_ptr.hbm [resolvable:$true] %s49_s27 }
  0x12   :  { %32 = vsyncpa [#allocation28], 0  ;;  %s4379_s28 = smov [#allocation5]   ;;  %s75_s18 = sshll.u32 %s4775_s4, 4  ;;  %s76_s18 = int_to_ptr.hbm [resolvable:$true] %s75_s18 }
  0x13   :  { %s51_s29 = sshll.u32 %s4379_s28, 4  ;;  %s4380_s19 = smov [#allocation8]   ;;  %s52_s29 = int_to_ptr.vmem [resolvable:$true] %s51_s29 }
  0x14   :  { %54 = dma.hbm_to_vmem [thread:$0]  %s50_s27, 128, %s52_s29, [#allocation6]  }
  0x15   :  { %s77_s1 = sshll.u32 %s4380_s19, 4  ;;  %s99_s22 = sshll.u32 %s4777_s6, 4  ;;  %s78_s1 = int_to_ptr.vmem [resolvable:$true] %s77_s1  ;;  %s100_s22 = int_to_ptr.hbm [resolvable:$true] %s99_s22 }
  0x16   :  { %80 = dma.hbm_to_vmem [thread:$0]  %s76_s18, 96, %s78_s1, [#allocation9]  }
  0x17   :  { %s123_s25 = sshll.u32 %s4779_s8, 4  ;;  %s4381_s26 = smov [#allocation11]   ;;  %s124_s25 = int_to_ptr.hbm [resolvable:$true] %s123_s25 }
  0x18   :  { %s101_s28 = sshll.u32 %s4381_s26, 4  ;;  %s4382_s4 = smov [#allocation14]   ;;  %s102_s28 = int_to_ptr.vmem [resolvable:$true] %s101_s28 }
  0x19   :  { %104 = dma.hbm_to_vmem [thread:$0]  %s100_s22, 96, %s102_s28, [#allocation12]  }
  0x1a   :  { %s125_s27 = sshll.u32 %s4382_s4, 4  ;;  %s145_s30 = sshll.u32 %s4781_s10, 4  ;;  %s126_s27 = int_to_ptr.vmem [resolvable:$true] %s125_s27  ;;  %s146_s30 = int_to_ptr.hbm [resolvable:$true] %s145_s30 }
  0x1b   :  { %128 = dma.hbm_to_vmem [thread:$0]  %s124_s25, 16, %s126_s27, [#allocation15]  }
  0x1c   :  { %s4383_s6 = smov [#allocation17]   ;;  %s166_s8 = sshll.u32 %s4783_s12, 4  ;;  %s167_s8 = int_to_ptr.hbm [resolvable:$true] %s166_s8 }
  0x1d   :  { %s147_s18 = sshll.u32 %s4383_s6, 4  ;;  %s4384_s20 = smov [#allocation20]   ;;  %s148_s18 = int_to_ptr.vmem [resolvable:$true] %s147_s18 }
  0x1e   :  { %150 = dma.hbm_to_vmem [thread:$0]  %s146_s30, 384, %s148_s18, [#allocation18]  }
  0x1f   :  { %s168_s21 = sshll.u32 %s4384_s20, 4  ;;  %s4385_s22 = smov 768   ;;  %s169_s21 = int_to_ptr.vmem [resolvable:$true] %s168_s21 }
  0x20   :  { %s4386_s23 = smov 48   ;;  %s190_s25 = sshll.u32 %s4785_s14, 4  ;;  %s191_s25 = int_to_ptr.hbm [resolvable:$true] %s190_s25 }
  0x21   :  { %174 = dma.hbm_to_vmem [thread:$0]  %s167_s8, 73728, %s169_s21, [#allocation21], %s4385_s22, %s4385_s22, %s4386_s23  }
  0x22   :  { %s4387_s26 = smov [#allocation23]   ;;  %s4792_s27 = sld [smem:[#allocation39_spill]] }
  0x23   :  { %s192_s28 = sshll.u32 %s4387_s26, 4  ;;  %s4388_s0 = smov 128   ;;  %s193_s28 = int_to_ptr.vmem [resolvable:$true] %s192_s28 }
  0x24   :  { %s4389_s30 = smov 8   ;;  %s4390_s6 = smov [#allocation2]  }
  0x25   :  { %198 = dma.hbm_to_vmem [thread:$0]  %s191_s25, 12288, %s193_s28, [#allocation24], %s4388_s0, %s4388_s0, %s4389_s30  }
  0x26   :  { %s40_s18 = sshll.u32 %s4390_s6, 4  ;;  %s61_s14 = sshll.u32 %s4774_s3, 4  ;;  %s41_s18 = int_to_ptr.vmem [resolvable:$true] %s40_s18  ;;  %s62_s14 = int_to_ptr.hbm [resolvable:$true] %s61_s14 }
  0x27   :  { %s85_s21 = sshll.u32 %s4776_s5, 4  ;;  %s4391_s10 = smov [#allocation7]   ;;  %s86_s21 = int_to_ptr.hbm [resolvable:$true] %s85_s21 }
  0x28   :  { %s38_s29 = sshll.u32 %s4792_s27, 4  ;;  %s63_s24 = sshll.u32 %s4391_s10, 4  ;;  %s39_s29 = int_to_ptr.hbm [resolvable:$true] %s38_s29  ;;  %s64_s24 = int_to_ptr.vmem [resolvable:$true] %s63_s24 }
  0x29   :  { %43 = dma.hbm_to_vmem [thread:$0]  %s39_s29, 128, %s41_s18, [#allocation3]  }
  0x2a   :  { %69 = dma.hbm_to_vmem [thread:$0]  %s62_s14, 1536, %s64_s24, [#allocation6], %s4385_s22, %s4385_s22, %s4386_s23  }
  0x2b   :  { %s4392_s25 = smov [#allocation10]   ;;  %s109_s3 = sshll.u32 %s4778_s7, 4  ;;  %s110_s3 = int_to_ptr.hbm [resolvable:$true] %s109_s3 }
  0x2c   :  { %s87_s26 = sshll.u32 %s4392_s25, 4  ;;  %s134_s27 = sshll.u32 %s4780_s9, 4  ;;  %s88_s26 = int_to_ptr.vmem [resolvable:$true] %s87_s26  ;;  %s135_s27 = int_to_ptr.hbm [resolvable:$true] %s134_s27 }
  0x2d   :  { %93 = dma.hbm_to_vmem [thread:$0]  %s86_s21, 73728, %s88_s26, [#allocation9], %s4385_s22, %s4385_s22, %s4386_s23  }
  0x2e   :  { %s4393_s29 = smov [#allocation13]   ;;  %s4394_s18 = smov [#allocation16]  }
  0x2f   :  { %s111_s6 = sshll.u32 %s4393_s29, 4  ;;  %s136_s7 = sshll.u32 %s4394_s18, 4  ;;  %s112_s6 = int_to_ptr.vmem [resolvable:$true] %s111_s6  ;;  %s137_s7 = int_to_ptr.vmem [resolvable:$true] %s136_s7 }
  0x30   :  { %117 = dma.hbm_to_vmem [thread:$0]  %s110_s3, 12288, %s112_s6, [#allocation12], %s4388_s0, %s4388_s0, %s4389_s30  }
  0x31   :  { %s156_s14 = sshll.u32 %s4782_s11, 4  ;;  %s180_s9 = sshll.u32 %s4784_s13, 4  ;;  %s157_s14 = int_to_ptr.hbm [resolvable:$true] %s156_s14  ;;  %s181_s9 = int_to_ptr.hbm [resolvable:$true] %s180_s9 }
  0x32   :  { %139 = dma.hbm_to_vmem [thread:$0]  %s135_s27, 768, %s137_s7, [#allocation15]  }
  0x33   :  { %s4395_s8 = smov [#allocation19]   ;;  %s4396_s21 = smov [#allocation22]  }
  0x34   :  { %s158_s20 = sshll.u32 %s4395_s8, 4  ;;  %s182_s0 = sshll.u32 %s4396_s21, 4  ;;  %s159_s20 = int_to_ptr.vmem [resolvable:$true] %s158_s20  ;;  %s183_s0 = int_to_ptr.vmem [resolvable:$true] %s182_s0 }
  0x35   :  { %161 = dma.hbm_to_vmem [thread:$0]  %s157_s14, 96, %s159_s20, [#allocation18]  }
  0x36   :  { %s204_s24 = sshll.u32 %s4786_s15, 4  ;;  %s4397_s11 = smov [#allocation25]   ;;  %s205_s24 = int_to_ptr.hbm [resolvable:$true] %s204_s24 }
  0x37   :  { %185 = dma.hbm_to_vmem [thread:$0]  %s181_s9, 96, %s183_s0, [#allocation21]  }
  0x38   :  { %s206_s25 = sshll.u32 %s4397_s11, 4  ;;  %s207_s25 = int_to_ptr.vmem [resolvable:$true] %s206_s25 }
  0x39   :  { %209 = dma.hbm_to_vmem [thread:$0]  %s205_s24, 16, %s207_s25, [#allocation24]  }
  0x3a   :  { %4359 = dma.done.wait [#allocation3], 128  }
  0x3b   :  { %4360 = vsyncadd [#allocation3], 4294967168 }
  0x3c   :  { %4361 = dma.done.wait [#allocation6], 1664  }
  0x3d   :  { %4362 = vsyncadd [#allocation6], 4294965632 }
  0x3e   :  { %4363 = dma.done.wait [#allocation9], 73824  }
  0x3f   :  { %4364 = vsyncadd [#allocation9], 4294893472 }
  0x40   :  { %4365 = dma.done.wait [#allocation12], 12384  }
  0x41   :  { %4366 = vsyncadd [#allocation12], 4294954912 }
  0x42   :  { %4367 = dma.done.wait [#allocation15], 784  }
  0x43   :  { %4368 = vsyncadd [#allocation15], 4294966512 }
  0x44   :  { %4369 = dma.done.wait [#allocation18], 480  }
  0x45   :  { %4370 = vsyncadd [#allocation18], 4294966816 }
  0x46   :  { %4371 = dma.done.wait [#allocation21], 73824  }
  0x47   :  { %4372 = vsyncadd [#allocation21], 4294893472 }
  0x48   :  { %4373 = dma.done.wait [#allocation24], 12304  }
  0x49   :  { %4374 = vsyncadd [#allocation24], 4294954992  ;;  %vm303_vm0 = vcmask 1043456   ;;  %v279_v0 = vld [vmem:[#allocation7 + $0x30] sm:$0xf]  ;;  %v273_v4 = vld [vmem:[#allocation7] sm:$0xff] }
  0x4a   :  { %v280_v1 = vld [vmem:[#allocation7 + $0x38] sm:$0xf]  ;;  %v281_v2 = vld [vmem:[#allocation7 + $0x40] sm:$0xf]  ;;  %3892 = vmatpush.msk.msra.mxu0 %vm303_vm0, %v279_v0  ;;  %v282_v3 = vld [vmem:[#allocation7 + $0x48] sm:$0xf] }
  0x4b   :  { %3894 = vmatpush.msk.msra.mxu1 %vm303_vm0, %v280_v1  ;;  %v274_v5 = vld [vmem:[#allocation7 + $0x8] sm:$0xff]  ;;  %3896 = vmatpush.msk.msra.mxu2 %vm303_vm0, %v281_v2  ;;  %v275_v6 = vld [vmem:[#allocation7 + $0x10] sm:$0xff]  ;;  %v276_v7 = vld [vmem:[#allocation7 + $0x18] sm:$0xff]  ;;  %vm299_vm1 = vcmask 97280   ;;  %s4398_s26 = smov 4   ;;  %vm2028_vm5 = vcmask 31744  }
  0x4c   :  { %3898 = vmatpush.msk.msra.mxu3 %vm303_vm0, %v282_v3  ;;  %v272_v8 = vld [vmem:[#allocation2] sm:$0xff]  ;;  %337 = vmatpush.msra.mxu0 %v273_v4  ;;  %v284_v10 = vld [vmem:[#allocation7 + $0x58] sm:$0xf]  ;;  %v277_v13 = vld [vmem:[#allocation7 + $0x20] sm:$0xff]  ;;  %vm2164_vm6 = vcmask 64512   ;;  %s4400_s28 = smov [#allocation27]  }
  0x4d   :  { %357 = vmatpush.msra.mxu1 %v274_v5  ;;  %377 = vmatpush.msra.mxu2 %v275_v6  ;;  %v283_v9 = vld [vmem:[#allocation7 + $0x50] sm:$0xf]  ;;  %v538_v11 = vld [vmem:[#allocation10 + $0x2d0] sm:$0xff]  ;;  %v278_v14 = vld [vmem:[#allocation7 + $0x28] sm:$0xff]  ;;  %s3868_s12 = sshll.u32 %s4400_s28, 4  ;;  %s3870_s4 = sshll.u32 %s4788_s17, 4  ;;  %s3869_s12 = int_to_ptr.vmem [resolvable:$true] %s3868_s12  ;;  %s3871_s4 = int_to_ptr.hbm [resolvable:$true] %s3870_s4 }
  0x4e   :  { %397 = vmatpush.msra.mxu3 %v276_v7  ;;  %3893 = vmatmul.msk.f32.vlgmr.msra.gmra.mxu0 %vm299_vm1, %v272_v8  ;;  %v634_v12 = vld [vmem:[#allocation10 + $0x5d0] sm:$0xff]  ;;  %v532_v15 = vld [vmem:[#allocation10 + $0x2a0] sm:$0xff]  ;;  %s4401_s27 = smov [#allocation26]   ;;  %s3859_s18 = sshll.u32 %s4787_s16, 4  ;;  %s3860_s18 = int_to_ptr.hbm [resolvable:$true] %s3859_s18 }
  0x4f   :  { %3895 = vmatmul.msk.f32.vlgmr.msra.gmra.mxu1 %vm299_vm1, %v272_v8  ;;  %3897 = vmatmul.msk.f32.vlgmr.msra.gmra.mxu2 %vm299_vm1, %v272_v8  ;;  %v628_v16 = vld [vmem:[#allocation10 + $0x5a0] sm:$0xff]  ;;  %v730_v17 = vld [vmem:[#allocation10 + $0x8d0] sm:$0xff]  ;;  %s3857_s29 = sshll.u32 %s4401_s27, 4  ;;  %s3858_s29 = int_to_ptr.vmem [resolvable:$true] %s3857_s29 }
  0x50   :  { %3899 = vmatmul.msk.f32.vlgmr.msra.gmra.mxu3 %vm299_vm1, %v272_v8  ;;  %3900 = vmatpush.msk.msrb.mxu0 %vm303_vm0, %v283_v9  ;;  %v826_v18 = vld [vmem:[#allocation10 + $0xbd0] sm:$0xff]  ;;  %v520_v21 = vld [vmem:[#allocation10 + $0x240] sm:$0xff] }
  0x51   :  { %3902 = vmatpush.msk.msrb.mxu1 %vm303_vm0, %v284_v10  ;;  %1038 = vmatpush.msrb.mxu2 %v538_v11  ;;  %v526_v19 = vld [vmem:[#allocation10 + $0x270] sm:$0xff]  ;;  %v616_v22 = vld [vmem:[#allocation10 + $0x540] sm:$0xff] }
  0x52   :  { %1058 = vmatpush.msrb.mxu3 %v634_v12  ;;  %417 = vmatpush.msrb.mxu0 %v277_v13  ;;  %v622_v20 = vld [vmem:[#allocation10 + $0x570] sm:$0xff]  ;;  %v724_v23 = vld [vmem:[#allocation10 + $0x8a0] sm:$0xff] }
  0x53   :  { %437 = vmatpush.msrb.mxu1 %v278_v14  ;;  %1039 = vmatpush.msrb.mxu2 %v532_v15  ;;  %v820_v24 = vld [vmem:[#allocation10 + $0xba0] sm:$0xff]  ;;  %v514_v25 = vld [vmem:[#allocation10 + $0x210] sm:$0xff] }
  0x54   :  { %1059 = vmatpush.msrb.mxu3 %v628_v16  ;;  %1078 = vmatpush.msra.mxu0 %v730_v17  ;;  %v610_v26 = vld [vmem:[#allocation10 + $0x510] sm:$0xff]  ;;  %v508_v29 = vld [vmem:[#allocation10 + $0x1e0] sm:$0xff] }
  0x55   :  { %1098 = vmatpush.msra.mxu1 %v826_v18  ;;  %1040 = vmatpush.msrb.mxu2 %v526_v19  ;;  %v718_v27 = vld [vmem:[#allocation10 + $0x870] sm:$0xff]  ;;  %v604_v30 = vld [vmem:[#allocation10 + $0x4e0] sm:$0xff] }
  0x56   :  { %1060 = vmatpush.msrb.mxu3 %v622_v20  ;;  %3901 = vmatmul.msk.f32.vlgmr.msrb.gmra.mxu0 %vm299_vm1, %v272_v8  ;;  %v814_v28 = vld [vmem:[#allocation10 + $0xb70] sm:$0xff]  ;;  %v712_v31 = vld [vmem:[#allocation10 + $0x840] sm:$0xff] }
  0x57   :  { %3903 = vmatmul.msk.f32.vlgmr.msrb.gmra.mxu1 %vm299_vm1, %v272_v8  ;;  %1041 = vmatpush.msrb.mxu2 %v520_v21  ;;  %v808_v32 = vld [vmem:[#allocation10 + $0xb40] sm:$0xff]  ;;  %v502_v33 = vld [vmem:[#allocation10 + $0x1b0] sm:$0xff]  ;;  %v539_v21 = vld [vmem:[#allocation10 + $0x2d8] sm:$0xff] }
  0x58   :  { %1061 = vmatpush.msrb.mxu3 %v616_v22  ;;  %1079 = vmatpush.msra.mxu0 %v724_v23  ;;  %v598_v34 = vld [vmem:[#allocation10 + $0x4b0] sm:$0xff]  ;;  %v496_v37 = vld [vmem:[#allocation10 + $0x180] sm:$0xff]  ;;  %v635_v22 = vld [vmem:[#allocation10 + $0x5d8] sm:$0xff] }
  0x59   :  { %1099 = vmatpush.msra.mxu1 %v820_v24  ;;  %1042 = vmatpush.msrb.mxu2 %v514_v25  ;;  %v706_v35 = vld [vmem:[#allocation10 + $0x810] sm:$0xff]  ;;  %v592_v38 = vld [vmem:[#allocation10 + $0x480] sm:$0xff]  ;;  %v533_v25 = vld [vmem:[#allocation10 + $0x2a8] sm:$0xff] }
  0x5a   :  { %1062 = vmatpush.msrb.mxu3 %v610_v26  ;;  %1080 = vmatpush.msra.mxu0 %v718_v27  ;;  %v802_v36 = vld [vmem:[#allocation10 + $0xb10] sm:$0xff]  ;;  %v700_v39 = vld [vmem:[#allocation10 + $0x7e0] sm:$0xff]  ;;  %v629_v26 = vld [vmem:[#allocation10 + $0x5a8] sm:$0xff] }
  0x5b   :  { %1100 = vmatpush.msra.mxu1 %v814_v28  ;;  %1043 = vmatpush.msrb.mxu2 %v508_v29  ;;  %v796_v40 = vld [vmem:[#allocation10 + $0xae0] sm:$0xff]  ;;  %v490_v41 = vld [vmem:[#allocation10 + $0x150] sm:$0xff]  ;;  %v527_v29 = vld [vmem:[#allocation10 + $0x278] sm:$0xff] }
  0x5c   :  { %1063 = vmatpush.msrb.mxu3 %v604_v30  ;;  %1081 = vmatpush.msra.mxu0 %v712_v31  ;;  %v586_v42 = vld [vmem:[#allocation10 + $0x450] sm:$0xff]  ;;  %v484_v45 = vld [vmem:[#allocation10 + $0x120] sm:$0xff]  ;;  %v623_v30 = vld [vmem:[#allocation10 + $0x578] sm:$0xff] }
  0x5d   :  { %1101 = vmatpush.msra.mxu1 %v808_v32  ;;  %1044 = vmatpush.msrb.mxu2 %v502_v33  ;;  %v694_v43 = vld [vmem:[#allocation10 + $0x7b0] sm:$0xff]  ;;  %v580_v46 = vld [vmem:[#allocation10 + $0x420] sm:$0xff]  ;;  %v521_v33 = vld [vmem:[#allocation10 + $0x248] sm:$0xff] }
  0x5e   :  { %1064 = vmatpush.msrb.mxu3 %v598_v34  ;;  %1082 = vmatpush.msra.mxu0 %v706_v35  ;;  %v790_v44 = vld [vmem:[#allocation10 + $0xab0] sm:$0xff]  ;;  %v688_v47 = vld [vmem:[#allocation10 + $0x780] sm:$0xff]  ;;  %v617_v34 = vld [vmem:[#allocation10 + $0x548] sm:$0xff] }
  0x5f   :  { %1102 = vmatpush.msra.mxu1 %v802_v36  ;;  %1045 = vmatpush.msrb.mxu2 %v496_v37  ;;  %v784_v48 = vld [vmem:[#allocation10 + $0xa80] sm:$0xff]  ;;  %v478_v49 = vld [vmem:[#allocation10 + $0xf0] sm:$0xff]  ;;  %v515_v37 = vld [vmem:[#allocation10 + $0x218] sm:$0xff] }
  0x60   :  { %1065 = vmatpush.msrb.mxu3 %v592_v38  ;;  %1083 = vmatpush.msra.mxu0 %v700_v39  ;;  %v574_v50 = vld [vmem:[#allocation10 + $0x3f0] sm:$0xff]  ;;  %v472_v53 = vld [vmem:[#allocation10 + $0xc0] sm:$0xff]  ;;  %v611_v38 = vld [vmem:[#allocation10 + $0x518] sm:$0xff] }
  0x61   :  { %1103 = vmatpush.msra.mxu1 %v796_v40  ;;  %1046 = vmatpush.msrb.mxu2 %v490_v41  ;;  %v682_v51 = vld [vmem:[#allocation10 + $0x750] sm:$0xff]  ;;  %v568_v54 = vld [vmem:[#allocation10 + $0x3c0] sm:$0xff]  ;;  %v509_v41 = vld [vmem:[#allocation10 + $0x1e8] sm:$0xff] }
  0x62   :  { %1066 = vmatpush.msrb.mxu3 %v586_v42  ;;  %1084 = vmatpush.msra.mxu0 %v694_v43  ;;  %v778_v52 = vld [vmem:[#allocation10 + $0xa50] sm:$0xff]  ;;  %v676_v55 = vld [vmem:[#allocation10 + $0x720] sm:$0xff]  ;;  %v605_v42 = vld [vmem:[#allocation10 + $0x4e8] sm:$0xff] }
  0x63   :  { %1104 = vmatpush.msra.mxu1 %v790_v44  ;;  %1047 = vmatpush.msrb.mxu2 %v484_v45  ;;  %v772_v56 = vld [vmem:[#allocation10 + $0xa20] sm:$0xff]  ;;  %v466_v57 = vld [vmem:[#allocation10 + $0x90] sm:$0xff]  ;;  %v503_v45 = vld [vmem:[#allocation10 + $0x1b8] sm:$0xff] }
  0x64   :  { %1067 = vmatpush.msrb.mxu3 %v580_v46  ;;  %1085 = vmatpush.msra.mxu0 %v688_v47  ;;  %v562_v58 = vld [vmem:[#allocation10 + $0x390] sm:$0xff]  ;;  %v460_v61 = vld [vmem:[#allocation10 + $0x60] sm:$0xff]  ;;  %v599_v46 = vld [vmem:[#allocation10 + $0x4b8] sm:$0xff] }
  0x65   :  { %1105 = vmatpush.msra.mxu1 %v784_v48  ;;  %1048 = vmatpush.msrb.mxu2 %v478_v49  ;;  %v670_v59 = vld [vmem:[#allocation10 + $0x6f0] sm:$0xff]  ;;  %v556_v62 = vld [vmem:[#allocation10 + $0x360] sm:$0xff]  ;;  %v497_v49 = vld [vmem:[#allocation10 + $0x188] sm:$0xff] }
  0x66   :  { %1068 = vmatpush.msrb.mxu3 %v574_v50  ;;  %1086 = vmatpush.msra.mxu0 %v682_v51  ;;  %v766_v60 = vld [vmem:[#allocation10 + $0x9f0] sm:$0xff]  ;;  %v664_v63 = vld [vmem:[#allocation10 + $0x6c0] sm:$0xff]  ;;  %v593_v50 = vld [vmem:[#allocation10 + $0x488] sm:$0xff] }
  0x67   :  { %1106 = vmatpush.msra.mxu1 %v778_v52  ;;  %1049 = vmatpush.msrb.mxu2 %v472_v53  ;;  %v760_v0 = vld [vmem:[#allocation10 + $0x9c0] sm:$0xff]  ;;  %v454_v1 = vld [vmem:[#allocation10 + $0x30] sm:$0xff]  ;;  %v491_v53 = vld [vmem:[#allocation10 + $0x158] sm:$0xff] }
  0x68   :  { %1069 = vmatpush.msrb.mxu3 %v568_v54  ;;  %1087 = vmatpush.msra.mxu0 %v676_v55  ;;  %v550_v2 = vld [vmem:[#allocation10 + $0x330] sm:$0xff]  ;;  %v448_v5 = vld [vmem:[#allocation10] sm:$0xff]  ;;  %v587_v54 = vld [vmem:[#allocation10 + $0x458] sm:$0xff] }
  0x69   :  { %1107 = vmatpush.msra.mxu1 %v772_v56  ;;  %1050 = vmatpush.msrb.mxu2 %v466_v57  ;;  %v658_v3 = vld [vmem:[#allocation10 + $0x690] sm:$0xff]  ;;  %v544_v6 = vld [vmem:[#allocation10 + $0x300] sm:$0xff]  ;;  %v485_v57 = vld [vmem:[#allocation10 + $0x128] sm:$0xff] }
  0x6a   :  { %1070 = vmatpush.msrb.mxu3 %v562_v58  ;;  %1088 = vmatpush.msra.mxu0 %v670_v59  ;;  %v754_v4 = vld [vmem:[#allocation10 + $0x990] sm:$0xff]  ;;  %v652_v9 = vld [vmem:[#allocation10 + $0x660] sm:$0xff]  ;;  %v581_v58 = vld [vmem:[#allocation10 + $0x428] sm:$0xff] }
  0x6b   :  { %1108 = vmatpush.msra.mxu1 %v766_v60  ;;  %1051 = vmatpush.msrb.mxu2 %v460_v61  ;;  %v922_v7 = vld [vmem:[#allocation10 + $0xed0] sm:$0xff]  ;;  %v748_v10 = vld [vmem:[#allocation10 + $0x960] sm:$0xff]  ;;  %v479_v61 = vld [vmem:[#allocation10 + $0xf8] sm:$0xff] }
  0x6c   :  { %1071 = vmatpush.msrb.mxu3 %v556_v62  ;;  %1089 = vmatpush.msra.mxu0 %v664_v63  ;;  %v1018_v8 = vld [vmem:[#allocation10 + $0x11d0] sm:$0xff]  ;;  %v916_v11 = vld [vmem:[#allocation10 + $0xea0] sm:$0xff]  ;;  %v575_v62 = vld [vmem:[#allocation10 + $0x3f8] sm:$0xff] }
  0x6d   :  { %1109 = vmatpush.msra.mxu1 %v760_v0  ;;  %1052 = vmatpush.msrb.mxu2 %v454_v1  ;;  %v1012_v12 = vld [vmem:[#allocation10 + $0x11a0] sm:$0xff]  ;;  %v646_v13 = vld [vmem:[#allocation10 + $0x630] sm:$0xff]  ;;  %v473_v1 = vld [vmem:[#allocation10 + $0xc8] sm:$0xff] }
  0x6e   :  { %1072 = vmatpush.msrb.mxu3 %v550_v2  ;;  %1090 = vmatpush.msra.mxu0 %v658_v3  ;;  %v742_v14 = vld [vmem:[#allocation10 + $0x930] sm:$0xff]  ;;  %v640_v17 = vld [vmem:[#allocation10 + $0x600] sm:$0xff]  ;;  %v569_v2 = vld [vmem:[#allocation10 + $0x3c8] sm:$0xff] }
  0x6f   :  { %1110 = vmatpush.msra.mxu1 %v754_v4  ;;  %1053 = vmatpush.msrb.mxu2 %v448_v5  ;;  %v910_v15 = vld [vmem:[#allocation10 + $0xe70] sm:$0xff]  ;;  %v736_v18 = vld [vmem:[#allocation10 + $0x900] sm:$0xff]  ;;  %v467_v5 = vld [vmem:[#allocation10 + $0x98] sm:$0xff] }
  0x70   :  { %1073 = vmatpush.msrb.mxu3 %v544_v6  ;;  %1091 = vmatpush.msra.mxu0 %v652_v9  ;;  %v1006_v16 = vld [vmem:[#allocation10 + $0x1170] sm:$0xff]  ;;  %v904_v19 = vld [vmem:[#allocation10 + $0xe40] sm:$0xff]  ;;  %v563_v6 = vld [vmem:[#allocation10 + $0x398] sm:$0xff] }
  0x71   :  { %1118 = vmatpush.msra.mxu2 %v922_v7  ;;  %1111 = vmatpush.msra.mxu1 %v748_v10  ;;  %v1000_v20 = vld [vmem:[#allocation10 + $0x1140] sm:$0xff]  ;;  %v898_v23 = vld [vmem:[#allocation10 + $0xe10] sm:$0xff]  ;;  %v461_v7 = vld [vmem:[#allocation10 + $0x68] sm:$0xff] }
  0x72   :  { %1138 = vmatpush.msra.mxu3 %v1018_v8  ;;  %1092 = vmatpush.msra.mxu0 %v646_v13  ;;  %v994_v24 = vld [vmem:[#allocation10 + $0x1110] sm:$0xff]  ;;  %v892_v27 = vld [vmem:[#allocation10 + $0xde0] sm:$0xff]  ;;  %v557_v8 = vld [vmem:[#allocation10 + $0x368] sm:$0xff] }
  0x73   :  { %1119 = vmatpush.msra.mxu2 %v916_v11  ;;  %1112 = vmatpush.msra.mxu1 %v742_v14  ;;  %v988_v28 = vld [vmem:[#allocation10 + $0x10e0] sm:$0xff]  ;;  %v886_v31 = vld [vmem:[#allocation10 + $0xdb0] sm:$0xff]  ;;  %v455_v9 = vld [vmem:[#allocation10 + $0x38] sm:$0xff] }
  0x74   :  { %1139 = vmatpush.msra.mxu3 %v1012_v12  ;;  %1093 = vmatpush.msra.mxu0 %v640_v17  ;;  %v982_v32 = vld [vmem:[#allocation10 + $0x10b0] sm:$0xff]  ;;  %v880_v35 = vld [vmem:[#allocation10 + $0xd80] sm:$0xff]  ;;  %v551_v10 = vld [vmem:[#allocation10 + $0x338] sm:$0xff] }
  0x75   :  { %1120 = vmatpush.msra.mxu2 %v910_v15  ;;  %1113 = vmatpush.msra.mxu1 %v736_v18  ;;  %v976_v36 = vld [vmem:[#allocation10 + $0x1080] sm:$0xff]  ;;  %v874_v39 = vld [vmem:[#allocation10 + $0xd50] sm:$0xff]  ;;  %v449_v11 = vld [vmem:[#allocation10 + $0x8] sm:$0xff] }
  0x76   :  { %1140 = vmatpush.msra.mxu3 %v1006_v16  ;;  %1158 = vmatpush.msrb.mxu0 %v539_v21  ;;  %v970_v40 = vld [vmem:[#allocation10 + $0x1050] sm:$0xff]  ;;  %v868_v43 = vld [vmem:[#allocation10 + $0xd20] sm:$0xff]  ;;  %v545_v12 = vld [vmem:[#allocation10 + $0x308] sm:$0xff] }
  0x77   :  { %1121 = vmatpush.msra.mxu2 %v904_v19  ;;  %1178 = vmatpush.msrb.mxu1 %v635_v22  ;;  %v964_v44 = vld [vmem:[#allocation10 + $0x1020] sm:$0xff]  ;;  %v862_v47 = vld [vmem:[#allocation10 + $0xcf0] sm:$0xff]  ;;  %v285_v13 = vld [vmem:[#allocation8] sm:$0x3f] }
  0x78   :  { %1141 = vmatpush.msra.mxu3 %v1000_v20  ;;  %1159 = vmatpush.msrb.mxu0 %v533_v25  ;;  %v958_v48 = vld [vmem:[#allocation10 + $0xff0] sm:$0xff]  ;;  %v856_v51 = vld [vmem:[#allocation10 + $0xcc0] sm:$0xff]  ;;  %v287_v14 = vperm.slane %v285_v13, 0  ;;  %v288_v15 = vperm.slane %v285_v13, 1  ;;  %v731_v22 = vld [vmem:[#allocation10 + $0x8d8] sm:$0xff]  ;;  %v290_v25 = vperm.slane %v285_v13, 3 }
  0x79   :  { %1122 = vmatpush.msra.mxu2 %v898_v23  ;;  %1179 = vmatpush.msrb.mxu1 %v629_v26  ;;  %v952_v52 = vld [vmem:[#allocation10 + $0xfc0] sm:$0xff]  ;;  %v850_v55 = vld [vmem:[#allocation10 + $0xc90] sm:$0xff]  ;;  %v827_v23 = vld [vmem:[#allocation10 + $0xbd8] sm:$0xff] }
  0x7a   :  { %1142 = vmatpush.msra.mxu3 %v994_v24  ;;  %1160 = vmatpush.msrb.mxu0 %v527_v29  ;;  %v946_v56 = vld [vmem:[#allocation10 + $0xf90] sm:$0xff]  ;;  %v844_v59 = vld [vmem:[#allocation10 + $0xc60] sm:$0xff]  ;;  %v289_v24 = vperm.slane %v285_v13, 2  ;;  %v725_v26 = vld [vmem:[#allocation10 + $0x8a8] sm:$0xff]  ;;  %v292_v29 = vperm.slane %v285_v13, 5 }
  0x7b   :  { %1123 = vmatpush.msra.mxu2 %v892_v27  ;;  %1180 = vmatpush.msrb.mxu1 %v623_v30  ;;  %v940_v60 = vld [vmem:[#allocation10 + $0xf60] sm:$0xff]  ;;  %v838_v63 = vld [vmem:[#allocation10 + $0xc30] sm:$0xff]  ;;  %v821_v27 = vld [vmem:[#allocation10 + $0xba8] sm:$0xff] }
  0x7c   :  { %1143 = vmatpush.msra.mxu3 %v988_v28  ;;  %1161 = vmatpush.msrb.mxu0 %v521_v33  ;;  %v934_v0 = vld [vmem:[#allocation10 + $0xf30] sm:$0xff]  ;;  %v832_v3 = vld [vmem:[#allocation10 + $0xc00] sm:$0xff]  ;;  %v291_v28 = vperm.slane %v285_v13, 4  ;;  %v815_v33 = vld [vmem:[#allocation10 + $0xb78] sm:$0xff] }
  0x7d   :  { %1124 = vmatpush.msra.mxu2 %v886_v31  ;;  %1181 = vmatpush.msrb.mxu1 %v617_v34  ;;  %v928_v4 = vld [vmem:[#allocation10 + $0xf00] sm:$0xff]  ;;  %v761_v13 = vld [vmem:[#allocation10 + $0x9c8] sm:$0xff] }
  0x7e   :  { %1144 = vmatpush.msra.mxu3 %v982_v32  ;;  %1162 = vmatpush.msrb.mxu0 %v515_v37  ;;  %v719_v32 = vld [vmem:[#allocation10 + $0x878] sm:$0xff] }
  0x7f   :  { %1125 = vmatpush.msra.mxu2 %v880_v35  ;;  %1182 = vmatpush.msrb.mxu1 %v611_v38 }
  0x80   :  { %1145 = vmatpush.msra.mxu3 %v976_v36  ;;  %1163 = vmatpush.msrb.mxu0 %v509_v41 }
  0x81   :  { %1126 = vmatpush.msra.mxu2 %v874_v39  ;;  %1183 = vmatpush.msrb.mxu1 %v605_v42  ;;  %v713_v42 = vld [vmem:[#allocation10 + $0x848] sm:$0xff] }
  0x82   :  { %1146 = vmatpush.msra.mxu3 %v970_v40  ;;  %1164 = vmatpush.msrb.mxu0 %v503_v45  ;;  %v923_v45 = vld [vmem:[#allocation10 + $0xed8] sm:$0xff] }
  0x83   :  { %1127 = vmatpush.msra.mxu2 %v868_v43  ;;  %1184 = vmatpush.msrb.mxu1 %v599_v46  ;;  %v809_v43 = vld [vmem:[#allocation10 + $0xb48] sm:$0xff]  ;;  %v1019_v46 = vld [vmem:[#allocation10 + $0x11d8] sm:$0xff] }
  0x84   :  { %1147 = vmatpush.msra.mxu3 %v964_v44  ;;  %1165 = vmatpush.msrb.mxu0 %v497_v49  ;;  %v707_v49 = vld [vmem:[#allocation10 + $0x818] sm:$0xff] }
  0x85   :  { %1128 = vmatpush.msra.mxu2 %v862_v47  ;;  %1185 = vmatpush.msrb.mxu1 %v593_v50  ;;  %v803_v47 = vld [vmem:[#allocation10 + $0xb18] sm:$0xff]  ;;  %v917_v50 = vld [vmem:[#allocation10 + $0xea8] sm:$0xff] }
  0x86   :  { %1148 = vmatpush.msra.mxu3 %v958_v48  ;;  %1166 = vmatpush.msrb.mxu0 %v491_v53  ;;  %v797_v53 = vld [vmem:[#allocation10 + $0xae8] sm:$0xff] }
  0x87   :  { %1129 = vmatpush.msra.mxu2 %v856_v51  ;;  %1186 = vmatpush.msrb.mxu1 %v587_v54  ;;  %v1013_v51 = vld [vmem:[#allocation10 + $0x11a8] sm:$0xff]  ;;  %v911_v54 = vld [vmem:[#allocation10 + $0xe78] sm:$0xff] }
  0x88   :  { %1149 = vmatpush.msra.mxu3 %v952_v52  ;;  %1167 = vmatpush.msrb.mxu0 %v485_v57  ;;  %v701_v52 = vld [vmem:[#allocation10 + $0x7e8] sm:$0xff]  ;;  %v791_v57 = vld [vmem:[#allocation10 + $0xab8] sm:$0xff] }
  0x89   :  { %1130 = vmatpush.msra.mxu2 %v850_v55  ;;  %1187 = vmatpush.msrb.mxu1 %v581_v58  ;;  %v1007_v55 = vld [vmem:[#allocation10 + $0x1178] sm:$0xff]  ;;  %v905_v58 = vld [vmem:[#allocation10 + $0xe48] sm:$0xff] }
  0x8a   :  { %1150 = vmatpush.msra.mxu3 %v946_v56  ;;  %1168 = vmatpush.msrb.mxu0 %v479_v61  ;;  %v695_v56 = vld [vmem:[#allocation10 + $0x7b8] sm:$0xff]  ;;  %v785_v61 = vld [vmem:[#allocation10 + $0xa88] sm:$0xff] }
  0x8b   :  { %1131 = vmatpush.msra.mxu2 %v844_v59  ;;  %1188 = vmatpush.msrb.mxu1 %v575_v62  ;;  %v1001_v59 = vld [vmem:[#allocation10 + $0x1148] sm:$0xff]  ;;  %v899_v62 = vld [vmem:[#allocation10 + $0xe18] sm:$0xff] }
  0x8c   :  { %1151 = vmatpush.msra.mxu3 %v940_v60  ;;  %1169 = vmatpush.msrb.mxu0 %v473_v1  ;;  %v689_v60 = vld [vmem:[#allocation10 + $0x788] sm:$0xff]  ;;  %v779_v1 = vld [vmem:[#allocation10 + $0xa58] sm:$0xff] }
  0x8d   :  { %1132 = vmatpush.msra.mxu2 %v838_v63  ;;  %1189 = vmatpush.msrb.mxu1 %v569_v2  ;;  %v995_v63 = vld [vmem:[#allocation10 + $0x1118] sm:$0xff]  ;;  %v893_v2 = vld [vmem:[#allocation10 + $0xde8] sm:$0xff] }
  0x8e   :  { %1152 = vmatpush.msra.mxu3 %v934_v0  ;;  %1170 = vmatpush.msrb.mxu0 %v467_v5  ;;  %v683_v0 = vld [vmem:[#allocation10 + $0x758] sm:$0xff]  ;;  %v773_v5 = vld [vmem:[#allocation10 + $0xa28] sm:$0xff] }
  0x8f   :  { %1133 = vmatpush.msra.mxu2 %v832_v3  ;;  %1190 = vmatpush.msrb.mxu1 %v563_v6  ;;  %v989_v3 = vld [vmem:[#allocation10 + $0x10e8] sm:$0xff]  ;;  %v887_v6 = vld [vmem:[#allocation10 + $0xdb8] sm:$0xff] }
  0x90   :  { %1153 = vmatpush.msra.mxu3 %v928_v4  ;;  %1171 = vmatpush.msrb.mxu0 %v461_v7  ;;  %v677_v4 = vld [vmem:[#allocation10 + $0x728] sm:$0xff]  ;;  %v983_v7 = vld [vmem:[#allocation10 + $0x10b8] sm:$0xff] }
  0x91   :  { %1191 = vmatpush.msrb.mxu1 %v557_v8  ;;  %v671_v8 = vld [vmem:[#allocation10 + $0x6f8] sm:$0xff] }
  0x92   :  { %1172 = vmatpush.msrb.mxu0 %v455_v9  ;;  %v767_v9 = vld [vmem:[#allocation10 + $0x9f8] sm:$0xff] }
  0x93   :  { %1192 = vmatpush.msrb.mxu1 %v551_v10  ;;  %v881_v10 = vld [vmem:[#allocation10 + $0xd88] sm:$0xff] }
  0x94   :  { %1173 = vmatpush.msrb.mxu0 %v449_v11  ;;  %v977_v11 = vld [vmem:[#allocation10 + $0x1088] sm:$0xff] }
  0x95   :  { %1193 = vmatpush.msrb.mxu1 %v545_v12  ;;  %v665_v12 = vld [vmem:[#allocation10 + $0x6c8] sm:$0xff] }
  0xcb   :  { %v339_v16 = vpop.f32.mrf.mxu0 }
  0xcc   :  { %v359_v17 = vpop.f32.mrf.mxu1  ;;  %v340_v18 = vadd.f32 %v339_v16, %v287_v14  ;;  %v875_v14 = vld [vmem:[#allocation10 + $0xd58] sm:$0xff] }
  0xcd   :  { %v360_v19 = vadd.f32 %v359_v17, %v288_v15  ;;  %v971_v15 = vld [vmem:[#allocation10 + $0x1058] sm:$0xff] }
  0xce   :  { %v4564_v20 = vmax.f32 %v340_v18, 0.0  ;;  %v659_v16 = vld [vmem:[#allocation10 + $0x698] sm:$0xff]  ;;  %v869_v18 = vld [vmem:[#allocation10 + $0xd28] sm:$0xff] }
  0xcf   :  { %v4566_v21 = vmax.f32 %v360_v19, 0.0  ;;  %v755_v17 = vld [vmem:[#allocation10 + $0x998] sm:$0xff]  ;;  %v965_v19 = vld [vmem:[#allocation10 + $0x1028] sm:$0xff] }
  0xd0   :  { %1054 = vmatmul.f32.vlgmr.msrb.gmra.mxu2 %v4564_v20 }
  0xd1   :  { %1074 = vmatmul.f32.vlgmr.msrb.gmra.mxu3 %v4566_v21  ;;  %1198 = vmatpush.msrb.mxu2 %v731_v22  ;;  %v653_v22 = vld [vmem:[#allocation10 + $0x668] sm:$0xff] }
  0xd2   :  { %1218 = vmatpush.msrb.mxu3 %v827_v23  ;;  %v379_v30 = vpop.f32.mrf.mxu2  ;;  %v749_v23 = vld [vmem:[#allocation10 + $0x968] sm:$0xff] }
  0xd3   :  { %v399_v31 = vpop.f32.mrf.mxu3  ;;  %v380_v34 = vadd.f32 %v379_v30, %v289_v24  ;;  %1199 = vmatpush.msrb.mxu2 %v725_v26  ;;  %v419_v36 = vpop.f32.mrf.mxu0  ;;  %v863_v24 = vld [vmem:[#allocation10 + $0xcf8] sm:$0xff]  ;;  %v641_v30 = vld [vmem:[#allocation10 + $0x608] sm:$0xff] }
  0xd4   :  { %v400_v35 = vadd.f32 %v399_v31, %v290_v25  ;;  %1219 = vmatpush.msrb.mxu3 %v821_v27  ;;  %v439_v37 = vpop.f32.mrf.mxu1  ;;  %v420_v38 = vadd.f32 %v419_v36, %v291_v28  ;;  %v959_v25 = vld [vmem:[#allocation10 + $0xff8] sm:$0xff]  ;;  %v857_v28 = vld [vmem:[#allocation10 + $0xcc8] sm:$0xff] }
  0xd5   :  { %v440_v39 = vadd.f32 %v439_v37, %v292_v29  ;;  %v4570_v40 = vmax.f32 %v380_v34, 0.0  ;;  %1200 = vmatpush.msrb.mxu2 %v719_v32  ;;  %v647_v26 = vld [vmem:[#allocation10 + $0x638] sm:$0xff]  ;;  %v953_v29 = vld [vmem:[#allocation10 + $0xfc8] sm:$0xff]  ;;  %v540_v34 = vld [vmem:[#allocation10 + $0x2e0] sm:$0xff] }
  0xd6   :  { %v4572_v41 = vmax.f32 %v400_v35, 0.0  ;;  %1220 = vmatpush.msrb.mxu3 %v815_v33  ;;  %v4574_v44 = vmax.f32 %v420_v38, 0.0  ;;  %v743_v27 = vld [vmem:[#allocation10 + $0x938] sm:$0xff]  ;;  %v737_v31 = vld [vmem:[#allocation10 + $0x908] sm:$0xff]  ;;  %v636_v35 = vld [vmem:[#allocation10 + $0x5e0] sm:$0xff] }
  0xd7   :  { %1094 = vmatmul.f32.vlgmr.msra.gmra.mxu0 %v4570_v40  ;;  %v4578_v48 = vmax.f32 %v440_v39, 0.0  ;;  %1201 = vmatpush.msrb.mxu2 %v713_v42  ;;  %v851_v32 = vld [vmem:[#allocation10 + $0xc98] sm:$0xff]  ;;  %v845_v36 = vld [vmem:[#allocation10 + $0xc68] sm:$0xff]  ;;  %v534_v38 = vld [vmem:[#allocation10 + $0x2b0] sm:$0xff] }
  0xd8   :  { %1114 = vmatmul.f32.vlgmr.msra.gmra.mxu1 %v4572_v41  ;;  %1221 = vmatpush.msrb.mxu3 %v809_v43  ;;  %v947_v33 = vld [vmem:[#allocation10 + $0xf98] sm:$0xff]  ;;  %v941_v37 = vld [vmem:[#allocation10 + $0xf68] sm:$0xff]  ;;  %v630_v39 = vld [vmem:[#allocation10 + $0x5b0] sm:$0xff] }
  0xd9   :  { %1238 = vmatpush.msra.mxu0 %v923_v45  ;;  %1258 = vmatpush.msra.mxu1 %v1019_v46  ;;  %v839_v42 = vld [vmem:[#allocation10 + $0xc38] sm:$0xff]  ;;  %v528_v45 = vld [vmem:[#allocation10 + $0x280] sm:$0xff] }
  0xda   :  { %1134 = vmatmul.f32.vlgmr.msra.gmra.mxu2 %v4574_v44  ;;  %1222 = vmatpush.msrb.mxu3 %v803_v47  ;;  %v935_v43 = vld [vmem:[#allocation10 + $0xf38] sm:$0xff]  ;;  %v624_v46 = vld [vmem:[#allocation10 + $0x580] sm:$0xff]  ;;  %v833_v47 = vld [vmem:[#allocation10 + $0xc08] sm:$0xff] }
  0xdb   :  { %1202 = vmatpush.msrb.mxu2 %v707_v49  ;;  %1239 = vmatpush.msra.mxu0 %v917_v50  ;;  %v929_v49 = vld [vmem:[#allocation10 + $0xf08] sm:$0xff]  ;;  %v522_v50 = vld [vmem:[#allocation10 + $0x250] sm:$0xff] }
  0xdc   :  { %1259 = vmatpush.msra.mxu1 %v1013_v51  ;;  %1154 = vmatmul.f32.vlgmr.msra.gmra.mxu3 %v4578_v48  ;;  %v618_v51 = vld [vmem:[#allocation10 + $0x550] sm:$0xff] }
  0xdd   :  { %1203 = vmatpush.msrb.mxu2 %v701_v52  ;;  %1223 = vmatpush.msrb.mxu3 %v797_v53  ;;  %v732_v52 = vld [vmem:[#allocation10 + $0x8e0] sm:$0xff] }
  0xde   :  { %1240 = vmatpush.msra.mxu0 %v911_v54  ;;  %1260 = vmatpush.msra.mxu1 %v1007_v55  ;;  %v828_v53 = vld [vmem:[#allocation10 + $0xbe0] sm:$0xff] }
  0xdf   :  { %1204 = vmatpush.msrb.mxu2 %v695_v56  ;;  %1224 = vmatpush.msrb.mxu3 %v791_v57  ;;  %v516_v54 = vld [vmem:[#allocation10 + $0x220] sm:$0xff]  ;;  %v726_v56 = vld [vmem:[#allocation10 + $0x8b0] sm:$0xff] }
  0xe0   :  { %1241 = vmatpush.msra.mxu0 %v905_v58  ;;  %1261 = vmatpush.msra.mxu1 %v1001_v59  ;;  %v612_v55 = vld [vmem:[#allocation10 + $0x520] sm:$0xff]  ;;  %v822_v57 = vld [vmem:[#allocation10 + $0xbb0] sm:$0xff] }
  0xe1   :  { %1174 = vmatmul.f32.vlgmr.msrb.gmra.mxu0 %v4564_v20  ;;  %1194 = vmatmul.f32.vlgmr.msrb.gmra.mxu1 %v4566_v21  ;;  %v510_v58 = vld [vmem:[#allocation10 + $0x1f0] sm:$0xff] }
  0xe2   :  { %1205 = vmatpush.msrb.mxu2 %v689_v60  ;;  %1225 = vmatpush.msrb.mxu3 %v785_v61  ;;  %v606_v59 = vld [vmem:[#allocation10 + $0x4f0] sm:$0xff]  ;;  %v720_v60 = vld [vmem:[#allocation10 + $0x880] sm:$0xff] }
  0xe3   :  { %1242 = vmatpush.msra.mxu0 %v899_v62  ;;  %1262 = vmatpush.msra.mxu1 %v995_v63  ;;  %v816_v61 = vld [vmem:[#allocation10 + $0xb80] sm:$0xff] }
  0xe4   :  { %1206 = vmatpush.msrb.mxu2 %v683_v0  ;;  %1226 = vmatpush.msrb.mxu3 %v779_v1  ;;  %v504_v62 = vld [vmem:[#allocation10 + $0x1c0] sm:$0xff]  ;;  %v714_v0 = vld [vmem:[#allocation10 + $0x850] sm:$0xff] }
  0xe5   :  { %1243 = vmatpush.msra.mxu0 %v893_v2  ;;  %1263 = vmatpush.msra.mxu1 %v989_v3  ;;  %v600_v63 = vld [vmem:[#allocation10 + $0x4c0] sm:$0xff]  ;;  %v810_v1 = vld [vmem:[#allocation10 + $0xb50] sm:$0xff] }
  0xe6   :  { %1207 = vmatpush.msrb.mxu2 %v677_v4  ;;  %1227 = vmatpush.msrb.mxu3 %v773_v5  ;;  %v498_v2 = vld [vmem:[#allocation10 + $0x190] sm:$0xff]  ;;  %v708_v4 = vld [vmem:[#allocation10 + $0x820] sm:$0xff] }
  0xe7   :  { %1244 = vmatpush.msra.mxu0 %v887_v6  ;;  %1264 = vmatpush.msra.mxu1 %v983_v7  ;;  %v594_v3 = vld [vmem:[#allocation10 + $0x490] sm:$0xff]  ;;  %v804_v5 = vld [vmem:[#allocation10 + $0xb20] sm:$0xff] }
  0xe8   :  { %1208 = vmatpush.msrb.mxu2 %v671_v8  ;;  %1228 = vmatpush.msrb.mxu3 %v767_v9  ;;  %v492_v6 = vld [vmem:[#allocation10 + $0x160] sm:$0xff]  ;;  %v702_v8 = vld [vmem:[#allocation10 + $0x7f0] sm:$0xff] }
  0xe9   :  { %1245 = vmatpush.msra.mxu0 %v881_v10  ;;  %1265 = vmatpush.msra.mxu1 %v977_v11  ;;  %v588_v7 = vld [vmem:[#allocation10 + $0x460] sm:$0xff]  ;;  %v798_v9 = vld [vmem:[#allocation10 + $0xaf0] sm:$0xff] }
  0xea   :  { %1209 = vmatpush.msrb.mxu2 %v665_v12  ;;  %1229 = vmatpush.msrb.mxu3 %v761_v13  ;;  %v486_v10 = vld [vmem:[#allocation10 + $0x130] sm:$0xff]  ;;  %v696_v12 = vld [vmem:[#allocation10 + $0x7c0] sm:$0xff] }
  0xeb   :  { %1246 = vmatpush.msra.mxu0 %v875_v14  ;;  %1266 = vmatpush.msra.mxu1 %v971_v15  ;;  %v582_v11 = vld [vmem:[#allocation10 + $0x430] sm:$0xff]  ;;  %v792_v13 = vld [vmem:[#allocation10 + $0xac0] sm:$0xff] }
  0xec   :  { %1210 = vmatpush.msrb.mxu2 %v659_v16  ;;  %1230 = vmatpush.msrb.mxu3 %v755_v17  ;;  %v480_v14 = vld [vmem:[#allocation10 + $0x100] sm:$0xff]  ;;  %v690_v16 = vld [vmem:[#allocation10 + $0x790] sm:$0xff] }
  0xed   :  { %1247 = vmatpush.msra.mxu0 %v869_v18  ;;  %1267 = vmatpush.msra.mxu1 %v965_v19  ;;  %v576_v15 = vld [vmem:[#allocation10 + $0x400] sm:$0xff]  ;;  %v786_v17 = vld [vmem:[#allocation10 + $0xa90] sm:$0xff] }
  0xee   :  { %1211 = vmatpush.msrb.mxu2 %v653_v22  ;;  %1231 = vmatpush.msrb.mxu3 %v749_v23  ;;  %v474_v18 = vld [vmem:[#allocation10 + $0xd0] sm:$0xff]  ;;  %v684_v22 = vld [vmem:[#allocation10 + $0x760] sm:$0xff] }
  0xef   :  { %1248 = vmatpush.msra.mxu0 %v863_v24  ;;  %1268 = vmatpush.msra.mxu1 %v959_v25  ;;  %v570_v19 = vld [vmem:[#allocation10 + $0x3d0] sm:$0xff]  ;;  %v780_v23 = vld [vmem:[#allocation10 + $0xa60] sm:$0xff] }
  0xf0   :  { %1212 = vmatpush.msrb.mxu2 %v647_v26  ;;  %1232 = vmatpush.msrb.mxu3 %v743_v27  ;;  %v468_v24 = vld [vmem:[#allocation10 + $0xa0] sm:$0xff]  ;;  %v678_v26 = vld [vmem:[#allocation10 + $0x730] sm:$0xff] }
  0xf1   :  { %1249 = vmatpush.msra.mxu0 %v857_v28  ;;  %1269 = vmatpush.msra.mxu1 %v953_v29  ;;  %v564_v25 = vld [vmem:[#allocation10 + $0x3a0] sm:$0xff]  ;;  %v774_v27 = vld [vmem:[#allocation10 + $0xa30] sm:$0xff] }
  0xf2   :  { %1213 = vmatpush.msrb.mxu2 %v641_v30  ;;  %1233 = vmatpush.msrb.mxu3 %v737_v31  ;;  %v462_v28 = vld [vmem:[#allocation10 + $0x70] sm:$0xff]  ;;  %v672_v30 = vld [vmem:[#allocation10 + $0x700] sm:$0xff] }
  0xf3   :  { %1250 = vmatpush.msra.mxu0 %v851_v32  ;;  %1270 = vmatpush.msra.mxu1 %v947_v33  ;;  %v558_v29 = vld [vmem:[#allocation10 + $0x370] sm:$0xff]  ;;  %v768_v31 = vld [vmem:[#allocation10 + $0xa00] sm:$0xff] }
  0xf4   :  { %1214 = vmatmul.f32.vlgmr.msrb.gmra.mxu2 %v4570_v40  ;;  %1234 = vmatmul.f32.vlgmr.msrb.gmra.mxu3 %v4572_v41  ;;  %v456_v32 = vld [vmem:[#allocation10 + $0x40] sm:$0xff] }
  0xf5   :  { %1278 = vmatpush.msra.mxu2 %v540_v34  ;;  %1298 = vmatpush.msra.mxu3 %v636_v35  ;;  %v552_v33 = vld [vmem:[#allocation10 + $0x340] sm:$0xff]  ;;  %v666_v34 = vld [vmem:[#allocation10 + $0x6d0] sm:$0xff] }
  0xf6   :  { %1251 = vmatpush.msra.mxu0 %v845_v36  ;;  %1271 = vmatpush.msra.mxu1 %v941_v37  ;;  %v762_v35 = vld [vmem:[#allocation10 + $0x9d0] sm:$0xff] }
  0xf7   :  { %1279 = vmatpush.msra.mxu2 %v534_v38  ;;  %1299 = vmatpush.msra.mxu3 %v630_v39  ;;  %v450_v36 = vld [vmem:[#allocation10 + $0x10] sm:$0xff]  ;;  %v660_v38 = vld [vmem:[#allocation10 + $0x6a0] sm:$0xff] }
  0xf8   :  { %1252 = vmatpush.msra.mxu0 %v839_v42  ;;  %1272 = vmatpush.msra.mxu1 %v935_v43  ;;  %v546_v37 = vld [vmem:[#allocation10 + $0x310] sm:$0xff]  ;;  %v756_v39 = vld [vmem:[#allocation10 + $0x9a0] sm:$0xff] }
  0xf9   :  { %1280 = vmatpush.msra.mxu2 %v528_v45  ;;  %1300 = vmatpush.msra.mxu3 %v624_v46  ;;  %v924_v42 = vld [vmem:[#allocation10 + $0xee0] sm:$0xff]  ;;  %v654_v45 = vld [vmem:[#allocation10 + $0x670] sm:$0xff] }
  0xfa   :  { %1253 = vmatpush.msra.mxu0 %v833_v47  ;;  %1273 = vmatpush.msra.mxu1 %v929_v49  ;;  %v1020_v43 = vld [vmem:[#allocation10 + $0x11e0] sm:$0xff]  ;;  %v750_v46 = vld [vmem:[#allocation10 + $0x970] sm:$0xff] }
  0xfb   :  { %1254 = vmatmul.f32.vlgmr.msra.gmra.mxu0 %v4574_v44  ;;  %1274 = vmatmul.f32.vlgmr.msra.gmra.mxu1 %v4578_v48  ;;  %v918_v47 = vld [vmem:[#allocation10 + $0xeb0] sm:$0xff] }
  0xfc   :  { %1281 = vmatpush.msra.mxu2 %v522_v50  ;;  %1301 = vmatpush.msra.mxu3 %v618_v51  ;;  %v1014_v49 = vld [vmem:[#allocation10 + $0x11b0] sm:$0xff]  ;;  %v648_v50 = vld [vmem:[#allocation10 + $0x640] sm:$0xff] }
  0xfd   :  { %1318 = vmatpush.msrb.mxu0 %v732_v52  ;;  %1338 = vmatpush.msrb.mxu1 %v828_v53  ;;  %v744_v51 = vld [vmem:[#allocation10 + $0x940] sm:$0xff] }
  0xfe   :  { %1282 = vmatpush.msra.mxu2 %v516_v54  ;;  %1302 = vmatpush.msra.mxu3 %v612_v55  ;;  %v912_v52 = vld [vmem:[#allocation10 + $0xe80] sm:$0xff]  ;;  %v642_v54 = vld [vmem:[#allocation10 + $0x610] sm:$0xff] }
  0xff   :  { %1319 = vmatpush.msrb.mxu0 %v726_v56  ;;  %1339 = vmatpush.msrb.mxu1 %v822_v57  ;;  %v1008_v53 = vld [vmem:[#allocation10 + $0x1180] sm:$0xff]  ;;  %v738_v55 = vld [vmem:[#allocation10 + $0x910] sm:$0xff] }
 0x100   :  { %1283 = vmatpush.msra.mxu2 %v510_v58  ;;  %1303 = vmatpush.msra.mxu3 %v606_v59  ;;  %v906_v56 = vld [vmem:[#allocation10 + $0xe50] sm:$0xff]  ;;  %v541_v58 = vld [vmem:[#allocation10 + $0x2e8] sm:$0xff] }
 0x101   :  { %1320 = vmatpush.msrb.mxu0 %v720_v60  ;;  %1340 = vmatpush.msrb.mxu1 %v816_v61  ;;  %v1002_v57 = vld [vmem:[#allocation10 + $0x1150] sm:$0xff]  ;;  %v637_v59 = vld [vmem:[#allocation10 + $0x5e8] sm:$0xff]  ;;  %v900_v60 = vld [vmem:[#allocation10 + $0xe20] sm:$0xff] }
 0x102   :  { %1284 = vmatpush.msra.mxu2 %v504_v62  ;;  %1304 = vmatpush.msra.mxu3 %v600_v63  ;;  %v996_v61 = vld [vmem:[#allocation10 + $0x1120] sm:$0xff]  ;;  %v535_v62 = vld [vmem:[#allocation10 + $0x2b8] sm:$0xff] }
 0x103   :  { %1321 = vmatpush.msrb.mxu0 %v714_v0  ;;  %1341 = vmatpush.msrb.mxu1 %v810_v1  ;;  %v631_v63 = vld [vmem:[#allocation10 + $0x5b8] sm:$0xff]  ;;  %v894_v0 = vld [vmem:[#allocation10 + $0xdf0] sm:$0xff] }
 0x104   :  { %1285 = vmatpush.msra.mxu2 %v498_v2  ;;  %1305 = vmatpush.msra.mxu3 %v594_v3  ;;  %v990_v1 = vld [vmem:[#allocation10 + $0x10f0] sm:$0xff]  ;;  %v529_v2 = vld [vmem:[#allocation10 + $0x288] sm:$0xff] }
 0x105   :  { %1322 = vmatpush.msrb.mxu0 %v708_v4  ;;  %1342 = vmatpush.msrb.mxu1 %v804_v5  ;;  %v625_v3 = vld [vmem:[#allocation10 + $0x588] sm:$0xff]  ;;  %v888_v4 = vld [vmem:[#allocation10 + $0xdc0] sm:$0xff] }
 0x106   :  { %1286 = vmatpush.msra.mxu2 %v492_v6  ;;  %1306 = vmatpush.msra.mxu3 %v588_v7  ;;  %v984_v5 = vld [vmem:[#allocation10 + $0x10c0] sm:$0xff]  ;;  %v523_v6 = vld [vmem:[#allocation10 + $0x258] sm:$0xff] }
 0x107   :  { %1323 = vmatpush.msrb.mxu0 %v702_v8  ;;  %1343 = vmatpush.msrb.mxu1 %v798_v9  ;;  %v619_v7 = vld [vmem:[#allocation10 + $0x558] sm:$0xff]  ;;  %v882_v8 = vld [vmem:[#allocation10 + $0xd90] sm:$0xff] }
 0x108   :  { %1287 = vmatpush.msra.mxu2 %v486_v10  ;;  %1307 = vmatpush.msra.mxu3 %v582_v11  ;;  %v978_v9 = vld [vmem:[#allocation10 + $0x1090] sm:$0xff]  ;;  %v517_v10 = vld [vmem:[#allocation10 + $0x228] sm:$0xff] }
 0x109   :  { %1324 = vmatpush.msrb.mxu0 %v696_v12  ;;  %1344 = vmatpush.msrb.mxu1 %v792_v13  ;;  %v613_v11 = vld [vmem:[#allocation10 + $0x528] sm:$0xff]  ;;  %v876_v12 = vld [vmem:[#allocation10 + $0xd60] sm:$0xff] }
 0x10a   :  { %1288 = vmatpush.msra.mxu2 %v480_v14  ;;  %1308 = vmatpush.msra.mxu3 %v576_v15  ;;  %v972_v13 = vld [vmem:[#allocation10 + $0x1060] sm:$0xff]  ;;  %v511_v14 = vld [vmem:[#allocation10 + $0x1f8] sm:$0xff] }
 0x10b   :  { %1325 = vmatpush.msrb.mxu0 %v690_v16  ;;  %1345 = vmatpush.msrb.mxu1 %v786_v17  ;;  %v607_v15 = vld [vmem:[#allocation10 + $0x4f8] sm:$0xff]  ;;  %v870_v16 = vld [vmem:[#allocation10 + $0xd30] sm:$0xff] }
 0x10c   :  { %1289 = vmatpush.msra.mxu2 %v474_v18  ;;  %1309 = vmatpush.msra.mxu3 %v570_v19  ;;  %v966_v17 = vld [vmem:[#allocation10 + $0x1030] sm:$0xff]  ;;  %v505_v18 = vld [vmem:[#allocation10 + $0x1c8] sm:$0xff] }
 0x10d   :  { %1326 = vmatpush.msrb.mxu0 %v684_v22  ;;  %1346 = vmatpush.msrb.mxu1 %v780_v23  ;;  %v601_v19 = vld [vmem:[#allocation10 + $0x4c8] sm:$0xff]  ;;  %v864_v22 = vld [vmem:[#allocation10 + $0xd00] sm:$0xff] }
 0x10e   :  { %1290 = vmatpush.msra.mxu2 %v468_v24  ;;  %1310 = vmatpush.msra.mxu3 %v564_v25  ;;  %v960_v23 = vld [vmem:[#allocation10 + $0x1000] sm:$0xff]  ;;  %v499_v24 = vld [vmem:[#allocation10 + $0x198] sm:$0xff] }
 0x10f   :  { %1327 = vmatpush.msrb.mxu0 %v678_v26  ;;  %1347 = vmatpush.msrb.mxu1 %v774_v27  ;;  %v595_v25 = vld [vmem:[#allocation10 + $0x498] sm:$0xff]  ;;  %v858_v26 = vld [vmem:[#allocation10 + $0xcd0] sm:$0xff] }
 0x110   :  { %1291 = vmatpush.msra.mxu2 %v462_v28  ;;  %1311 = vmatpush.msra.mxu3 %v558_v29  ;;  %v954_v27 = vld [vmem:[#allocation10 + $0xfd0] sm:$0xff]  ;;  %v493_v28 = vld [vmem:[#allocation10 + $0x168] sm:$0xff] }
 0x111   :  { %1328 = vmatpush.msrb.mxu0 %v672_v30  ;;  %1348 = vmatpush.msrb.mxu1 %v768_v31  ;;  %v589_v29 = vld [vmem:[#allocation10 + $0x468] sm:$0xff]  ;;  %v852_v30 = vld [vmem:[#allocation10 + $0xca0] sm:$0xff] }
 0x112   :  { %1292 = vmatpush.msra.mxu2 %v456_v32  ;;  %1312 = vmatpush.msra.mxu3 %v552_v33  ;;  %v948_v31 = vld [vmem:[#allocation10 + $0xfa0] sm:$0xff]  ;;  %v487_v32 = vld [vmem:[#allocation10 + $0x138] sm:$0xff] }
 0x113   :  { %1329 = vmatpush.msrb.mxu0 %v666_v34  ;;  %1349 = vmatpush.msrb.mxu1 %v762_v35  ;;  %v583_v33 = vld [vmem:[#allocation10 + $0x438] sm:$0xff]  ;;  %v846_v34 = vld [vmem:[#allocation10 + $0xc70] sm:$0xff] }
 0x114   :  { %1293 = vmatpush.msra.mxu2 %v450_v36  ;;  %1313 = vmatpush.msra.mxu3 %v546_v37  ;;  %v942_v35 = vld [vmem:[#allocation10 + $0xf70] sm:$0xff]  ;;  %v481_v36 = vld [vmem:[#allocation10 + $0x108] sm:$0xff] }
 0x115   :  { %1330 = vmatpush.msrb.mxu0 %v660_v38  ;;  %1350 = vmatpush.msrb.mxu1 %v756_v39  ;;  %v577_v37 = vld [vmem:[#allocation10 + $0x408] sm:$0xff]  ;;  %v840_v38 = vld [vmem:[#allocation10 + $0xc40] sm:$0xff] }
 0x116   :  { %1294 = vmatmul.f32.vlgmr.msra.gmra.mxu2 %v4564_v20  ;;  %1314 = vmatmul.f32.vlgmr.msra.gmra.mxu3 %v4566_v21  ;;  %v936_v39 = vld [vmem:[#allocation10 + $0xf40] sm:$0xff] }
 0x117   :  { %1358 = vmatpush.msrb.mxu2 %v924_v42  ;;  %1378 = vmatpush.msrb.mxu3 %v1020_v43  ;;  %v475_v42 = vld [vmem:[#allocation10 + $0xd8] sm:$0xff] }
 0x118   :  { %1331 = vmatpush.msrb.mxu0 %v654_v45  ;;  %1351 = vmatpush.msrb.mxu1 %v750_v46  ;;  %v571_v43 = vld [vmem:[#allocation10 + $0x3d8] sm:$0xff]  ;;  %v834_v45 = vld [vmem:[#allocation10 + $0xc10] sm:$0xff] }
 0x119   :  { %1359 = vmatpush.msrb.mxu2 %v918_v47  ;;  %1379 = vmatpush.msrb.mxu3 %v1014_v49  ;;  %v930_v46 = vld [vmem:[#allocation10 + $0xf10] sm:$0xff]  ;;  %v469_v47 = vld [vmem:[#allocation10 + $0xa8] sm:$0xff] }
 0x11a   :  { %1332 = vmatpush.msrb.mxu0 %v648_v50  ;;  %1352 = vmatpush.msrb.mxu1 %v744_v51  ;;  %v565_v49 = vld [vmem:[#allocation10 + $0x3a8] sm:$0xff] }
 0x11b   :  { %1360 = vmatpush.msrb.mxu2 %v912_v52  ;;  %1380 = vmatpush.msrb.mxu3 %v1008_v53  ;;  %v733_v50 = vld [vmem:[#allocation10 + $0x8e8] sm:$0xff]  ;;  %v463_v52 = vld [vmem:[#allocation10 + $0x78] sm:$0xff] }
 0x11c   :  { %1333 = vmatpush.msrb.mxu0 %v642_v54  ;;  %1353 = vmatpush.msrb.mxu1 %v738_v55  ;;  %v829_v51 = vld [vmem:[#allocation10 + $0xbe8] sm:$0xff]  ;;  %v559_v53 = vld [vmem:[#allocation10 + $0x378] sm:$0xff] }
 0x11d   :  { %1334 = vmatmul.f32.vlgmr.msrb.gmra.mxu0 %v4570_v40  ;;  %1354 = vmatmul.f32.vlgmr.msrb.gmra.mxu1 %v4572_v41  ;;  %v727_v54 = vld [vmem:[#allocation10 + $0x8b8] sm:$0xff] }
 0x11e   :  { %1361 = vmatpush.msrb.mxu2 %v906_v56  ;;  %1381 = vmatpush.msrb.mxu3 %v1002_v57  ;;  %v823_v55 = vld [vmem:[#allocation10 + $0xbb8] sm:$0xff]  ;;  %v457_v56 = vld [vmem:[#allocation10 + $0x48] sm:$0xff] }
 0x11f   :  { %1398 = vmatpush.msra.mxu0 %v541_v58  ;;  %1418 = vmatpush.msra.mxu1 %v637_v59  ;;  %v553_v57 = vld [vmem:[#allocation10 + $0x348] sm:$0xff] }
 0x120   :  { %1362 = vmatpush.msrb.mxu2 %v900_v60  ;;  %1382 = vmatpush.msrb.mxu3 %v996_v61  ;;  %v721_v58 = vld [vmem:[#allocation10 + $0x888] sm:$0xff]  ;;  %v451_v60 = vld [vmem:[#allocation10 + $0x18] sm:$0xff] }
 0x121   :  { %1399 = vmatpush.msra.mxu0 %v535_v62  ;;  %1419 = vmatpush.msra.mxu1 %v631_v63  ;;  %v817_v59 = vld [vmem:[#allocation10 + $0xb88] sm:$0xff]  ;;  %v547_v61 = vld [vmem:[#allocation10 + $0x318] sm:$0xff] }
 0x122   :  { %1363 = vmatpush.msrb.mxu2 %v894_v0  ;;  %1383 = vmatpush.msrb.mxu3 %v990_v1  ;;  %v715_v62 = vld [vmem:[#allocation10 + $0x858] sm:$0xff]  ;;  %v925_v0 = vld [vmem:[#allocation10 + $0xee8] sm:$0xff] }
 0x123   :  { %1400 = vmatpush.msra.mxu0 %v529_v2  ;;  %1420 = vmatpush.msra.mxu1 %v625_v3  ;;  %v811_v63 = vld [vmem:[#allocation10 + $0xb58] sm:$0xff]  ;;  %v1021_v1 = vld [vmem:[#allocation10 + $0x11e8] sm:$0xff] }
 0x124   :  { %1364 = vmatpush.msrb.mxu2 %v888_v4  ;;  %1384 = vmatpush.msrb.mxu3 %v984_v5  ;;  %v709_v2 = vld [vmem:[#allocation10 + $0x828] sm:$0xff]  ;;  %v919_v4 = vld [vmem:[#allocation10 + $0xeb8] sm:$0xff] }
 0x125   :  { %1401 = vmatpush.msra.mxu0 %v523_v6  ;;  %1421 = vmatpush.msra.mxu1 %v619_v7  ;;  %v805_v3 = vld [vmem:[#allocation10 + $0xb28] sm:$0xff]  ;;  %v1015_v5 = vld [vmem:[#allocation10 + $0x11b8] sm:$0xff] }
 0x126   :  { %1365 = vmatpush.msrb.mxu2 %v882_v8  ;;  %1385 = vmatpush.msrb.mxu3 %v978_v9  ;;  %v703_v6 = vld [vmem:[#allocation10 + $0x7f8] sm:$0xff]  ;;  %v913_v8 = vld [vmem:[#allocation10 + $0xe88] sm:$0xff] }
 0x127   :  { %1402 = vmatpush.msra.mxu0 %v517_v10  ;;  %1422 = vmatpush.msra.mxu1 %v613_v11  ;;  %v799_v7 = vld [vmem:[#allocation10 + $0xaf8] sm:$0xff]  ;;  %v1009_v9 = vld [vmem:[#allocation10 + $0x1188] sm:$0xff] }
 0x128   :  { %1366 = vmatpush.msrb.mxu2 %v876_v12  ;;  %1386 = vmatpush.msrb.mxu3 %v972_v13  ;;  %v697_v10 = vld [vmem:[#allocation10 + $0x7c8] sm:$0xff]  ;;  %v907_v12 = vld [vmem:[#allocation10 + $0xe58] sm:$0xff] }
 0x129   :  { %1403 = vmatpush.msra.mxu0 %v511_v14  ;;  %1423 = vmatpush.msra.mxu1 %v607_v15  ;;  %v793_v11 = vld [vmem:[#allocation10 + $0xac8] sm:$0xff]  ;;  %v1003_v13 = vld [vmem:[#allocation10 + $0x1158] sm:$0xff] }
 0x12a   :  { %1367 = vmatpush.msrb.mxu2 %v870_v16  ;;  %1387 = vmatpush.msrb.mxu3 %v966_v17  ;;  %v691_v14 = vld [vmem:[#allocation10 + $0x798] sm:$0xff]  ;;  %v901_v16 = vld [vmem:[#allocation10 + $0xe28] sm:$0xff] }
 0x12b   :  { %1404 = vmatpush.msra.mxu0 %v505_v18  ;;  %1424 = vmatpush.msra.mxu1 %v601_v19  ;;  %v787_v15 = vld [vmem:[#allocation10 + $0xa98] sm:$0xff]  ;;  %v997_v17 = vld [vmem:[#allocation10 + $0x1128] sm:$0xff] }
 0x12c   :  { %1368 = vmatpush.msrb.mxu2 %v864_v22  ;;  %1388 = vmatpush.msrb.mxu3 %v960_v23  ;;  %v685_v18 = vld [vmem:[#allocation10 + $0x768] sm:$0xff]  ;;  %v895_v22 = vld [vmem:[#allocation10 + $0xdf8] sm:$0xff] }
 0x12d   :  { %1405 = vmatpush.msra.mxu0 %v499_v24  ;;  %1425 = vmatpush.msra.mxu1 %v595_v25  ;;  %v781_v19 = vld [vmem:[#allocation10 + $0xa68] sm:$0xff]  ;;  %v991_v23 = vld [vmem:[#allocation10 + $0x10f8] sm:$0xff] }
 0x12e   :  { %1369 = vmatpush.msrb.mxu2 %v858_v26  ;;  %1389 = vmatpush.msrb.mxu3 %v954_v27  ;;  %v679_v24 = vld [vmem:[#allocation10 + $0x738] sm:$0xff]  ;;  %v889_v26 = vld [vmem:[#allocation10 + $0xdc8] sm:$0xff] }
 0x12f   :  { %1406 = vmatpush.msra.mxu0 %v493_v28  ;;  %1426 = vmatpush.msra.mxu1 %v589_v29  ;;  %v775_v25 = vld [vmem:[#allocation10 + $0xa38] sm:$0xff]  ;;  %v985_v27 = vld [vmem:[#allocation10 + $0x10c8] sm:$0xff] }
 0x130   :  { %1370 = vmatpush.msrb.mxu2 %v852_v30  ;;  %1390 = vmatpush.msrb.mxu3 %v948_v31  ;;  %v673_v28 = vld [vmem:[#allocation10 + $0x708] sm:$0xff]  ;;  %v883_v30 = vld [vmem:[#allocation10 + $0xd98] sm:$0xff] }
 0x131   :  { %1407 = vmatpush.msra.mxu0 %v487_v32  ;;  %1427 = vmatpush.msra.mxu1 %v583_v33  ;;  %v769_v29 = vld [vmem:[#allocation10 + $0xa08] sm:$0xff]  ;;  %v979_v31 = vld [vmem:[#allocation10 + $0x1098] sm:$0xff] }
 0x132   :  { %1371 = vmatpush.msrb.mxu2 %v846_v34  ;;  %1391 = vmatpush.msrb.mxu3 %v942_v35  ;;  %v667_v32 = vld [vmem:[#allocation10 + $0x6d8] sm:$0xff]  ;;  %v877_v34 = vld [vmem:[#allocation10 + $0xd68] sm:$0xff] }
 0x133   :  { %1408 = vmatpush.msra.mxu0 %v481_v36  ;;  %1428 = vmatpush.msra.mxu1 %v577_v37  ;;  %v763_v33 = vld [vmem:[#allocation10 + $0x9d8] sm:$0xff]  ;;  %v973_v35 = vld [vmem:[#allocation10 + $0x1068] sm:$0xff] }
 0x134   :  { %1372 = vmatpush.msrb.mxu2 %v840_v38  ;;  %1392 = vmatpush.msrb.mxu3 %v936_v39  ;;  %v661_v36 = vld [vmem:[#allocation10 + $0x6a8] sm:$0xff]  ;;  %v871_v38 = vld [vmem:[#allocation10 + $0xd38] sm:$0xff] }
 0x135   :  { %1409 = vmatpush.msra.mxu0 %v475_v42  ;;  %1429 = vmatpush.msra.mxu1 %v571_v43  ;;  %v757_v37 = vld [vmem:[#allocation10 + $0x9a8] sm:$0xff]  ;;  %v967_v39 = vld [vmem:[#allocation10 + $0x1038] sm:$0xff] }
 0x136   :  { %1373 = vmatpush.msrb.mxu2 %v834_v45  ;;  %1393 = vmatpush.msrb.mxu3 %v930_v46  ;;  %v655_v42 = vld [vmem:[#allocation10 + $0x678] sm:$0xff]  ;;  %v865_v45 = vld [vmem:[#allocation10 + $0xd08] sm:$0xff] }
 0x137   :  { %1410 = vmatpush.msra.mxu0 %v469_v47  ;;  %1430 = vmatpush.msra.mxu1 %v565_v49  ;;  %v751_v43 = vld [vmem:[#allocation10 + $0x978] sm:$0xff]  ;;  %v961_v46 = vld [vmem:[#allocation10 + $0x1008] sm:$0xff] }
 0x138   :  { %1374 = vmatmul.f32.vlgmr.msrb.gmra.mxu2 %v4574_v44  ;;  %1394 = vmatmul.f32.vlgmr.msrb.gmra.mxu3 %v4578_v48  ;;  %v649_v47 = vld [vmem:[#allocation10 + $0x648] sm:$0xff] }
 0x139   :  { %1438 = vmatpush.msra.mxu2 %v733_v50  ;;  %1458 = vmatpush.msra.mxu3 %v829_v51  ;;  %v745_v49 = vld [vmem:[#allocation10 + $0x948] sm:$0xff]  ;;  %v859_v50 = vld [vmem:[#allocation10 + $0xcd8] sm:$0xff] }
 0x13a   :  { %1411 = vmatpush.msra.mxu0 %v463_v52  ;;  %1431 = vmatpush.msra.mxu1 %v559_v53  ;;  %v955_v51 = vld [vmem:[#allocation10 + $0xfd8] sm:$0xff] }
 0x13b   :  { %1439 = vmatpush.msra.mxu2 %v727_v54  ;;  %1459 = vmatpush.msra.mxu3 %v823_v55  ;;  %v643_v52 = vld [vmem:[#allocation10 + $0x618] sm:$0xff]  ;;  %v853_v54 = vld [vmem:[#allocation10 + $0xca8] sm:$0xff] }
 0x13c   :  { %1412 = vmatpush.msra.mxu0 %v457_v56  ;;  %1432 = vmatpush.msra.mxu1 %v553_v57  ;;  %v739_v53 = vld [vmem:[#allocation10 + $0x918] sm:$0xff]  ;;  %v949_v55 = vld [vmem:[#allocation10 + $0xfa8] sm:$0xff]  ;;  %v542_v56 = vld [vmem:[#allocation10 + $0x2f0] sm:$0xff] }
 0x13d   :  { %1440 = vmatpush.msra.mxu2 %v721_v58  ;;  %1460 = vmatpush.msra.mxu3 %v817_v59  ;;  %v638_v57 = vld [vmem:[#allocation10 + $0x5f0] sm:$0xff]  ;;  %v847_v58 = vld [vmem:[#allocation10 + $0xc78] sm:$0xff] }
 0x13e   :  { %1413 = vmatpush.msra.mxu0 %v451_v60  ;;  %1433 = vmatpush.msra.mxu1 %v547_v61  ;;  %v943_v59 = vld [vmem:[#allocation10 + $0xf78] sm:$0xff]  ;;  %v536_v60 = vld [vmem:[#allocation10 + $0x2c0] sm:$0xff] }
 0x13f   :  { %1414 = vmatmul.f32.vlgmr.msra.gmra.mxu0 %v4564_v20  ;;  %1434 = vmatmul.f32.vlgmr.msra.gmra.mxu1 %v4566_v21  ;;  %v632_v61 = vld [vmem:[#allocation10 + $0x5c0] sm:$0xff] }
 0x140   :  { %1441 = vmatpush.msra.mxu2 %v715_v62  ;;  %1461 = vmatpush.msra.mxu3 %v811_v63  ;;  %v841_v62 = vld [vmem:[#allocation10 + $0xc48] sm:$0xff] }
 0x141   :  { %1478 = vmatpush.msrb.mxu0 %v925_v0  ;;  %1498 = vmatpush.msrb.mxu1 %v1021_v1  ;;  %v937_v63 = vld [vmem:[#allocation10 + $0xf48] sm:$0xff]  ;;  %v530_v0 = vld [vmem:[#allocation10 + $0x290] sm:$0xff] }
 0x142   :  { %1442 = vmatpush.msra.mxu2 %v709_v2  ;;  %1462 = vmatpush.msra.mxu3 %v805_v3  ;;  %v626_v1 = vld [vmem:[#allocation10 + $0x590] sm:$0xff]  ;;  %v835_v2 = vld [vmem:[#allocation10 + $0xc18] sm:$0xff] }
 0x143   :  { %1479 = vmatpush.msrb.mxu0 %v919_v4  ;;  %1499 = vmatpush.msrb.mxu1 %v1015_v5  ;;  %v931_v3 = vld [vmem:[#allocation10 + $0xf18] sm:$0xff]  ;;  %v524_v4 = vld [vmem:[#allocation10 + $0x260] sm:$0xff] }
 0x144   :  { %1443 = vmatpush.msra.mxu2 %v703_v6  ;;  %1463 = vmatpush.msra.mxu3 %v799_v7  ;;  %v620_v5 = vld [vmem:[#allocation10 + $0x560] sm:$0xff]  ;;  %v734_v6 = vld [vmem:[#allocation10 + $0x8f0] sm:$0xff] }
 0x145   :  { %1480 = vmatpush.msrb.mxu0 %v913_v8  ;;  %1500 = vmatpush.msrb.mxu1 %v1009_v9  ;;  %v830_v7 = vld [vmem:[#allocation10 + $0xbf0] sm:$0xff] }
 0x146   :  { %1444 = vmatpush.msra.mxu2 %v697_v10  ;;  %1464 = vmatpush.msra.mxu3 %v793_v11  ;;  %v518_v8 = vld [vmem:[#allocation10 + $0x230] sm:$0xff]  ;;  %v728_v10 = vld [vmem:[#allocation10 + $0x8c0] sm:$0xff] }
 0x147   :  { %1481 = vmatpush.msrb.mxu0 %v907_v12  ;;  %1501 = vmatpush.msrb.mxu1 %v1003_v13  ;;  %v614_v9 = vld [vmem:[#allocation10 + $0x530] sm:$0xff]  ;;  %v824_v11 = vld [vmem:[#allocation10 + $0xbc0] sm:$0xff] }
 0x148   :  { %1445 = vmatpush.msra.mxu2 %v691_v14  ;;  %1465 = vmatpush.msra.mxu3 %v787_v15  ;;  %v512_v12 = vld [vmem:[#allocation10 + $0x200] sm:$0xff]  ;;  %v722_v14 = vld [vmem:[#allocation10 + $0x890] sm:$0xff] }
 0x149   :  { %1482 = vmatpush.msrb.mxu0 %v901_v16  ;;  %1502 = vmatpush.msrb.mxu1 %v997_v17  ;;  %v608_v13 = vld [vmem:[#allocation10 + $0x500] sm:$0xff]  ;;  %v818_v15 = vld [vmem:[#allocation10 + $0xb90] sm:$0xff] }
 0x14a   :  { %1446 = vmatpush.msra.mxu2 %v685_v18  ;;  %1466 = vmatpush.msra.mxu3 %v781_v19  ;;  %v506_v16 = vld [vmem:[#allocation10 + $0x1d0] sm:$0xff]  ;;  %v716_v18 = vld [vmem:[#allocation10 + $0x860] sm:$0xff] }
 0x14b   :  { %1483 = vmatpush.msrb.mxu0 %v895_v22  ;;  %1503 = vmatpush.msrb.mxu1 %v991_v23  ;;  %v602_v17 = vld [vmem:[#allocation10 + $0x4d0] sm:$0xff]  ;;  %v812_v19 = vld [vmem:[#allocation10 + $0xb60] sm:$0xff] }
 0x14c   :  { %1447 = vmatpush.msra.mxu2 %v679_v24  ;;  %1467 = vmatpush.msra.mxu3 %v775_v25  ;;  %v500_v22 = vld [vmem:[#allocation10 + $0x1a0] sm:$0xff]  ;;  %v710_v24 = vld [vmem:[#allocation10 + $0x830] sm:$0xff] }
 0x14d   :  { %1484 = vmatpush.msrb.mxu0 %v889_v26  ;;  %1504 = vmatpush.msrb.mxu1 %v985_v27  ;;  %v596_v23 = vld [vmem:[#allocation10 + $0x4a0] sm:$0xff]  ;;  %v806_v25 = vld [vmem:[#allocation10 + $0xb30] sm:$0xff] }
 0x14e   :  { %1448 = vmatpush.msra.mxu2 %v673_v28  ;;  %1468 = vmatpush.msra.mxu3 %v769_v29  ;;  %v494_v26 = vld [vmem:[#allocation10 + $0x170] sm:$0xff]  ;;  %v704_v28 = vld [vmem:[#allocation10 + $0x800] sm:$0xff] }
 0x14f   :  { %1485 = vmatpush.msrb.mxu0 %v883_v30  ;;  %1505 = vmatpush.msrb.mxu1 %v979_v31  ;;  %v590_v27 = vld [vmem:[#allocation10 + $0x470] sm:$0xff]  ;;  %v800_v29 = vld [vmem:[#allocation10 + $0xb00] sm:$0xff] }
 0x150   :  { %1449 = vmatpush.msra.mxu2 %v667_v32  ;;  %1469 = vmatpush.msra.mxu3 %v763_v33  ;;  %v488_v30 = vld [vmem:[#allocation10 + $0x140] sm:$0xff]  ;;  %v698_v32 = vld [vmem:[#allocation10 + $0x7d0] sm:$0xff] }
 0x151   :  { %1486 = vmatpush.msrb.mxu0 %v877_v34  ;;  %1506 = vmatpush.msrb.mxu1 %v973_v35  ;;  %v584_v31 = vld [vmem:[#allocation10 + $0x440] sm:$0xff]  ;;  %v794_v33 = vld [vmem:[#allocation10 + $0xad0] sm:$0xff] }
 0x152   :  { %1450 = vmatpush.msra.mxu2 %v661_v36  ;;  %1470 = vmatpush.msra.mxu3 %v757_v37  ;;  %v482_v34 = vld [vmem:[#allocation10 + $0x110] sm:$0xff]  ;;  %v692_v36 = vld [vmem:[#allocation10 + $0x7a0] sm:$0xff] }
 0x153   :  { %1487 = vmatpush.msrb.mxu0 %v871_v38  ;;  %1507 = vmatpush.msrb.mxu1 %v967_v39  ;;  %v578_v35 = vld [vmem:[#allocation10 + $0x410] sm:$0xff]  ;;  %v788_v37 = vld [vmem:[#allocation10 + $0xaa0] sm:$0xff] }
 0x154   :  { %1451 = vmatpush.msra.mxu2 %v655_v42  ;;  %1471 = vmatpush.msra.mxu3 %v751_v43  ;;  %v476_v38 = vld [vmem:[#allocation10 + $0xe0] sm:$0xff]  ;;  %v686_v42 = vld [vmem:[#allocation10 + $0x770] sm:$0xff] }
 0x155   :  { %1488 = vmatpush.msrb.mxu0 %v865_v45  ;;  %1508 = vmatpush.msrb.mxu1 %v961_v46  ;;  %v572_v39 = vld [vmem:[#allocation10 + $0x3e0] sm:$0xff]  ;;  %v782_v43 = vld [vmem:[#allocation10 + $0xa70] sm:$0xff] }
 0x156   :  { %1452 = vmatpush.msra.mxu2 %v649_v47  ;;  %1472 = vmatpush.msra.mxu3 %v745_v49  ;;  %v470_v45 = vld [vmem:[#allocation10 + $0xb0] sm:$0xff]  ;;  %v680_v47 = vld [vmem:[#allocation10 + $0x740] sm:$0xff] }
 0x157   :  { %1489 = vmatpush.msrb.mxu0 %v859_v50  ;;  %1509 = vmatpush.msrb.mxu1 %v955_v51  ;;  %v566_v46 = vld [vmem:[#allocation10 + $0x3b0] sm:$0xff]  ;;  %v776_v49 = vld [vmem:[#allocation10 + $0xa40] sm:$0xff] }
 0x158   :  { %1453 = vmatpush.msra.mxu2 %v643_v52  ;;  %1473 = vmatpush.msra.mxu3 %v739_v53  ;;  %v464_v50 = vld [vmem:[#allocation10 + $0x80] sm:$0xff]  ;;  %v674_v52 = vld [vmem:[#allocation10 + $0x710] sm:$0xff] }
 0x159   :  { %1490 = vmatpush.msrb.mxu0 %v853_v54  ;;  %1510 = vmatpush.msrb.mxu1 %v949_v55  ;;  %v560_v51 = vld [vmem:[#allocation10 + $0x380] sm:$0xff]  ;;  %v770_v53 = vld [vmem:[#allocation10 + $0xa10] sm:$0xff] }
 0x15a   :  { %1454 = vmatmul.f32.vlgmr.msra.gmra.mxu2 %v4570_v40  ;;  %1474 = vmatmul.f32.vlgmr.msra.gmra.mxu3 %v4572_v41  ;;  %v458_v54 = vld [vmem:[#allocation10 + $0x50] sm:$0xff] }
 0x15b   :  { %1518 = vmatpush.msrb.mxu2 %v542_v56  ;;  %1538 = vmatpush.msrb.mxu3 %v638_v57  ;;  %v554_v55 = vld [vmem:[#allocation10 + $0x350] sm:$0xff]  ;;  %v668_v56 = vld [vmem:[#allocation10 + $0x6e0] sm:$0xff] }
 0x15c   :  { %1491 = vmatpush.msrb.mxu0 %v847_v58  ;;  %1511 = vmatpush.msrb.mxu1 %v943_v59  ;;  %v764_v57 = vld [vmem:[#allocation10 + $0x9e0] sm:$0xff] }
 0x15d   :  { %1519 = vmatpush.msrb.mxu2 %v536_v60  ;;  %1539 = vmatpush.msrb.mxu3 %v632_v61  ;;  %v452_v58 = vld [vmem:[#allocation10 + $0x20] sm:$0xff]  ;;  %v662_v60 = vld [vmem:[#allocation10 + $0x6b0] sm:$0xff] }
 0x15e   :  { %1492 = vmatpush.msrb.mxu0 %v841_v62  ;;  %1512 = vmatpush.msrb.mxu1 %v937_v63  ;;  %v548_v59 = vld [vmem:[#allocation10 + $0x320] sm:$0xff]  ;;  %v758_v61 = vld [vmem:[#allocation10 + $0x9b0] sm:$0xff] }
 0x15f   :  { %1520 = vmatpush.msrb.mxu2 %v530_v0  ;;  %1540 = vmatpush.msrb.mxu3 %v626_v1  ;;  %v926_v62 = vld [vmem:[#allocation10 + $0xef0] sm:$0xff]  ;;  %v656_v0 = vld [vmem:[#allocation10 + $0x680] sm:$0xff] }
 0x160   :  { %1493 = vmatpush.msrb.mxu0 %v835_v2  ;;  %1513 = vmatpush.msrb.mxu1 %v931_v3  ;;  %v1022_v63 = vld [vmem:[#allocation10 + $0x11f0] sm:$0xff]  ;;  %v752_v1 = vld [vmem:[#allocation10 + $0x980] sm:$0xff] }
 0x161   :  { %1494 = vmatmul.f32.vlgmr.msrb.gmra.mxu0 %v4574_v44  ;;  %1514 = vmatmul.f32.vlgmr.msrb.gmra.mxu1 %v4578_v48  ;;  %v920_v2 = vld [vmem:[#allocation10 + $0xec0] sm:$0xff] }
 0x162   :  { %1521 = vmatpush.msrb.mxu2 %v524_v4  ;;  %1541 = vmatpush.msrb.mxu3 %v620_v5  ;;  %v1016_v3 = vld [vmem:[#allocation10 + $0x11c0] sm:$0xff]  ;;  %v650_v4 = vld [vmem:[#allocation10 + $0x650] sm:$0xff] }
 0x163   :  { %1558 = vmatpush.msra.mxu0 %v734_v6  ;;  %1578 = vmatpush.msra.mxu1 %v830_v7  ;;  %v746_v5 = vld [vmem:[#allocation10 + $0x950] sm:$0xff] }
 0x164   :  { %1522 = vmatpush.msrb.mxu2 %v518_v8  ;;  %1542 = vmatpush.msrb.mxu3 %v614_v9  ;;  %v914_v6 = vld [vmem:[#allocation10 + $0xe90] sm:$0xff]  ;;  %v644_v8 = vld [vmem:[#allocation10 + $0x620] sm:$0xff] }
 0x165   :  { %1559 = vmatpush.msra.mxu0 %v728_v10  ;;  %1579 = vmatpush.msra.mxu1 %v824_v11  ;;  %v1010_v7 = vld [vmem:[#allocation10 + $0x1190] sm:$0xff]  ;;  %v740_v9 = vld [vmem:[#allocation10 + $0x920] sm:$0xff] }
 0x166   :  { %1523 = vmatpush.msrb.mxu2 %v512_v12  ;;  %1543 = vmatpush.msrb.mxu3 %v608_v13  ;;  %v908_v10 = vld [vmem:[#allocation10 + $0xe60] sm:$0xff]  ;;  %v543_v12 = vld [vmem:[#allocation10 + $0x2f8] sm:$0xff] }
 0x167   :  { %1560 = vmatpush.msra.mxu0 %v722_v14  ;;  %1580 = vmatpush.msra.mxu1 %v818_v15  ;;  %v1004_v11 = vld [vmem:[#allocation10 + $0x1160] sm:$0xff]  ;;  %v639_v13 = vld [vmem:[#allocation10 + $0x5f8] sm:$0xff]  ;;  %v902_v14 = vld [vmem:[#allocation10 + $0xe30] sm:$0xff] }
 0x168   :  { %1524 = vmatpush.msrb.mxu2 %v506_v16  ;;  %1544 = vmatpush.msrb.mxu3 %v602_v17  ;;  %v998_v15 = vld [vmem:[#allocation10 + $0x1130] sm:$0xff]  ;;  %v537_v16 = vld [vmem:[#allocation10 + $0x2c8] sm:$0xff] }
 0x169   :  { %1561 = vmatpush.msra.mxu0 %v716_v18  ;;  %1581 = vmatpush.msra.mxu1 %v812_v19  ;;  %v633_v17 = vld [vmem:[#allocation10 + $0x5c8] sm:$0xff]  ;;  %v896_v18 = vld [vmem:[#allocation10 + $0xe00] sm:$0xff] }
 0x16a   :  { %1525 = vmatpush.msrb.mxu2 %v500_v22  ;;  %1545 = vmatpush.msrb.mxu3 %v596_v23  ;;  %v992_v19 = vld [vmem:[#allocation10 + $0x1100] sm:$0xff]  ;;  %v531_v22 = vld [vmem:[#allocation10 + $0x298] sm:$0xff] }
 0x16b   :  { %1562 = vmatpush.msra.mxu0 %v710_v24  ;;  %1582 = vmatpush.msra.mxu1 %v806_v25  ;;  %v627_v23 = vld [vmem:[#allocation10 + $0x598] sm:$0xff]  ;;  %v890_v24 = vld [vmem:[#allocation10 + $0xdd0] sm:$0xff] }
 0x16c   :  { %1526 = vmatpush.msrb.mxu2 %v494_v26  ;;  %1546 = vmatpush.msrb.mxu3 %v590_v27  ;;  %v986_v25 = vld [vmem:[#allocation10 + $0x10d0] sm:$0xff]  ;;  %v525_v26 = vld [vmem:[#allocation10 + $0x268] sm:$0xff] }
 0x16d   :  { %1563 = vmatpush.msra.mxu0 %v704_v28  ;;  %1583 = vmatpush.msra.mxu1 %v800_v29  ;;  %v621_v27 = vld [vmem:[#allocation10 + $0x568] sm:$0xff]  ;;  %v884_v28 = vld [vmem:[#allocation10 + $0xda0] sm:$0xff] }
 0x16e   :  { %1527 = vmatpush.msrb.mxu2 %v488_v30  ;;  %1547 = vmatpush.msrb.mxu3 %v584_v31  ;;  %v980_v29 = vld [vmem:[#allocation10 + $0x10a0] sm:$0xff]  ;;  %v519_v30 = vld [vmem:[#allocation10 + $0x238] sm:$0xff] }
 0x16f   :  { %1564 = vmatpush.msra.mxu0 %v698_v32  ;;  %1584 = vmatpush.msra.mxu1 %v794_v33  ;;  %v615_v31 = vld [vmem:[#allocation10 + $0x538] sm:$0xff]  ;;  %v878_v32 = vld [vmem:[#allocation10 + $0xd70] sm:$0xff] }
 0x170   :  { %1528 = vmatpush.msrb.mxu2 %v482_v34  ;;  %1548 = vmatpush.msrb.mxu3 %v578_v35  ;;  %v974_v33 = vld [vmem:[#allocation10 + $0x1070] sm:$0xff]  ;;  %v513_v34 = vld [vmem:[#allocation10 + $0x208] sm:$0xff] }
 0x171   :  { %1565 = vmatpush.msra.mxu0 %v692_v36  ;;  %1585 = vmatpush.msra.mxu1 %v788_v37  ;;  %v609_v35 = vld [vmem:[#allocation10 + $0x508] sm:$0xff]  ;;  %v872_v36 = vld [vmem:[#allocation10 + $0xd40] sm:$0xff] }
 0x172   :  { %1529 = vmatpush.msrb.mxu2 %v476_v38  ;;  %1549 = vmatpush.msrb.mxu3 %v572_v39  ;;  %v968_v37 = vld [vmem:[#allocation10 + $0x1040] sm:$0xff]  ;;  %v507_v38 = vld [vmem:[#allocation10 + $0x1d8] sm:$0xff] }
 0x173   :  { %1566 = vmatpush.msra.mxu0 %v686_v42  ;;  %1586 = vmatpush.msra.mxu1 %v782_v43  ;;  %v603_v39 = vld [vmem:[#allocation10 + $0x4d8] sm:$0xff]  ;;  %v866_v42 = vld [vmem:[#allocation10 + $0xd10] sm:$0xff] }
 0x174   :  { %1530 = vmatpush.msrb.mxu2 %v470_v45  ;;  %1550 = vmatpush.msrb.mxu3 %v566_v46  ;;  %v962_v43 = vld [vmem:[#allocation10 + $0x1010] sm:$0xff]  ;;  %v501_v45 = vld [vmem:[#allocation10 + $0x1a8] sm:$0xff] }
 0x175   :  { %1567 = vmatpush.msra.mxu0 %v680_v47  ;;  %1587 = vmatpush.msra.mxu1 %v776_v49  ;;  %v597_v46 = vld [vmem:[#allocation10 + $0x4a8] sm:$0xff]  ;;  %v860_v47 = vld [vmem:[#allocation10 + $0xce0] sm:$0xff] }
 0x176   :  { %1531 = vmatpush.msrb.mxu2 %v464_v50  ;;  %1551 = vmatpush.msrb.mxu3 %v560_v51  ;;  %v956_v49 = vld [vmem:[#allocation10 + $0xfe0] sm:$0xff]  ;;  %v495_v50 = vld [vmem:[#allocation10 + $0x178] sm:$0xff] }
 0x177   :  { %1568 = vmatpush.msra.mxu0 %v674_v52  ;;  %1588 = vmatpush.msra.mxu1 %v770_v53  ;;  %v591_v51 = vld [vmem:[#allocation10 + $0x478] sm:$0xff]  ;;  %v854_v52 = vld [vmem:[#allocation10 + $0xcb0] sm:$0xff] }
 0x178   :  { %1532 = vmatpush.msrb.mxu2 %v458_v54  ;;  %1552 = vmatpush.msrb.mxu3 %v554_v55  ;;  %v950_v53 = vld [vmem:[#allocation10 + $0xfb0] sm:$0xff]  ;;  %v489_v54 = vld [vmem:[#allocation10 + $0x148] sm:$0xff] }
 0x179   :  { %1569 = vmatpush.msra.mxu0 %v668_v56  ;;  %1589 = vmatpush.msra.mxu1 %v764_v57  ;;  %v585_v55 = vld [vmem:[#allocation10 + $0x448] sm:$0xff]  ;;  %v848_v56 = vld [vmem:[#allocation10 + $0xc80] sm:$0xff] }
 0x17a   :  { %1533 = vmatpush.msrb.mxu2 %v452_v58  ;;  %1553 = vmatpush.msrb.mxu3 %v548_v59  ;;  %v944_v57 = vld [vmem:[#allocation10 + $0xf80] sm:$0xff]  ;;  %v483_v58 = vld [vmem:[#allocation10 + $0x118] sm:$0xff] }
 0x17b   :  { %1570 = vmatpush.msra.mxu0 %v662_v60  ;;  %1590 = vmatpush.msra.mxu1 %v758_v61  ;;  %v579_v59 = vld [vmem:[#allocation10 + $0x418] sm:$0xff]  ;;  %v842_v60 = vld [vmem:[#allocation10 + $0xc50] sm:$0xff] }
 0x17c   :  { %1534 = vmatmul.f32.vlgmr.msrb.gmra.mxu2 %v4564_v20  ;;  %1554 = vmatmul.f32.vlgmr.msrb.gmra.mxu3 %v4566_v21  ;;  %v938_v61 = vld [vmem:[#allocation10 + $0xf50] sm:$0xff] }
 0x17d   :  { %1598 = vmatpush.msra.mxu2 %v926_v62  ;;  %1618 = vmatpush.msra.mxu3 %v1022_v63  ;;  %v477_v62 = vld [vmem:[#allocation10 + $0xe8] sm:$0xff] }
 0x17e   :  { %1571 = vmatpush.msra.mxu0 %v656_v0  ;;  %1591 = vmatpush.msra.mxu1 %v752_v1  ;;  %v573_v63 = vld [vmem:[#allocation10 + $0x3e8] sm:$0xff]  ;;  %v836_v0 = vld [vmem:[#allocation10 + $0xc20] sm:$0xff] }
 0x17f   :  { %1599 = vmatpush.msra.mxu2 %v920_v2  ;;  %1619 = vmatpush.msra.mxu3 %v1016_v3  ;;  %v932_v1 = vld [vmem:[#allocation10 + $0xf20] sm:$0xff]  ;;  %v471_v2 = vld [vmem:[#allocation10 + $0xb8] sm:$0xff] }
 0x180   :  { %1572 = vmatpush.msra.mxu0 %v650_v4  ;;  %1592 = vmatpush.msra.mxu1 %v746_v5  ;;  %v567_v3 = vld [vmem:[#allocation10 + $0x3b8] sm:$0xff] }
 0x181   :  { %1600 = vmatpush.msra.mxu2 %v914_v6  ;;  %1620 = vmatpush.msra.mxu3 %v1010_v7  ;;  %v735_v4 = vld [vmem:[#allocation10 + $0x8f8] sm:$0xff]  ;;  %v465_v6 = vld [vmem:[#allocation10 + $0x88] sm:$0xff] }
 0x182   :  { %1573 = vmatpush.msra.mxu0 %v644_v8  ;;  %1593 = vmatpush.msra.mxu1 %v740_v9  ;;  %v831_v5 = vld [vmem:[#allocation10 + $0xbf8] sm:$0xff]  ;;  %v561_v7 = vld [vmem:[#allocation10 + $0x388] sm:$0xff] }
 0x183   :  { %1574 = vmatmul.f32.vlgmr.msra.gmra.mxu0 %v4570_v40  ;;  %1594 = vmatmul.f32.vlgmr.msra.gmra.mxu1 %v4572_v41  ;;  %v729_v8 = vld [vmem:[#allocation10 + $0x8c8] sm:$0xff] }
 0x184   :  { %1601 = vmatpush.msra.mxu2 %v908_v10  ;;  %1621 = vmatpush.msra.mxu3 %v1004_v11  ;;  %v825_v9 = vld [vmem:[#allocation10 + $0xbc8] sm:$0xff]  ;;  %v459_v10 = vld [vmem:[#allocation10 + $0x58] sm:$0xff] }
 0x185   :  { %1638 = vmatpush.msrb.mxu0 %v543_v12  ;;  %1658 = vmatpush.msrb.mxu1 %v639_v13  ;;  %v555_v11 = vld [vmem:[#allocation10 + $0x358] sm:$0xff] }
 0x186   :  { %1602 = vmatpush.msra.mxu2 %v902_v14  ;;  %1622 = vmatpush.msra.mxu3 %v998_v15  ;;  %v723_v12 = vld [vmem:[#allocation10 + $0x898] sm:$0xff]  ;;  %v453_v14 = vld [vmem:[#allocation10 + $0x28] sm:$0xff] }
 0x187   :  { %1639 = vmatpush.msrb.mxu0 %v537_v16  ;;  %1659 = vmatpush.msrb.mxu1 %v633_v17  ;;  %v819_v13 = vld [vmem:[#allocation10 + $0xb98] sm:$0xff]  ;;  %v549_v15 = vld [vmem:[#allocation10 + $0x328] sm:$0xff] }
 0x188   :  { %1603 = vmatpush.msra.mxu2 %v896_v18  ;;  %1623 = vmatpush.msra.mxu3 %v992_v19  ;;  %v717_v16 = vld [vmem:[#allocation10 + $0x868] sm:$0xff]  ;;  %v927_v18 = vld [vmem:[#allocation10 + $0xef8] sm:$0xff] }
 0x189   :  { %1640 = vmatpush.msrb.mxu0 %v531_v22  ;;  %1660 = vmatpush.msrb.mxu1 %v627_v23  ;;  %v813_v17 = vld [vmem:[#allocation10 + $0xb68] sm:$0xff]  ;;  %v1023_v19 = vld [vmem:[#allocation10 + $0x11f8] sm:$0xff] }
 0x18a   :  { %1604 = vmatpush.msra.mxu2 %v890_v24  ;;  %1624 = vmatpush.msra.mxu3 %v986_v25  ;;  %v711_v22 = vld [vmem:[#allocation10 + $0x838] sm:$0xff]  ;;  %v921_v24 = vld [vmem:[#allocation10 + $0xec8] sm:$0xff] }
 0x18b   :  { %1641 = vmatpush.msrb.mxu0 %v525_v26  ;;  %1661 = vmatpush.msrb.mxu1 %v621_v27  ;;  %v807_v23 = vld [vmem:[#allocation10 + $0xb38] sm:$0xff]  ;;  %v1017_v25 = vld [vmem:[#allocation10 + $0x11c8] sm:$0xff] }
 0x18c   :  { %1605 = vmatpush.msra.mxu2 %v884_v28  ;;  %1625 = vmatpush.msra.mxu3 %v980_v29  ;;  %v705_v26 = vld [vmem:[#allocation10 + $0x808] sm:$0xff]  ;;  %v915_v28 = vld [vmem:[#allocation10 + $0xe98] sm:$0xff] }
 0x18d   :  { %1642 = vmatpush.msrb.mxu0 %v519_v30  ;;  %1662 = vmatpush.msrb.mxu1 %v615_v31  ;;  %v801_v27 = vld [vmem:[#allocation10 + $0xb08] sm:$0xff]  ;;  %v1011_v29 = vld [vmem:[#allocation10 + $0x1198] sm:$0xff] }
 0x18e   :  { %1606 = vmatpush.msra.mxu2 %v878_v32  ;;  %1626 = vmatpush.msra.mxu3 %v974_v33  ;;  %v699_v30 = vld [vmem:[#allocation10 + $0x7d8] sm:$0xff]  ;;  %v1005_v31 = vld [vmem:[#allocation10 + $0x1168] sm:$0xff] }
 0x18f   :  { %1643 = vmatpush.msrb.mxu0 %v513_v34  ;;  %1663 = vmatpush.msrb.mxu1 %v609_v35  ;;  %v693_v32 = vld [vmem:[#allocation10 + $0x7a8] sm:$0xff]  ;;  %v903_v34 = vld [vmem:[#allocation10 + $0xe38] sm:$0xff] }
 0x190   :  { %1607 = vmatpush.msra.mxu2 %v872_v36  ;;  %1627 = vmatpush.msra.mxu3 %v968_v37  ;;  %v789_v33 = vld [vmem:[#allocation10 + $0xaa8] sm:$0xff]  ;;  %v999_v35 = vld [vmem:[#allocation10 + $0x1138] sm:$0xff] }
 0x191   :  { %1644 = vmatpush.msrb.mxu0 %v507_v38  ;;  %1664 = vmatpush.msrb.mxu1 %v603_v39  ;;  %v687_v36 = vld [vmem:[#allocation10 + $0x778] sm:$0xff]  ;;  %v897_v38 = vld [vmem:[#allocation10 + $0xe08] sm:$0xff] }
 0x192   :  { %1608 = vmatpush.msra.mxu2 %v866_v42  ;;  %1628 = vmatpush.msra.mxu3 %v962_v43  ;;  %v783_v37 = vld [vmem:[#allocation10 + $0xa78] sm:$0xff]  ;;  %v993_v39 = vld [vmem:[#allocation10 + $0x1108] sm:$0xff] }
 0x193   :  { %1645 = vmatpush.msrb.mxu0 %v501_v45  ;;  %1665 = vmatpush.msrb.mxu1 %v597_v46  ;;  %v681_v42 = vld [vmem:[#allocation10 + $0x748] sm:$0xff]  ;;  %v891_v45 = vld [vmem:[#allocation10 + $0xdd8] sm:$0xff] }
 0x194   :  { %1609 = vmatpush.msra.mxu2 %v860_v47  ;;  %1629 = vmatpush.msra.mxu3 %v956_v49  ;;  %v777_v43 = vld [vmem:[#allocation10 + $0xa48] sm:$0xff]  ;;  %v987_v46 = vld [vmem:[#allocation10 + $0x10d8] sm:$0xff] }
 0x195   :  { %1646 = vmatpush.msrb.mxu0 %v495_v50  ;;  %1666 = vmatpush.msrb.mxu1 %v591_v51  ;;  %v675_v47 = vld [vmem:[#allocation10 + $0x718] sm:$0xff]  ;;  %v885_v50 = vld [vmem:[#allocation10 + $0xda8] sm:$0xff] }
 0x196   :  { %1610 = vmatpush.msra.mxu2 %v854_v52  ;;  %1630 = vmatpush.msra.mxu3 %v950_v53  ;;  %v771_v49 = vld [vmem:[#allocation10 + $0xa18] sm:$0xff]  ;;  %v981_v51 = vld [vmem:[#allocation10 + $0x10a8] sm:$0xff]  ;;  %v4608_v52 = vpop.f32.mrf.mxu2  ;;  %v4610_v53 = vpop.f32.mrf.mxu0 }
 0x197   :  { %1647 = vmatpush.msrb.mxu0 %v489_v54  ;;  %1667 = vmatpush.msrb.mxu1 %v585_v55  ;;  %v669_v54 = vld [vmem:[#allocation10 + $0x6e8] sm:$0xff] }
 0x198   :  { %1611 = vmatpush.msra.mxu2 %v848_v56  ;;  %1631 = vmatpush.msra.mxu3 %v944_v57  ;;  %v765_v55 = vld [vmem:[#allocation10 + $0x9e8] sm:$0xff]  ;;  %v879_v56 = vld [vmem:[#allocation10 + $0xd78] sm:$0xff] }
 0x199   :  { %1648 = vmatpush.msrb.mxu0 %v483_v58  ;;  %1668 = vmatpush.msrb.mxu1 %v579_v59  ;;  %v975_v57 = vld [vmem:[#allocation10 + $0x1078] sm:$0xff]  ;;  %v4612_v58 = vpop.f32.mrf.mxu3 }
 0x19a   :  { %1612 = vmatpush.msra.mxu2 %v842_v60  ;;  %1632 = vmatpush.msra.mxu3 %v938_v61  ;;  %v663_v59 = vld [vmem:[#allocation10 + $0x6b8] sm:$0xff]  ;;  %v873_v61 = vld [vmem:[#allocation10 + $0xd48] sm:$0xff] }
 0x19b   :  { %1649 = vmatpush.msrb.mxu0 %v477_v62  ;;  %1669 = vmatpush.msrb.mxu1 %v573_v63  ;;  %v759_v60 = vld [vmem:[#allocation10 + $0x9b8] sm:$0xff]  ;;  %v969_v62 = vld [vmem:[#allocation10 + $0x1048] sm:$0xff] }
 0x19c   :  { %1613 = vmatpush.msra.mxu2 %v836_v0  ;;  %1633 = vmatpush.msra.mxu3 %v932_v1  ;;  %v657_v63 = vld [vmem:[#allocation10 + $0x688] sm:$0xff]  ;;  %v867_v1 = vld [vmem:[#allocation10 + $0xd18] sm:$0xff] }
 0x19d   :  { %1650 = vmatpush.msrb.mxu0 %v471_v2  ;;  %1670 = vmatpush.msrb.mxu1 %v567_v3  ;;  %v753_v0 = vld [vmem:[#allocation10 + $0x988] sm:$0xff]  ;;  %v963_v2 = vld [vmem:[#allocation10 + $0x1018] sm:$0xff]  ;;  %v4614_v3 = vpop.f32.mrf.mxu1 }
 0x19e   :  { %1614 = vmatmul.f32.vlgmr.msra.gmra.mxu2 %v4574_v44  ;;  %1634 = vmatmul.f32.vlgmr.msra.gmra.mxu3 %v4578_v48 }
 0x19f   :  { %1678 = vmatpush.msrb.mxu2 %v735_v4  ;;  %1698 = vmatpush.msrb.mxu3 %v831_v5  ;;  %v651_v4 = vld [vmem:[#allocation10 + $0x658] sm:$0xff] }
 0x1a0   :  { %1651 = vmatpush.msrb.mxu0 %v465_v6  ;;  %1671 = vmatpush.msrb.mxu1 %v561_v7  ;;  %v747_v5 = vld [vmem:[#allocation10 + $0x958] sm:$0xff]  ;;  %v861_v6 = vld [vmem:[#allocation10 + $0xce8] sm:$0xff] }
 0x1a1   :  { %1679 = vmatpush.msrb.mxu2 %v729_v8  ;;  %1699 = vmatpush.msrb.mxu3 %v825_v9  ;;  %v957_v7 = vld [vmem:[#allocation10 + $0xfe8] sm:$0xff] }
 0x1a2   :  { %1652 = vmatpush.msrb.mxu0 %v459_v10  ;;  %1672 = vmatpush.msrb.mxu1 %v555_v11  ;;  %v645_v8 = vld [vmem:[#allocation10 + $0x628] sm:$0xff]  ;;  %v855_v10 = vld [vmem:[#allocation10 + $0xcb8] sm:$0xff] }
 0x1a3   :  { %1680 = vmatpush.msrb.mxu2 %v723_v12  ;;  %1700 = vmatpush.msrb.mxu3 %v819_v13  ;;  %v741_v9 = vld [vmem:[#allocation10 + $0x928] sm:$0xff]  ;;  %v951_v11 = vld [vmem:[#allocation10 + $0xfb8] sm:$0xff]  ;;  %v4616_v12 = vpop.f32.mrf.mxu2  ;;  %v1175_v13 = vpop.f32.mrf.mxu0 }
 0x1a4   :  { %1653 = vmatpush.msrb.mxu0 %v453_v14  ;;  %1673 = vmatpush.msrb.mxu1 %v549_v15  ;;  %v1779_v14 = vld [vmem:[#allocation13 + $0x78] sm:$0xff] }
 0x1a5   :  { %1654 = vmatmul.f32.vlgmr.msrb.gmra.mxu0 %v4564_v20  ;;  %1674 = vmatmul.f32.vlgmr.msrb.gmra.mxu1 %v4566_v21  ;;  %v795_v20 = vld [vmem:[#allocation10 + $0xad8] sm:$0xff]  ;;  %v909_v21 = vld [vmem:[#allocation10 + $0xe68] sm:$0xff] }
 0x1a6   :  { %1681 = vmatpush.msrb.mxu2 %v717_v16  ;;  %1701 = vmatpush.msrb.mxu3 %v813_v17  ;;  %v1795_v15 = vld [vmem:[#allocation13 + $0xf8] sm:$0xff]  ;;  %v4618_v16 = vpop.f32.mrf.mxu3  ;;  %v849_v17 = vld [vmem:[#allocation10 + $0xc88] sm:$0xff] }
 0x1a7   :  { %1718 = vmatpush.msra.mxu0 %v927_v18  ;;  %1738 = vmatpush.msra.mxu1 %v1023_v19  ;;  %v945_v18 = vld [vmem:[#allocation10 + $0xf88] sm:$0xff]  ;;  %v4620_v19 = vld [vmem:[#allocation11] sm:$0x3f] }
 0x1a8   :  { %1682 = vmatpush.msrb.mxu2 %v711_v22  ;;  %1702 = vmatpush.msrb.mxu3 %v807_v23  ;;  %v1778_v22 = vld [vmem:[#allocation13 + $0x70] sm:$0xff] }
 0x1a9   :  { %1719 = vmatpush.msra.mxu0 %v921_v24  ;;  %1739 = vmatpush.msra.mxu1 %v1017_v25  ;;  %v1794_v23 = vld [vmem:[#allocation13 + $0xf0] sm:$0xff] }
 0x1aa   :  { %1683 = vmatpush.msrb.mxu2 %v705_v26  ;;  %1703 = vmatpush.msrb.mxu3 %v801_v27  ;;  %v843_v24 = vld [vmem:[#allocation10 + $0xc58] sm:$0xff]  ;;  %v1777_v26 = vld [vmem:[#allocation13 + $0x68] sm:$0xff] }
 0x1ab   :  { %1720 = vmatpush.msra.mxu0 %v915_v28  ;;  %1740 = vmatpush.msra.mxu1 %v1011_v29  ;;  %v939_v25 = vld [vmem:[#allocation10 + $0xf58] sm:$0xff]  ;;  %v1793_v27 = vld [vmem:[#allocation13 + $0xe8] sm:$0xff]  ;;  %v1026_v28 = vperm.slane %v4620_v19, 0  ;;  %v1195_v29 = vpop.f32.mrf.mxu1 }
 0x1ac   :  { %1684 = vmatpush.msrb.mxu2 %v699_v30  ;;  %1704 = vmatpush.msrb.mxu3 %v795_v20  ;;  %v837_v30 = vld [vmem:[#allocation10 + $0xc28] sm:$0xff] }
 0x1ad   :  { %1721 = vmatpush.msra.mxu0 %v909_v21  ;;  %1741 = vmatpush.msra.mxu1 %v1005_v31  ;;  %v933_v20 = vld [vmem:[#allocation10 + $0xf28] sm:$0xff] }
 0x1ae   :  { %1685 = vmatpush.msrb.mxu2 %v693_v32  ;;  %1705 = vmatpush.msrb.mxu3 %v789_v33  ;;  %v1776_v21 = vld [vmem:[#allocation13 + $0x60] sm:$0xff]  ;;  %v1027_v32 = vperm.slane %v4620_v19, 1  ;;  %v1811_v33 = vld [vmem:[#allocation13 + $0x178] sm:$0xff] }
 0x1af   :  { %1722 = vmatpush.msra.mxu0 %v903_v34  ;;  %1742 = vmatpush.msra.mxu1 %v999_v35  ;;  %v1792_v31 = vld [vmem:[#allocation13 + $0xe0] sm:$0xff]  ;;  %v1827_v34 = vld [vmem:[#allocation13 + $0x1f8] sm:$0xff]  ;;  %v1056_v35 = vadd.f32 %v4608_v52, %v1026_v28  ;;  %v1028_v52 = vperm.slane %v4620_v19, 2 }
 0x1b0   :  { %1686 = vmatpush.msrb.mxu2 %v687_v36  ;;  %1706 = vmatpush.msrb.mxu3 %v783_v37  ;;  %v4629_v36 = vpop.f32.mrf.mxu3  ;;  %v1775_v37 = vld [vmem:[#allocation13 + $0x58] sm:$0xff]  ;;  %v1784_v28 = vld [vmem:[#allocation13 + $0xa0] sm:$0xff] }
 0x1b1   :  { %1723 = vmatpush.msra.mxu0 %v897_v38  ;;  %1743 = vmatpush.msra.mxu1 %v993_v39  ;;  %v1791_v38 = vld [vmem:[#allocation13 + $0xd8] sm:$0xff]  ;;  %v1810_v39 = vld [vmem:[#allocation13 + $0x170] sm:$0xff] }
 0x1b2   :  { %1687 = vmatpush.msrb.mxu2 %v681_v42  ;;  %1707 = vmatpush.msrb.mxu3 %v777_v43  ;;  %v1826_v42 = vld [vmem:[#allocation13 + $0x1f0] sm:$0xff] }
 0x1b3   :  { %1724 = vmatpush.msra.mxu0 %v891_v45  ;;  %1744 = vmatpush.msra.mxu1 %v987_v46  ;;  %v1774_v43 = vld [vmem:[#allocation13 + $0x50] sm:$0xff]  ;;  %v1176_v46 = vadd.f32 %v1175_v13, %v1027_v32 }
 0x1b4   :  { %1688 = vmatpush.msrb.mxu2 %v675_v47  ;;  %1708 = vmatpush.msrb.mxu3 %v771_v49  ;;  %v1790_v45 = vld [vmem:[#allocation13 + $0xd0] sm:$0xff]  ;;  %v1809_v47 = vld [vmem:[#allocation13 + $0x168] sm:$0xff] }
 0x1b5   :  { %1725 = vmatpush.msra.mxu0 %v885_v50  ;;  %1745 = vmatpush.msra.mxu1 %v981_v51  ;;  %v1825_v49 = vld [vmem:[#allocation13 + $0x1e8] sm:$0xff]  ;;  %v1076_v50 = vadd.f32 %v4612_v58, %v1056_v35  ;;  %v1807_v58 = vld [vmem:[#allocation13 + $0x158] sm:$0xff]  ;;  %v1818_v35 = vld [vmem:[#allocation13 + $0x1b0] sm:$0xff] }
 0x1b6   :  { %1689 = vmatpush.msrb.mxu2 %v669_v54  ;;  %1709 = vmatpush.msrb.mxu3 %v765_v55  ;;  %v1789_v51 = vld [vmem:[#allocation13 + $0xc8] sm:$0xff]  ;;  %v1808_v54 = vld [vmem:[#allocation13 + $0x160] sm:$0xff] }
 0x1b7   :  { %1726 = vmatpush.msra.mxu0 %v879_v56  ;;  %1746 = vmatpush.msra.mxu1 %v975_v57  ;;  %v1824_v55 = vld [vmem:[#allocation13 + $0x1e0] sm:$0xff] }
 0x1b8   :  { %1690 = vmatpush.msrb.mxu2 %v663_v59  ;;  %1710 = vmatpush.msrb.mxu3 %v759_v60  ;;  %v1772_v59 = vld [vmem:[#allocation13 + $0x40] sm:$0xff] }
 0x1b9   :  { %1727 = vmatpush.msra.mxu0 %v873_v61  ;;  %1747 = vmatpush.msra.mxu1 %v969_v62  ;;  %v1788_v60 = vld [vmem:[#allocation13 + $0xc0] sm:$0xff]  ;;  %v1196_v61 = vadd.f32 %v1195_v29, %v1176_v46  ;;  %v1823_v62 = vld [vmem:[#allocation13 + $0x1d8] sm:$0xff] }
 0x1ba   :  { %1691 = vmatpush.msrb.mxu2 %v657_v63  ;;  %1711 = vmatpush.msrb.mxu3 %v753_v0  ;;  %v1096_v63 = vadd.f32 %v4610_v53, %v1076_v50  ;;  %v1315_v0 = vpop.f32.mrf.mxu3  ;;  %v1819_v29 = vld [vmem:[#allocation13 + $0x1b8] sm:$0xff]  ;;  %v1816_v50 = vld [vmem:[#allocation13 + $0x1a0] sm:$0xff] }
 0x1bb   :  { %1728 = vmatpush.msra.mxu0 %v867_v1  ;;  %1748 = vmatpush.msra.mxu1 %v963_v2  ;;  %v1771_v1 = vld [vmem:[#allocation13 + $0x38] sm:$0xff] }
 0x1bc   :  { %1692 = vmatpush.msrb.mxu2 %v651_v4  ;;  %1712 = vmatpush.msrb.mxu3 %v747_v5  ;;  %v1787_v2 = vld [vmem:[#allocation13 + $0xb8] sm:$0xff]  ;;  %v1116_v53 = vadd.f32 %v4614_v3, %v1096_v63 }
 0x1bd   :  { %1729 = vmatpush.msra.mxu0 %v861_v6  ;;  %1749 = vmatpush.msra.mxu1 %v957_v7  ;;  %v1806_v6 = vld [vmem:[#allocation13 + $0x150] sm:$0xff]  ;;  %v1803_v3 = vld [vmem:[#allocation13 + $0x138] sm:$0xff] }
 0x1be   :  { %1693 = vmatpush.msrb.mxu2 %v645_v8  ;;  %1713 = vmatpush.msrb.mxu3 %v741_v9  ;;  %v1822_v7 = vld [vmem:[#allocation13 + $0x1d0] sm:$0xff] }
 0x1bf   :  { %1730 = vmatpush.msra.mxu0 %v855_v10  ;;  %1750 = vmatpush.msra.mxu1 %v951_v11  ;;  %v1770_v8 = vld [vmem:[#allocation13 + $0x30] sm:$0xff]  ;;  %v1805_v10 = vld [vmem:[#allocation13 + $0x148] sm:$0xff] }
 0x1c0   :  { %1694 = vmatmul.f32.vlgmr.msrb.gmra.mxu2 %v4570_v40  ;;  %1714 = vmatmul.f32.vlgmr.msrb.gmra.mxu3 %v4572_v41  ;;  %v1215_v40 = vpop.f32.mrf.mxu2  ;;  %v4625_v41 = vpop.f32.mrf.mxu0  ;;  %v1786_v9 = vld [vmem:[#allocation13 + $0xb0] sm:$0xff]  ;;  %v1821_v11 = vld [vmem:[#allocation13 + $0x1c8] sm:$0xff] }
 0x1c1   :  { %1864 = vmatpush.msra.mxu2 %v1779_v14  ;;  %1884 = vmatpush.msra.mxu3 %v1795_v15  ;;  %v1216_v4 = vadd.f32 %v1215_v40, %v1196_v61  ;;  %v1769_v14 = vld [vmem:[#allocation13 + $0x28] sm:$0xff]  ;;  %v1767_v40 = vld [vmem:[#allocation13 + $0x18] sm:$0xff] }
 0x1c2   :  { %1731 = vmatpush.msra.mxu0 %v849_v17  ;;  %1751 = vmatpush.msra.mxu1 %v945_v18  ;;  %v1785_v15 = vld [vmem:[#allocation13 + $0xa8] sm:$0xff] }
 0x1c3   :  { %1865 = vmatpush.msra.mxu2 %v1778_v22  ;;  %1885 = vmatpush.msra.mxu3 %v1794_v23  ;;  %v1236_v17 = vadd.f32 %v4629_v36, %v1216_v4  ;;  %v1029_v22 = vperm.slane %v4620_v19, 3  ;;  %v1804_v23 = vld [vmem:[#allocation13 + $0x140] sm:$0xff]  ;;  %v1766_v36 = vld [vmem:[#allocation13 + $0x10] sm:$0xff]  ;;  %v1813_v4 = vld [vmem:[#allocation13 + $0x188] sm:$0xff] }
 0x1c4   :  { %1732 = vmatpush.msra.mxu0 %v843_v24  ;;  %1752 = vmatpush.msra.mxu1 %v939_v25  ;;  %v1820_v24 = vld [vmem:[#allocation13 + $0x1c0] sm:$0xff] }
 0x1c5   :  { %1866 = vmatpush.msra.mxu2 %v1777_v26  ;;  %1886 = vmatpush.msra.mxu3 %v1793_v27  ;;  %v1768_v27 = vld [vmem:[#allocation13 + $0x20] sm:$0xff] }
 0x1c6   :  { %1733 = vmatpush.msra.mxu0 %v837_v30  ;;  %1753 = vmatpush.msra.mxu1 %v933_v20  ;;  %v1136_v30 = vadd.f32 %v4616_v12, %v1116_v53  ;;  %v1395_v20 = vpop.f32.mrf.mxu3  ;;  %v1801_v12 = vld [vmem:[#allocation13 + $0x128] sm:$0xff] }
 0x1c7   :  { %1734 = vmatmul.f32.vlgmr.msra.gmra.mxu0 %v4574_v44  ;;  %1754 = vmatmul.f32.vlgmr.msra.gmra.mxu1 %v4578_v48  ;;  %v4634_v44 = vpop.f32.mrf.mxu1  ;;  %v1773_v48 = vld [vmem:[#allocation13 + $0x48] sm:$0xff] }
 0x1c8   :  { %1867 = vmatpush.msra.mxu2 %v1776_v21  ;;  %1887 = vmatpush.msra.mxu3 %v1792_v31  ;;  %v1295_v56 = vpop.f32.mrf.mxu2  ;;  %v1335_v57 = vpop.f32.mrf.mxu0  ;;  %v1783_v21 = vld [vmem:[#allocation13 + $0x98] sm:$0xff]  ;;  %v1256_v31 = vadd.f32 %v4625_v41, %v1236_v17  ;;  %v1781_v41 = vld [vmem:[#allocation13 + $0x88] sm:$0xff] }
 0x1c9   :  { %1904 = vmatpush.msrb.mxu0 %v1811_v33  ;;  %1924 = vmatpush.msrb.mxu1 %v1827_v34  ;;  %v1296_v5 = vadd.f32 %v1295_v56, %v1028_v52  ;;  %v1802_v34 = vld [vmem:[#allocation13 + $0x130] sm:$0xff]  ;;  %v1841_v53 = vld [vmem:[#allocation13 + $0x268] sm:$0xff] }
 0x1ca   :  { %1868 = vmatpush.msra.mxu2 %v1775_v37  ;;  %1888 = vmatpush.msra.mxu3 %v1791_v38  ;;  %v1782_v37 = vld [vmem:[#allocation13 + $0x90] sm:$0xff]  ;;  %v1817_v38 = vld [vmem:[#allocation13 + $0x1a8] sm:$0xff] }
 0x1cb   :  { %1905 = vmatpush.msrb.mxu0 %v1810_v39  ;;  %1925 = vmatpush.msrb.mxu1 %v1826_v42  ;;  %v1316_v18 = vadd.f32 %v1315_v0, %v1296_v5  ;;  %v1156_v39 = vadd.f32 %v4618_v16, %v1136_v30  ;;  %v1799_v16 = vld [vmem:[#allocation13 + $0x118] sm:$0xff]  ;;  %v1797_v0 = vld [vmem:[#allocation13 + $0x108] sm:$0xff]  ;;  %v1796_v5 = vld [vmem:[#allocation13 + $0x100] sm:$0xff] }
 0x1cc   :  { %1869 = vmatpush.msra.mxu2 %v1774_v43  ;;  %1889 = vmatpush.msra.mxu3 %v1790_v45  ;;  %v1765_v43 = vld [vmem:[#allocation13 + $0x8] sm:$0xff]  ;;  %v1276_v45 = vadd.f32 %v4634_v44, %v1256_v31  ;;  %v1815_v44 = vld [vmem:[#allocation13 + $0x198] sm:$0xff]  ;;  %v1828_v30 = vld [vmem:[#allocation13 + $0x200] sm:$0xff]  ;;  %v1030_v31 = vperm.slane %v4620_v19, 4 }
 0x1cd   :  { %1906 = vmatpush.msrb.mxu0 %v1809_v47  ;;  %1926 = vmatpush.msrb.mxu1 %v1825_v49  ;;  %v1336_v32 = vadd.f32 %v1335_v57, %v1316_v18  ;;  %v1800_v49 = vld [vmem:[#allocation13 + $0x120] sm:$0xff]  ;;  %v1758_v56 = vmax.f32 %v1156_v39, 0.0  ;;  %v1837_v17 = vld [vmem:[#allocation13 + $0x248] sm:$0xff]  ;;  %v1850_v39 = vld [vmem:[#allocation13 + $0x2b0] sm:$0xff] }
 0x1ce   :  { %1870 = vmatpush.msra.mxu2 %v1773_v48  ;;  %1890 = vmatpush.msra.mxu3 %v1789_v51  ;;  %v1764_v48 = vld [vmem:[#allocation13] sm:$0xff] }
 0x1cf   :  { %1907 = vmatpush.msrb.mxu0 %v1808_v54  ;;  %1927 = vmatpush.msrb.mxu1 %v1824_v55  ;;  %v1355_v13 = vpop.f32.mrf.mxu1  ;;  %v1780_v51 = vld [vmem:[#allocation13 + $0x80] sm:$0xff] }
 0x1d0   :  { %1871 = vmatpush.msra.mxu2 %v1772_v59  ;;  %1891 = vmatpush.msra.mxu3 %v1788_v60  ;;  %v1375_v25 = vpop.f32.mrf.mxu2  ;;  %v1415_v26 = vpop.f32.mrf.mxu0  ;;  %v1356_v46 = vadd.f32 %v1355_v13, %v1336_v32  ;;  %v1759_v59 = vmax.f32 %v1276_v45, 0.0  ;;  %v1798_v60 = vld [vmem:[#allocation13 + $0x110] sm:$0xff]  ;;  %v1840_v13 = vld [vmem:[#allocation13 + $0x260] sm:$0xff] }
 0x1d1   :  { %1908 = vmatpush.msrb.mxu0 %v1807_v58  ;;  %1928 = vmatpush.msrb.mxu1 %v1823_v62  ;;  %v1416_v33 = vadd.f32 %v1415_v26, %v1029_v22  ;;  %v1814_v62 = vld [vmem:[#allocation13 + $0x190] sm:$0xff]  ;;  %v1836_v18 = vld [vmem:[#allocation13 + $0x240] sm:$0xff]  ;;  %v1835_v22 = vld [vmem:[#allocation13 + $0x238] sm:$0xff] }
 0x1d2   :  { %1872 = vmatpush.msra.mxu2 %v1771_v1  ;;  %1892 = vmatpush.msra.mxu3 %v1787_v2  ;;  %v1376_v54 = vadd.f32 %v1375_v25, %v1356_v46  ;;  %v1832_v25 = vld [vmem:[#allocation13 + $0x220] sm:$0xff]  ;;  %v1831_v26 = vld [vmem:[#allocation13 + $0x218] sm:$0xff]  ;;  %v1854_v32 = vld [vmem:[#allocation13 + $0x2d0] sm:$0xff] }
 0x1d3   :  { %1909 = vmatpush.msrb.mxu0 %v1806_v6  ;;  %1929 = vmatpush.msrb.mxu1 %v1822_v7  ;;  %v1812_v7 = vld [vmem:[#allocation13 + $0x180] sm:$0xff] }
 0x1d4   :  { %1873 = vmatpush.msra.mxu2 %v1770_v8  ;;  %1893 = vmatpush.msra.mxu3 %v1786_v9  ;;  %v1396_v63 = vadd.f32 %v1395_v20, %v1376_v54  ;;  %v1857_v20 = vld [vmem:[#allocation13 + $0x2e8] sm:$0xff]  ;;  %v1847_v54 = vld [vmem:[#allocation13 + $0x298] sm:$0xff] }
 0x1d5   :  { %1910 = vmatpush.msrb.mxu0 %v1805_v10  ;;  %1930 = vmatpush.msrb.mxu1 %v1821_v11  ;;  %v1843_v10 = vld [vmem:[#allocation13 + $0x278] sm:$0xff]  ;;  %v1842_v11 = vld [vmem:[#allocation13 + $0x270] sm:$0xff] }
 0x1d6   :  { %1874 = vmatpush.msra.mxu2 %v1769_v14  ;;  %1894 = vmatpush.msra.mxu3 %v1785_v15  ;;  %v1760_v8 = vmax.f32 %v1396_v63, 0.0  ;;  %v1839_v14 = vld [vmem:[#allocation13 + $0x258] sm:$0xff]  ;;  %v1838_v15 = vld [vmem:[#allocation13 + $0x250] sm:$0xff] }
 0x1d7   :  { %1911 = vmatpush.msrb.mxu0 %v1804_v23  ;;  %1931 = vmatpush.msrb.mxu1 %v1820_v24  ;;  %v1435_v42 = vpop.f32.mrf.mxu1  ;;  %v1834_v23 = vld [vmem:[#allocation13 + $0x230] sm:$0xff]  ;;  %v1833_v24 = vld [vmem:[#allocation13 + $0x228] sm:$0xff] }
 0x1d8   :  { %1875 = vmatpush.msra.mxu2 %v1768_v27  ;;  %1895 = vmatpush.msra.mxu3 %v1784_v28  ;;  %v1436_v47 = vadd.f32 %v1435_v42, %v1416_v33  ;;  %v1830_v27 = vld [vmem:[#allocation13 + $0x210] sm:$0xff]  ;;  %v1829_v28 = vld [vmem:[#allocation13 + $0x208] sm:$0xff] }
 0x1d9   :  { %1912 = vmatpush.msrb.mxu0 %v1803_v3  ;;  %1932 = vmatpush.msrb.mxu1 %v1819_v29  ;;  %v1859_v3 = vld [vmem:[#allocation13 + $0x2f8] sm:$0xff]  ;;  %v1858_v29 = vld [vmem:[#allocation13 + $0x2f0] sm:$0xff] }
 0x1da   :  { %1876 = vmatpush.msra.mxu2 %v1767_v40  ;;  %1896 = vmatpush.msra.mxu3 %v1783_v21  ;;  %v1856_v40 = vld [vmem:[#allocation13 + $0x2e0] sm:$0xff]  ;;  %v1855_v21 = vld [vmem:[#allocation13 + $0x2d8] sm:$0xff] }
 0x1db   :  { %1913 = vmatpush.msrb.mxu0 %v1802_v34  ;;  %1933 = vmatpush.msrb.mxu1 %v1818_v35  ;;  %v1853_v34 = vld [vmem:[#allocation13 + $0x2c8] sm:$0xff] }
 0x1dc   :  { %1877 = vmatpush.msra.mxu2 %v1766_v36  ;;  %1897 = vmatpush.msra.mxu3 %v1782_v37  ;;  %v1852_v36 = vld [vmem:[#allocation13 + $0x2c0] sm:$0xff]  ;;  %v1851_v37 = vld [vmem:[#allocation13 + $0x2b8] sm:$0xff] }
 0x1dd   :  { %1914 = vmatpush.msrb.mxu0 %v1801_v12  ;;  %v1455_v52 = vpop.f32.mrf.mxu2  ;;  %1934 = vmatpush.msrb.mxu1 %v1817_v38  ;;  %v1475_v57 = vpop.f32.mrf.mxu3 }
 0x1de   :  { %1878 = vmatpush.msra.mxu2 %v1765_v43  ;;  %1898 = vmatpush.msra.mxu3 %v1781_v41  ;;  %v1456_v55 = vadd.f32 %v1455_v52, %v1436_v47  ;;  %v1495_v58 = vpop.f32.mrf.mxu0  ;;  %v1848_v52 = vld [vmem:[#allocation13 + $0x2a0] sm:$0xff] }
 0x1df   :  { %1915 = vmatpush.msrb.mxu0 %v1800_v49  ;;  %1935 = vmatpush.msrb.mxu1 %v1816_v50  ;;  %v1515_v2 = vpop.f32.mrf.mxu1 }
 0x1e0   :  { %1879 = vmatpush.msra.mxu2 %v1764_v48  ;;  %1899 = vmatpush.msra.mxu3 %v1780_v51  ;;  %v1476_v61 = vadd.f32 %v1475_v57, %v1456_v55  ;;  %v1849_v48 = vld [vmem:[#allocation13 + $0x2a8] sm:$0xff]  ;;  %v1031_v57 = vperm.slane %v4620_v19, 5  ;;  %v3945_v19 = vld [vmem:[#allocation14] ss:$0 sm:$0xff] }
 0x1e1   :  { %1916 = vmatpush.msrb.mxu0 %v1799_v16  ;;  %1880 = vmatmul.f32.vlgmr.msra.gmra.mxu2 %v1758_v56  ;;  %v1846_v16 = vld [vmem:[#allocation13 + $0x290] sm:$0xff]  ;;  %v1845_v55 = vld [vmem:[#allocation13 + $0x288] sm:$0xff]  ;;  %v1844_v56 = vld [vmem:[#allocation13 + $0x280] sm:$0xff] }
 0x1e2   :  { %1900 = vmatmul.f32.vlgmr.msra.gmra.mxu3 %v1759_v59  ;;  %v1496_v1 = vadd.f32 %v1495_v58, %v1476_v61  ;;  %1936 = vmatpush.msrb.mxu1 %v1815_v44 }
 0x1e3   :  { %1917 = vmatpush.msrb.mxu0 %v1798_v60  ;;  %1944 = vmatpush.msrb.mxu2 %v1843_v10 }
 0x1e4   :  { %v1516_v6 = vadd.f32 %v1515_v2, %v1496_v1  ;;  %1937 = vmatpush.msrb.mxu1 %v1814_v62  ;;  %1964 = vmatpush.msrb.mxu3 %v1859_v3 }
 0x1e5   :  { %1918 = vmatpush.msrb.mxu0 %v1797_v0  ;;  %1945 = vmatpush.msrb.mxu2 %v1842_v11 }
 0x1e6   :  { %v1761_v9 = vmax.f32 %v1516_v6, 0.0  ;;  %1938 = vmatpush.msrb.mxu1 %v1813_v4  ;;  %1965 = vmatpush.msrb.mxu3 %v1858_v29  ;;  %v271_v6 = vld [vmem:[%s4773_s2] sm:$0xff]  ;;  %s4399_s2 = smov 124  }
 0x1e7   :  { %1919 = vmatpush.msrb.mxu0 %v1796_v5  ;;  %1946 = vmatpush.msrb.mxu2 %v1841_v53 }
 0x1e8   :  { %1920 = vmatmul.f32.vlgmr.msrb.gmra.mxu0 %v1760_v8  ;;  %1939 = vmatpush.msrb.mxu1 %v1812_v7 }
 0x1e9   :  { %1940 = vmatmul.f32.vlgmr.msrb.gmra.mxu1 %v1761_v9  ;;  %1947 = vmatpush.msrb.mxu2 %v1840_v13 }
 0x1ea   :  { %1966 = vmatpush.msrb.mxu3 %v1857_v20  ;;  %1989 = vrot.lane.b32.xlu0 %v271_v6, %s4398_s26  ;;  %v2590_v6 = vld [vmem:[#allocation20 + $0x8a0] sm:$0xff] }
 0x1eb   :  { %1948 = vmatpush.msrb.mxu2 %v1839_v14 }
 0x1ec   :  { %1967 = vmatpush.msrb.mxu3 %v1856_v40  ;;  %v2011_v40 = vld [vmem:[#allocation17] sm:$0xff] }
 0x1ed   :  { %1949 = vmatpush.msrb.mxu2 %v1838_v15  ;;  %2017 = vst [vmem:[#allocation1] ss:$2 sm:$0xff] %v2011_v40  ;;  %v2314_v40 = vld [vmem:[#allocation20] sm:$0xff] }
 0x1ee   :  { %1968 = vmatpush.msrb.mxu3 %v1855_v21  ;;  %v2012_v21 = vld [vmem:[#allocation17 + $0x8] sm:$0xff] }
 0x1ef   :  { %1950 = vmatpush.msrb.mxu2 %v1837_v17  ;;  %2019 = vst [vmem:[#allocation1 + $0x10] ss:$2 sm:$0xff] %v2012_v21  ;;  %v2410_v21 = vld [vmem:[#allocation20 + $0x300] sm:$0xff] }
 0x1f0   :  { %1969 = vmatpush.msrb.mxu3 %v1854_v32 }
 0x1f1   :  { %1951 = vmatpush.msrb.mxu2 %v1836_v18 }
 0x1f2   :  { %1970 = vmatpush.msrb.mxu3 %v1853_v34 }
 0x1f3   :  { %1952 = vmatpush.msrb.mxu2 %v1835_v22 }
 0x1f4   :  { %1971 = vmatpush.msrb.mxu3 %v1852_v36  ;;  %v2023_v32 = vld.sshfl [vmem:[#allocation1 + $0x8] sm:$0xff pattern:$0x75316420] }
 0x1f5   :  { %1953 = vmatpush.msrb.mxu2 %v1834_v23  ;;  %3906 = vmatpush.msk.msra.mxu1 %vm303_vm0, %v2023_v32  ;;  %v2644_v32 = vld [vmem:[#allocation20 + $0xa50] sm:$0xff] }
 0x1f6   :  { %1972 = vmatpush.msrb.mxu3 %v1851_v37  ;;  %v2024_v34 = vld.sshfl [vmem:[#allocation1 + $0x10] sm:$0xff pattern:$0x75316420] }
 0x1f7   :  { %1954 = vmatpush.msrb.mxu2 %v1833_v24 }
 0x1f8   :  { %1973 = vmatpush.msrb.mxu3 %v1850_v39  ;;  %v2005_v39 = vld [vmem:[#allocation16] sm:$0xff] }
 0x1f9   :  { %1955 = vmatpush.msrb.mxu2 %v1832_v25  ;;  %v1998_v25 = vlaneseq }
 0x1fa   :  { %1974 = vmatpush.msrb.mxu3 %v1849_v48  ;;  %v2008_v48 = vld [vmem:[#allocation16 + $0x18] sm:$0xff] }
 0x1fb   :  { %1956 = vmatpush.msrb.mxu2 %v1831_v26 }
 0x1fc   :  { %1975 = vmatpush.msrb.mxu3 %v1848_v52  ;;  %v2482_v52 = vld [vmem:[#allocation20 + $0x540] sm:$0xff] }
 0x1fd   :  { %1957 = vmatpush.msrb.mxu2 %v1830_v27  ;;  %v1999_v27 = vand.u32 127, %v1998_v25  ;;  %v2326_v25 = vld [vmem:[#allocation20 + $0x60] sm:$0xff] }
 0x1fe   :  { %1976 = vmatpush.msrb.mxu3 %v1847_v54  ;;  %v2380_v54 = vld [vmem:[#allocation20 + $0x210] sm:$0xff] }
 0x1ff   :  { %1958 = vmatpush.msrb.mxu2 %v1829_v28  ;;  %v1535_v33 = vpop.f32.mrf.mxu2  ;;  %v1555_v12 = vpop.f32.mrf.mxu3  ;;  %vm2000_vm2 = vcmp.ge.s32.totalorder %v1999_v27, 4  ;;  %vm2001_vm3 = vcmp.lt.s32.totalorder %v1999_v27, 8  ;;  %v2560_v27 = vld [vmem:[#allocation20 + $0x7b0] sm:$0xff] }
 0x200   :  { %v1536_v35 = vadd.f32 %v1535_v33, %v1030_v31  ;;  %v1575_v42 = vpop.f32.mrf.mxu0  ;;  %v1595_v41 = vpop.f32.mrf.mxu1  ;;  %1977 = vmatpush.msrb.mxu3 %v1846_v16  ;;  %vm2002_vm4 = vmand %vm2000_vm2, %vm2001_vm3  ;;  %v2022_v31 = vld.sshfl [vmem:[#allocation1] sm:$0xff pattern:$0x75316420] }
 0x201   :  { %1959 = vmatpush.msrb.mxu2 %v1828_v30  ;;  %3904 = vmatpush.msk.msra.mxu0 %vm303_vm0, %v2022_v31  ;;  %v2013_v33 = vld [vmem:[#allocation17 + $0x10] sm:$0xff] }
 0x202   :  { %v1556_v38 = vadd.f32 %v1555_v12, %v1536_v35  ;;  %1978 = vmatpush.msrb.mxu3 %v1845_v55  ;;  %v2025_v35 = vld.sshfl [vmem:[#allocation1 + $0x18] sm:$0xff pattern:$0x75316420]  ;;  %2021 = vst [vmem:[#allocation1 + $0x20] ss:$2 sm:$0xff] %v2013_v33  ;;  %v2476_v16 = vld [vmem:[#allocation20 + $0x510] sm:$0xff] }
 0x203   :  { %3908 = vmatpush.msk.msrb.mxu0 %vm303_vm0, %v2024_v34  ;;  %3910 = vmatpush.msk.msrb.mxu1 %vm303_vm0, %v2025_v35  ;;  %v2374_v55 = vld [vmem:[#allocation20 + $0x1e0] sm:$0xff]  ;;  %v2548_v31 = vld [vmem:[#allocation20 + $0x750] sm:$0xff] }
 0x204   :  { %v1576_v43 = vadd.f32 %v1575_v42, %v1556_v38  ;;  %1979 = vmatpush.msrb.mxu3 %v1844_v56  ;;  %v2006_v42 = vld [vmem:[#allocation16 + $0x8] sm:$0xff]  ;;  %v2536_v35 = vld [vmem:[#allocation20 + $0x6f0] sm:$0xff] }
 0x205   :  { %v2470_v56 = vld [vmem:[#allocation20 + $0x4e0] sm:$0xff] }
 0x206   :  { %v1596_v45 = vadd.f32 %v1595_v41, %v1576_v43  ;;  %v2404_v43 = vld [vmem:[#allocation20 + $0x2d0] sm:$0xff]  ;;  %v2542_v33 = vld [vmem:[#allocation20 + $0x720] sm:$0xff] }
 0x207   :  { %v2500_v41 = vld [vmem:[#allocation20 + $0x5d0] sm:$0xff]  ;;  %2904 = vmatpush.msra.mxu2 %v2404_v43  ;;  %v2638_v34 = vld [vmem:[#allocation20 + $0xa20] sm:$0xff] }
 0x208   :  { %2924 = vmatpush.msra.mxu3 %v2500_v41  ;;  %v2620_v43 = vld [vmem:[#allocation20 + $0x990] sm:$0xff]  ;;  %v2782_v41 = vld [vmem:[#allocation20 + $0xea0] sm:$0xff] }
 0x209   :  { %v2026_v12 = vld.sshfl [vmem:[#allocation1 + $0x20] sm:$0xff pattern:$0x75316420]  ;;  %v2027_v38 = vld.sshfl [vmem:[#allocation1 + $0x28] sm:$0xff pattern:$0x75316420] }
 0x221   :  { %v1615_v46 = vpop.f32.mrf.mxu2  ;;  %v1635_v49 = vpop.f32.mrf.mxu3 }
 0x222   :  { %v1616_v47 = vadd.f32 %v1615_v46, %v1596_v45  ;;  %v1655_v44 = vpop.f32.mrf.mxu0  ;;  %v1675_v60 = vpop.f32.mrf.mxu1  ;;  %v2398_v45 = vld [vmem:[#allocation20 + $0x2a0] sm:$0xff] }
 0x223   :  { %v1656_v59 = vadd.f32 %v1655_v44, %v1031_v57  ;;  %v2494_v46 = vld [vmem:[#allocation20 + $0x5a0] sm:$0xff]  ;;  %2905 = vmatpush.msra.mxu2 %v2398_v45  ;;  %v2009_v44 = vld [vmem:[#allocation16 + $0x20] sm:$0xff] }
 0x224   :  { %v1636_v50 = vadd.f32 %v1635_v49, %v1616_v47  ;;  %v2392_v47 = vld [vmem:[#allocation20 + $0x270] sm:$0xff]  ;;  %2925 = vmatpush.msra.mxu3 %v2494_v46  ;;  %v270_v57 = vld [vmem:[#allocation5] sm:$0xff] }
 0x225   :  { %v1676_v61 = vadd.f32 %v1675_v60, %v1656_v59  ;;  %v2488_v49 = vld [vmem:[#allocation20 + $0x570] sm:$0xff]  ;;  %2906 = vmatpush.msra.mxu2 %v2392_v47  ;;  %v2010_v59 = vld [vmem:[#allocation16 + $0x28] sm:$0xff] }
 0x226   :  { %v1762_v51 = vmax.f32 %v1636_v50, 0.0  ;;  %v2007_v50 = vld [vmem:[#allocation16 + $0x10] sm:$0xff]  ;;  %2926 = vmatpush.msra.mxu3 %v2488_v49  ;;  %v2368_v60 = vld [vmem:[#allocation20 + $0x1b0] sm:$0xff] }
 0x227   :  { %v2878_v45 = vld [vmem:[#allocation20 + $0x11a0] sm:$0xff]  ;;  %v2776_v49 = vld [vmem:[#allocation20 + $0xe70] sm:$0xff] }
 0x228   :  { %1960 = vmatmul.f32.vlgmr.msrb.gmra.mxu2 %v1762_v51  ;;  %v2386_v51 = vld [vmem:[#allocation20 + $0x240] sm:$0xff]  ;;  %2927 = vmatpush.msra.mxu3 %v2482_v52 }
 0x229   :  { %2907 = vmatpush.msra.mxu2 %v2386_v51  ;;  %v2518_v46 = vld [vmem:[#allocation20 + $0x660] sm:$0xff]  ;;  %v2608_v51 = vld [vmem:[#allocation20 + $0x930] sm:$0xff] }
 0x22a   :  { %2928 = vmatpush.msra.mxu3 %v2476_v16  ;;  %v2614_v47 = vld [vmem:[#allocation20 + $0x960] sm:$0xff] }
 0x22b   :  { %2908 = vmatpush.msra.mxu2 %v2380_v54  ;;  %v2770_v52 = vld [vmem:[#allocation20 + $0xe40] sm:$0xff] }
 0x22c   :  { %2929 = vmatpush.msra.mxu3 %v2470_v56  ;;  %v2866_v54 = vld [vmem:[#allocation20 + $0x1140] sm:$0xff]  ;;  %v2764_v56 = vld [vmem:[#allocation20 + $0xe10] sm:$0xff] }
 0x22d   :  { %2909 = vmatpush.msra.mxu2 %v2374_v55  ;;  %v2506_v16 = vld [vmem:[#allocation20 + $0x600] sm:$0xff] }
 0x22e   :  { %v2602_v55 = vld [vmem:[#allocation20 + $0x900] sm:$0xff] }
 0x22f   :  { %2910 = vmatpush.msra.mxu2 %v2368_v60  ;;  %v2758_v60 = vld [vmem:[#allocation20 + $0xde0] sm:$0xff] }
 0x243   :  { %v1695_v58 = vpop.f32.mrf.mxu2  ;;  %v1715_v63 = vpop.f32.mrf.mxu3 }
 0x244   :  { %v1696_v62 = vadd.f32 %v1695_v58, %v1676_v61  ;;  %v1735_v1 = vpop.f32.mrf.mxu0  ;;  %v1755_v4 = vpop.f32.mrf.mxu1  ;;  %v2464_v61 = vld [vmem:[#allocation20 + $0x4b0] sm:$0xff]  ;;  %v2362_v58 = vld [vmem:[#allocation20 + $0x180] sm:$0xff] }
 0x245   :  { %2930 = vmatpush.msra.mxu3 %v2464_v61  ;;  %2911 = vmatpush.msra.mxu2 %v2362_v58  ;;  %v2854_v61 = vld [vmem:[#allocation20 + $0x10e0] sm:$0xff]  ;;  %v2399_v58 = vld [vmem:[#allocation20 + $0x2a8] sm:$0xff] }
 0x246   :  { %v1716_v0 = vadd.f32 %v1715_v63, %v1696_v62  ;;  %v2458_v62 = vld [vmem:[#allocation20 + $0x480] sm:$0xff]  ;;  %v2356_v63 = vld [vmem:[#allocation20 + $0x150] sm:$0xff] }
 0x247   :  { %2931 = vmatpush.msra.mxu3 %v2458_v62  ;;  %2912 = vmatpush.msra.mxu2 %v2356_v63  ;;  %v2495_v62 = vld [vmem:[#allocation20 + $0x5a8] sm:$0xff]  ;;  %v2752_v63 = vld [vmem:[#allocation20 + $0xdb0] sm:$0xff] }
 0x248   :  { %v1736_v2 = vadd.f32 %v1735_v1, %v1716_v0  ;;  %v2452_v0 = vld [vmem:[#allocation20 + $0x450] sm:$0xff] }
 0x249   :  { %v2596_v1 = vld [vmem:[#allocation20 + $0x8d0] sm:$0xff]  ;;  %2932 = vmatpush.msra.mxu3 %v2452_v0 }
 0x24a   :  { %v1756_v5 = vadd.f32 %v1755_v4, %v1736_v2  ;;  %v2692_v2 = vld [vmem:[#allocation20 + $0xbd0] sm:$0xff]  ;;  %v2350_v4 = vld [vmem:[#allocation20 + $0x120] sm:$0xff] }
 0x24b   :  { %2913 = vmatpush.msra.mxu2 %v2350_v4  ;;  %v2848_v0 = vld [vmem:[#allocation20 + $0x10b0] sm:$0xff]  ;;  %v2746_v4 = vld [vmem:[#allocation20 + $0xd80] sm:$0xff] }
 0x24c   :  { %v1763_v7 = vmax.f32 %v1756_v5, 0.0  ;;  %v2446_v5 = vld [vmem:[#allocation20 + $0x420] sm:$0xff] }
 0x24d   :  { %2933 = vmatpush.msra.mxu3 %v2446_v5  ;;  %v2842_v5 = vld [vmem:[#allocation20 + $0x1080] sm:$0xff] }
 0x24e   :  { %1980 = vmatmul.f32.vlgmr.msrb.gmra.mxu3 %v1763_v7  ;;  %v2686_v7 = vld [vmem:[#allocation20 + $0xba0] sm:$0xff] }
 0x25c   :  { %v1990_v3 = vpop.permute.xlu0 %1989 }
 0x264   :  { %v1881_v8 = vpop.f32.mrf.mxu2 }
 0x265   :  { %v1882_v9 = vadd.f32 %v3945_v19, %v1881_v8  ;;  %v1901_v10 = vpop.f32.mrf.mxu3  ;;  %v1921_v53 = vpop.f32.mrf.mxu0  ;;  %v2344_v19 = vld [vmem:[#allocation20 + $0xf0] sm:$0xff] }
 0x266   :  { %v1941_v13 = vpop.f32.mrf.mxu1  ;;  %v2440_v8 = vld [vmem:[#allocation20 + $0x3f0] sm:$0xff]  ;;  %2914 = vmatpush.msra.mxu2 %v2344_v19 }
 0x267   :  { %v1902_v11 = vadd.f32 %v1901_v10, %v1882_v9  ;;  %v2584_v9 = vld [vmem:[#allocation20 + $0x870] sm:$0xff]  ;;  %2934 = vmatpush.msra.mxu3 %v2440_v8 }
 0x268   :  { %v2680_v10 = vld [vmem:[#allocation20 + $0xb70] sm:$0xff] }
 0x269   :  { %v1922_v14 = vadd.f32 %v1921_v53, %v1902_v11  ;;  %v2338_v11 = vld [vmem:[#allocation20 + $0xc0] sm:$0xff]  ;;  %v2740_v19 = vld [vmem:[#allocation20 + $0xd50] sm:$0xff] }
 0x26a   :  { %v2434_v53 = vld [vmem:[#allocation20 + $0x3c0] sm:$0xff]  ;;  %2915 = vmatpush.msra.mxu2 %v2338_v11  ;;  %v2836_v8 = vld [vmem:[#allocation20 + $0x1050] sm:$0xff] }
 0x26b   :  { %v1942_v17 = vadd.f32 %v1941_v13, %v1922_v14  ;;  %v2578_v13 = vld [vmem:[#allocation20 + $0x840] sm:$0xff]  ;;  %2935 = vmatpush.msra.mxu3 %v2434_v53 }
 0x26c   :  { %v2674_v14 = vld [vmem:[#allocation20 + $0xb40] sm:$0xff] }
 0x26d   :  { %v2734_v11 = vld [vmem:[#allocation20 + $0xd20] sm:$0xff] }
 0x26e   :  { %v2830_v53 = vld [vmem:[#allocation20 + $0x1020] sm:$0xff] }
 0x2ab   :  { %v1961_v15 = vpop.f32.mrf.mxu2 }
 0x2ac   :  { %v1962_v18 = vadd.f32 %v1961_v15, %v1942_v17  ;;  %v2572_v15 = vld [vmem:[#allocation20 + $0x810] sm:$0xff] }
 0x2ad   :  { %v2668_v17 = vld [vmem:[#allocation20 + $0xb10] sm:$0xff] }
 0x2d1   :  { %v1981_v22 = vpop.f32.mrf.mxu3 }
 0x2d2   :  { %v1982_v23 = vadd.f32 %v1981_v22, %v1962_v18  ;;  %v2332_v18 = vld [vmem:[#allocation20 + $0x90] sm:$0xff] }
 0x2d3   :  { %v2428_v22 = vld [vmem:[#allocation20 + $0x390] sm:$0xff]  ;;  %2916 = vmatpush.msra.mxu2 %v2332_v18  ;;  %v2369_v18 = vld [vmem:[#allocation20 + $0x1b8] sm:$0xff] }
 0x2d4   :  { %v1984_v24 = vmax.f32 %v1982_v23, -4.0  ;;  %2936 = vmatpush.msra.mxu3 %v2428_v22  ;;  %v2465_v22 = vld [vmem:[#allocation20 + $0x4b8] sm:$0xff] }
 0x2d5   :  { %2917 = vmatpush.msra.mxu2 %v2326_v25  ;;  %v2363_v25 = vld [vmem:[#allocation20 + $0x188] sm:$0xff] }
 0x2d6   :  { %v1985_v26 = vmin.f32 %v1984_v24, 15.0  ;;  %v2662_v24 = vld [vmem:[#allocation20 + $0xae0] sm:$0xff] }
 0x2d8   :  { %v1986_v28 = vmul.f32 1.442695, %v1985_v26  ;;  %v2422_v26 = vld [vmem:[#allocation20 + $0x360] sm:$0xff] }
 0x2d9   :  { %2937 = vmatpush.msra.mxu3 %v2422_v26  ;;  %v2459_v26 = vld [vmem:[#allocation20 + $0x488] sm:$0xff] }
 0x2da   :  { %3947 = vpow2.f32 %v1986_v28  ;;  %v2656_v28 = vld [vmem:[#allocation20 + $0xab0] sm:$0xff] }
 0x2e0   :  { %v3948_v29 = vpop.eup %3947 }
 0x2e1   :  { %v1992_v30 = vmul.f32 %v3948_v29, %v1990_v3  ;;  %v2003_v20 = vsel %vm2002_vm4, %v3948_v29, %v1982_v23  ;;  %v2320_v3 = vld [vmem:[#allocation20 + $0x30] sm:$0xff] }
 0x2e2   :  { %2004 = vst [vmem:[#allocation27] sm:$0xff] %v2003_v20  ;;  %v2416_v29 = vld [vmem:[#allocation20 + $0x330] sm:$0xff]  ;;  %v2650_v20 = vld [vmem:[#allocation20 + $0xa80] sm:$0xff]  ;;  %2918 = vmatpush.msra.mxu2 %v2320_v3  ;;  %v2357_v3 = vld [vmem:[#allocation20 + $0x158] sm:$0xff] }
 0x2e3   :  { %1994 = vrot.lane.b32.xlu0 %v1992_v30, %s4399_s2  ;;  %v2554_v30 = vld [vmem:[#allocation20 + $0x780] sm:$0xff]  ;;  %2938 = vmatpush.msra.mxu3 %v2416_v29  ;;  %v2453_v29 = vld [vmem:[#allocation20 + $0x458] sm:$0xff]  ;;  %3873 = dma.vmem_to_hbm [thread:$0]  %s3869_s12, 128, %s3871_s4, [#allocation28]  }
 0x2e4   :  { %2919 = vmatpush.msra.mxu2 %v2314_v40  ;;  %v2351_v40 = vld [vmem:[#allocation20 + $0x128] sm:$0xff] }
 0x2e5   :  { %2939 = vmatpush.msra.mxu3 %v2410_v21  ;;  %v2447_v21 = vld [vmem:[#allocation20 + $0x428] sm:$0xff] }
 0x355   :  { %v1995_v36 = vpop.permute.xlu0 %1994 }
 0x356   :  { %v1997_v37 = vadd.f32 %v1995_v36, %v1982_v23  ;;  %v2566_v23 = vld [vmem:[#allocation20 + $0x7e0] sm:$0xff]  ;;  %v2632_v36 = vld [vmem:[#allocation20 + $0x9f0] sm:$0xff] }
 0x358   :  { %3905 = vmatmul.msk.f32.vlgmr.msra.gmra.mxu0 %vm2028_vm5, %v1997_v37  ;;  %3907 = vmatmul.msk.f32.vlgmr.msra.gmra.mxu1 %vm2028_vm5, %v1997_v37 }
 0x359   :  { %3912 = vmatpush.msk.msra.mxu0 %vm303_vm0, %v2026_v12  ;;  %3914 = vmatpush.msk.msra.mxu1 %vm303_vm0, %v2027_v38  ;;  %v2626_v12 = vld [vmem:[#allocation20 + $0x9c0] sm:$0xff]  ;;  %v2788_v38 = vld [vmem:[#allocation20 + $0xed0] sm:$0xff] }
 0x35a   :  { %2984 = vmatpush.msrb.mxu2 %v2788_v38 }
 0x35c   :  { %2985 = vmatpush.msrb.mxu2 %v2782_v41  ;;  %v2327_v41 = vld [vmem:[#allocation20 + $0x68] sm:$0xff] }
 0x35e   :  { %2986 = vmatpush.msrb.mxu2 %v2776_v49  ;;  %v2315_v49 = vld [vmem:[#allocation20 + $0x8] sm:$0xff] }
 0x360   :  { %3909 = vmatmul.msk.f32.vlgmr.msrb.gmra.mxu0 %vm2028_vm5, %v1997_v37  ;;  %3911 = vmatmul.msk.f32.vlgmr.msrb.gmra.mxu1 %vm2028_vm5, %v1997_v37 }
 0x361   :  { %2183 = vmatpush.msrb.mxu0 %v2005_v39  ;;  %2203 = vmatpush.msrb.mxu1 %v2006_v42  ;;  %v2884_v39 = vld [vmem:[#allocation20 + $0x11d0] sm:$0xff] }
 0x362   :  { %v2524_v42 = vld [vmem:[#allocation20 + $0x690] sm:$0xff]  ;;  %3004 = vmatpush.msrb.mxu3 %v2884_v39  ;;  %2987 = vmatpush.msrb.mxu2 %v2770_v52 }
 0x364   :  { %3005 = vmatpush.msrb.mxu3 %v2878_v45  ;;  %2988 = vmatpush.msrb.mxu2 %v2764_v56  ;;  %v2423_v45 = vld [vmem:[#allocation20 + $0x368] sm:$0xff] }
 0x366   :  { %2989 = vmatpush.msrb.mxu2 %v2758_v60 }
 0x368   :  { %3913 = vmatmul.msk.f32.vlgmr.msra.gmra.mxu0 %vm2028_vm5, %v1997_v37  ;;  %3915 = vmatmul.msk.f32.vlgmr.msra.gmra.mxu1 %vm2028_vm5, %v1997_v37  ;;  %v2530_v37 = vld [vmem:[#allocation20 + $0x6c0] sm:$0xff] }
 0x369   :  { %2223 = vmatpush.msra.mxu0 %v2007_v50  ;;  %2243 = vmatpush.msra.mxu1 %v2008_v48  ;;  %v2872_v50 = vld [vmem:[#allocation20 + $0x1170] sm:$0xff] }
 0x36a   :  { %v2512_v48 = vld [vmem:[#allocation20 + $0x630] sm:$0xff]  ;;  %3006 = vmatpush.msrb.mxu3 %v2872_v50  ;;  %2990 = vmatpush.msrb.mxu2 %v2752_v63  ;;  %v2411_v50 = vld [vmem:[#allocation20 + $0x308] sm:$0xff] }
 0x36c   :  { %3007 = vmatpush.msrb.mxu3 %v2866_v54  ;;  %2991 = vmatpush.msrb.mxu2 %v2746_v4 }
 0x36e   :  { %2992 = vmatpush.msrb.mxu2 %v2740_v19 }
 0x370   :  { %3916 = vmatmul.msk.f32.vlgmr.msrb.gmra.mxu0 %vm2164_vm6, %v270_v57  ;;  %3917 = vmatmul.msk.f32.vlgmr.msrb.gmra.mxu1 %vm2164_vm6, %v270_v57 }
 0x371   :  { %2263 = vmatpush.msrb.mxu0 %v2009_v44  ;;  %2283 = vmatpush.msrb.mxu1 %v2010_v59  ;;  %v2405_v44 = vld [vmem:[#allocation20 + $0x2d8] sm:$0xff] }
 0x372   :  { %v2501_v59 = vld [vmem:[#allocation20 + $0x5d8] sm:$0xff]  ;;  %2993 = vmatpush.msrb.mxu2 %v2734_v11 }
 0x373   :  { %v2681_v11 = vld [vmem:[#allocation20 + $0xb78] sm:$0xff] }
 0x378   :  { %3918 = vmatmul.msk.f32.vlgmr.msra.gmra.mxu0 %vm2164_vm6, %v270_v57  ;;  %3919 = vmatmul.msk.f32.vlgmr.msra.gmra.mxu1 %vm2164_vm6, %v270_v57 }
 0x379   :  { %2944 = vmatpush.msra.mxu0 %v2596_v1  ;;  %2964 = vmatpush.msra.mxu1 %v2692_v2  ;;  %v2393_v1 = vld [vmem:[#allocation20 + $0x278] sm:$0xff] }
 0x37a   :  { %v2489_v2 = vld [vmem:[#allocation20 + $0x578] sm:$0xff] }
 0x37b   :  { %2945 = vmatpush.msra.mxu0 %v2590_v6  ;;  %2965 = vmatpush.msra.mxu1 %v2686_v7  ;;  %v2387_v6 = vld [vmem:[#allocation20 + $0x248] sm:$0xff] }
 0x37c   :  { %v2483_v7 = vld [vmem:[#allocation20 + $0x548] sm:$0xff] }
 0x37d   :  { %2946 = vmatpush.msra.mxu0 %v2584_v9  ;;  %2966 = vmatpush.msra.mxu1 %v2680_v10  ;;  %v2381_v9 = vld [vmem:[#allocation20 + $0x218] sm:$0xff] }
 0x37e   :  { %v2477_v10 = vld [vmem:[#allocation20 + $0x518] sm:$0xff] }
 0x37f   :  { %2947 = vmatpush.msra.mxu0 %v2578_v13  ;;  %2967 = vmatpush.msra.mxu1 %v2674_v14  ;;  %v2375_v13 = vld [vmem:[#allocation20 + $0x1e8] sm:$0xff] }
 0x380   :  { %3920 = vmatmul.msk.f32.vlgmr.msrb.gmra.mxu0 %vm2164_vm6, %v270_v57  ;;  %3921 = vmatmul.msk.f32.vlgmr.msrb.gmra.mxu1 %vm2164_vm6, %v270_v57  ;;  %v2860_v57 = vld [vmem:[#allocation20 + $0x1110] sm:$0xff]  ;;  %v2471_v14 = vld [vmem:[#allocation20 + $0x4e8] sm:$0xff] }
 0x381   :  { %2948 = vmatpush.msra.mxu0 %v2572_v15  ;;  %2968 = vmatpush.msra.mxu1 %v2668_v17  ;;  %v2728_v15 = vld [vmem:[#allocation20 + $0xcf0] sm:$0xff] }
 0x382   :  { %3008 = vmatpush.msrb.mxu3 %v2860_v57  ;;  %v2824_v17 = vld [vmem:[#allocation20 + $0xff0] sm:$0xff]  ;;  %2994 = vmatpush.msrb.mxu2 %v2728_v15  ;;  %v2675_v15 = vld [vmem:[#allocation20 + $0xb48] sm:$0xff] }
 0x383   :  { %2949 = vmatpush.msra.mxu0 %v2566_v23  ;;  %2969 = vmatpush.msra.mxu1 %v2662_v24  ;;  %v2722_v23 = vld [vmem:[#allocation20 + $0xcc0] sm:$0xff] }
 0x384   :  { %3009 = vmatpush.msrb.mxu3 %v2854_v61  ;;  %v2818_v24 = vld [vmem:[#allocation20 + $0xfc0] sm:$0xff]  ;;  %2995 = vmatpush.msrb.mxu2 %v2722_v23  ;;  %v2669_v23 = vld [vmem:[#allocation20 + $0xb18] sm:$0xff] }
 0x385   :  { %2950 = vmatpush.msra.mxu0 %v2560_v27  ;;  %2970 = vmatpush.msra.mxu1 %v2656_v28  ;;  %v2716_v27 = vld [vmem:[#allocation20 + $0xc90] sm:$0xff] }
 0x386   :  { %3010 = vmatpush.msrb.mxu3 %v2848_v0  ;;  %v2812_v28 = vld [vmem:[#allocation20 + $0xf90] sm:$0xff]  ;;  %2996 = vmatpush.msrb.mxu2 %v2716_v27  ;;  %v2597_v0 = vld [vmem:[#allocation20 + $0x8d8] sm:$0xff] }
 0x387   :  { %2951 = vmatpush.msra.mxu0 %v2554_v30  ;;  %2971 = vmatpush.msra.mxu1 %v2650_v20  ;;  %v2710_v30 = vld [vmem:[#allocation20 + $0xc60] sm:$0xff] }
 0x388   :  { %3011 = vmatpush.msrb.mxu3 %v2842_v5  ;;  %v2806_v20 = vld [vmem:[#allocation20 + $0xf60] sm:$0xff]  ;;  %2997 = vmatpush.msrb.mxu2 %v2710_v30  ;;  %v2591_v5 = vld [vmem:[#allocation20 + $0x8a8] sm:$0xff] }
 0x389   :  { %2952 = vmatpush.msra.mxu0 %v2548_v31  ;;  %2972 = vmatpush.msra.mxu1 %v2644_v32  ;;  %v2704_v31 = vld [vmem:[#allocation20 + $0xc30] sm:$0xff] }
 0x38a   :  { %3012 = vmatpush.msrb.mxu3 %v2836_v8  ;;  %v2800_v32 = vld [vmem:[#allocation20 + $0xf30] sm:$0xff]  ;;  %2998 = vmatpush.msrb.mxu2 %v2704_v31 }
 0x38b   :  { %2953 = vmatpush.msra.mxu0 %v2542_v33  ;;  %2973 = vmatpush.msra.mxu1 %v2638_v34  ;;  %v2345_v33 = vld [vmem:[#allocation20 + $0xf8] sm:$0xff] }
 0x38c   :  { %3013 = vmatpush.msrb.mxu3 %v2830_v53  ;;  %v2441_v34 = vld [vmem:[#allocation20 + $0x3f8] sm:$0xff] }
 0x38d   :  { %2954 = vmatpush.msra.mxu0 %v2536_v35  ;;  %2974 = vmatpush.msra.mxu1 %v2632_v36  ;;  %v2698_v35 = vld [vmem:[#allocation20 + $0xc00] sm:$0xff] }
 0x38e   :  { %3014 = vmatpush.msrb.mxu3 %v2824_v17  ;;  %v2794_v36 = vld [vmem:[#allocation20 + $0xf00] sm:$0xff]  ;;  %2999 = vmatpush.msrb.mxu2 %v2698_v35  ;;  %v2873_v35 = vld [vmem:[#allocation20 + $0x1178] sm:$0xff] }
 0x38f   :  { %2955 = vmatpush.msra.mxu0 %v2530_v37  ;;  %2975 = vmatpush.msra.mxu1 %v2626_v12  ;;  %v2339_v37 = vld [vmem:[#allocation20 + $0xc8] sm:$0xff] }
 0x390   :  { %3015 = vmatpush.msrb.mxu3 %v2818_v24  ;;  %v2435_v12 = vld [vmem:[#allocation20 + $0x3c8] sm:$0xff]  ;;  %v2789_v24 = vld [vmem:[#allocation20 + $0xed8] sm:$0xff] }
 0x391   :  { %2956 = vmatpush.msra.mxu0 %v2524_v42  ;;  %2976 = vmatpush.msra.mxu1 %v2620_v43  ;;  %v2333_v42 = vld [vmem:[#allocation20 + $0x98] sm:$0xff] }
 0x392   :  { %3016 = vmatpush.msrb.mxu3 %v2812_v28  ;;  %v2429_v43 = vld [vmem:[#allocation20 + $0x398] sm:$0xff]  ;;  %v2567_v28 = vld [vmem:[#allocation20 + $0x7e8] sm:$0xff] }
 0x393   :  { %2957 = vmatpush.msra.mxu0 %v2518_v46  ;;  %2977 = vmatpush.msra.mxu1 %v2614_v47  ;;  %v2321_v46 = vld [vmem:[#allocation20 + $0x38] sm:$0xff] }
 0x394   :  { %3017 = vmatpush.msrb.mxu3 %v2806_v20  ;;  %v2417_v47 = vld [vmem:[#allocation20 + $0x338] sm:$0xff]  ;;  %v2783_v20 = vld [vmem:[#allocation20 + $0xea8] sm:$0xff] }
 0x395   :  { %2958 = vmatpush.msra.mxu0 %v2512_v48  ;;  %2978 = vmatpush.msra.mxu1 %v2608_v51 }
 0x396   :  { %3018 = vmatpush.msrb.mxu3 %v2800_v32  ;;  %v2561_v32 = vld [vmem:[#allocation20 + $0x7b8] sm:$0xff] }
 0x397   :  { %2959 = vmatpush.msra.mxu0 %v2506_v16  ;;  %2979 = vmatpush.msra.mxu1 %v2602_v55  ;;  %v4668_v16 = vld [vmem:[#allocation19] sm:$0x3f] }
 0x398   :  { %3019 = vmatpush.msrb.mxu3 %v2794_v36  ;;  %v2290_v55 = vperm.slane %v4668_v16, 0  ;;  %v2291_v56 = vperm.slane %v4668_v16, 1  ;;  %v2293_v4 = vperm.slane %v4668_v16, 3  ;;  %v2295_v27 = vperm.slane %v4668_v16, 5 }
 0x399   :  { %3024 = vmatpush.msrb.mxu0 %v2405_v44  ;;  %3044 = vmatpush.msrb.mxu1 %v2501_v59 }
 0x39b   :  { %3025 = vmatpush.msrb.mxu0 %v2399_v58  ;;  %3045 = vmatpush.msrb.mxu1 %v2495_v62 }
 0x39d   :  { %3026 = vmatpush.msrb.mxu0 %v2393_v1  ;;  %3046 = vmatpush.msrb.mxu1 %v2489_v2  ;;  %v2693_v1 = vld [vmem:[#allocation20 + $0xbd8] sm:$0xff]  ;;  %v2292_v2 = vperm.slane %v4668_v16, 2 }
 0x39f   :  { %3027 = vmatpush.msrb.mxu0 %v2387_v6  ;;  %3047 = vmatpush.msrb.mxu1 %v2483_v7  ;;  %v2687_v6 = vld [vmem:[#allocation20 + $0xba8] sm:$0xff] }
 0x3a1   :  { %3028 = vmatpush.msrb.mxu0 %v2381_v9  ;;  %3048 = vmatpush.msrb.mxu1 %v2477_v10  ;;  %v2585_v10 = vld [vmem:[#allocation20 + $0x878] sm:$0xff] }
 0x3a3   :  { %3029 = vmatpush.msrb.mxu0 %v2375_v13  ;;  %3049 = vmatpush.msrb.mxu1 %v2471_v14  ;;  %v2579_v14 = vld [vmem:[#allocation20 + $0x848] sm:$0xff] }
 0x3a5   :  { %3030 = vmatpush.msrb.mxu0 %v2369_v18  ;;  %3050 = vmatpush.msrb.mxu1 %v2465_v22  ;;  %v2573_v22 = vld [vmem:[#allocation20 + $0x818] sm:$0xff] }
 0x3a7   :  { %3031 = vmatpush.msrb.mxu0 %v2363_v25  ;;  %3051 = vmatpush.msrb.mxu1 %v2459_v26  ;;  %v2885_v25 = vld [vmem:[#allocation20 + $0x11d8] sm:$0xff]  ;;  %v2294_v26 = vperm.slane %v4668_v16, 4 }
 0x3a8   :  { %v2633_v16 = vld [vmem:[#allocation20 + $0x9f8] sm:$0xff] }
 0x3a9   :  { %3032 = vmatpush.msrb.mxu0 %v2357_v3  ;;  %3052 = vmatpush.msrb.mxu1 %v2453_v29  ;;  %v2663_v3 = vld [vmem:[#allocation20 + $0xae8] sm:$0xff] }
 0x3ab   :  { %3033 = vmatpush.msrb.mxu0 %v2351_v40  ;;  %3053 = vmatpush.msrb.mxu1 %v2447_v21  ;;  %v2879_v40 = vld [vmem:[#allocation20 + $0x11a8] sm:$0xff] }
 0x3ad   :  { %3034 = vmatpush.msrb.mxu0 %v2345_v33  ;;  %3054 = vmatpush.msrb.mxu1 %v2441_v34  ;;  %v2657_v33 = vld [vmem:[#allocation20 + $0xab8] sm:$0xff] }
 0x3ae   :  { %v2777_v34 = vld [vmem:[#allocation20 + $0xe78] sm:$0xff] }
 0x3af   :  { %3035 = vmatpush.msrb.mxu0 %v2339_v37  ;;  %3055 = vmatpush.msrb.mxu1 %v2435_v12  ;;  %v2555_v12 = vld [vmem:[#allocation20 + $0x788] sm:$0xff] }
 0x3b1   :  { %3036 = vmatpush.msrb.mxu0 %v2333_v42  ;;  %3056 = vmatpush.msrb.mxu1 %v2429_v43  ;;  %v2867_v42 = vld [vmem:[#allocation20 + $0x1148] sm:$0xff] }
 0x3b3   :  { %3037 = vmatpush.msrb.mxu0 %v2327_v41  ;;  %3057 = vmatpush.msrb.mxu1 %v2423_v45  ;;  %v2549_v45 = vld [vmem:[#allocation20 + $0x758] sm:$0xff] }
 0x3b5   :  { %3038 = vmatpush.msrb.mxu0 %v2321_v46  ;;  %3058 = vmatpush.msrb.mxu1 %v2417_v47  ;;  %v2645_v46 = vld [vmem:[#allocation20 + $0xa58] sm:$0xff] }
 0x3b6   :  { %v2765_v47 = vld [vmem:[#allocation20 + $0xe18] sm:$0xff] }
 0x3b7   :  { %3039 = vmatpush.msrb.mxu0 %v2315_v49  ;;  %3059 = vmatpush.msrb.mxu1 %v2411_v50  ;;  %v2861_v49 = vld [vmem:[#allocation20 + $0x1118] sm:$0xff]  ;;  %v2543_v50 = vld [vmem:[#allocation20 + $0x728] sm:$0xff] }
 0x3d5   :  { %v2061_v38 = vpop.f32.mrf.mxu0  ;;  %v2081_v39 = vpop.f32.mrf.mxu1 }
 0x3dd   :  { %v2101_v48 = vpop.f32.mrf.mxu0  ;;  %v2121_v51 = vpop.f32.mrf.mxu1 }
 0x3e5   :  { %v2141_v52 = vpop.f32.mrf.mxu0  ;;  %v2161_v54 = vpop.f32.mrf.mxu1 }
 0x3ed   :  { %v2185_v57 = vpop.f32.mrf.mxu0  ;;  %v2205_v44 = vpop.f32.mrf.mxu1 }
 0x3ee   :  { %v2186_v59 = vadd.f32 %v2185_v57, %v2061_v38  ;;  %v2206_v60 = vadd.f32 %v2205_v44, %v2081_v39  ;;  %v2651_v38 = vld [vmem:[#allocation20 + $0xa88] sm:$0xff] }
 0x3ef   :  { %v2771_v39 = vld [vmem:[#allocation20 + $0xe48] sm:$0xff] }
 0x3f0   :  { %v2302_v61 = vadd.f32 %v2290_v55, %v2186_v59  ;;  %v2303_v58 = vadd.f32 %v2291_v56, %v2206_v60  ;;  %v2753_v55 = vld [vmem:[#allocation20 + $0xdb8] sm:$0xff]  ;;  %v2531_v57 = vld [vmem:[#allocation20 + $0x6c8] sm:$0xff] }
 0x3f1   :  { %v2849_v56 = vld [vmem:[#allocation20 + $0x10b8] sm:$0xff]  ;;  %v2627_v44 = vld [vmem:[#allocation20 + $0x9c8] sm:$0xff] }
 0x3f2   :  { %v4672_v62 = vmax.f32 %v2302_v61, 0.0  ;;  %v4674_v63 = vmax.f32 %v2303_v58, 0.0  ;;  %v2747_v59 = vld [vmem:[#allocation20 + $0xd88] sm:$0xff]  ;;  %v2525_v61 = vld [vmem:[#allocation20 + $0x698] sm:$0xff] }
 0x3f3   :  { %v2843_v60 = vld [vmem:[#allocation20 + $0x1088] sm:$0xff]  ;;  %v2621_v58 = vld [vmem:[#allocation20 + $0x998] sm:$0xff] }
 0x3f4   :  { %2920 = vmatmul.f32.vlgmr.msra.gmra.mxu2 %v4672_v62  ;;  %2940 = vmatmul.f32.vlgmr.msra.gmra.mxu3 %v4674_v63 }
 0x3f5   :  { %3064 = vmatpush.msra.mxu2 %v2597_v0  ;;  %3084 = vmatpush.msra.mxu3 %v2693_v1  ;;  %v2225_v7 = vpop.f32.mrf.mxu0  ;;  %v2245_v19 = vpop.f32.mrf.mxu1  ;;  %v2741_v0 = vld [vmem:[#allocation20 + $0xd58] sm:$0xff] }
 0x3f6   :  { %v2226_v8 = vadd.f32 %v2225_v7, %v2101_v48  ;;  %v2246_v9 = vadd.f32 %v2245_v19, %v2121_v51  ;;  %v2639_v48 = vld [vmem:[#allocation20 + $0xa28] sm:$0xff]  ;;  %v2837_v1 = vld [vmem:[#allocation20 + $0x1058] sm:$0xff] }
 0x3f7   :  { %3065 = vmatpush.msra.mxu2 %v2591_v5  ;;  %3085 = vmatpush.msra.mxu3 %v2687_v6  ;;  %v2759_v51 = vld [vmem:[#allocation20 + $0xde8] sm:$0xff]  ;;  %v2513_v7 = vld [vmem:[#allocation20 + $0x638] sm:$0xff] }
 0x3f8   :  { %v2304_v53 = vadd.f32 %v2292_v2, %v2226_v8  ;;  %v2305_v13 = vadd.f32 %v2293_v4, %v2246_v9  ;;  %v2519_v2 = vld [vmem:[#allocation20 + $0x668] sm:$0xff]  ;;  %v2609_v19 = vld [vmem:[#allocation20 + $0x938] sm:$0xff] }
 0x3f9   :  { %3066 = vmatpush.msra.mxu2 %v2585_v10  ;;  %3086 = vmatpush.msra.mxu3 %v2681_v11  ;;  %v2615_v4 = vld [vmem:[#allocation20 + $0x968] sm:$0xff]  ;;  %v2729_v8 = vld [vmem:[#allocation20 + $0xcf8] sm:$0xff] }
 0x3fa   :  { %v4680_v17 = vmax.f32 %v2304_v53, 0.0  ;;  %v4682_v18 = vmax.f32 %v2305_v13, 0.0  ;;  %v2735_v5 = vld [vmem:[#allocation20 + $0xd28] sm:$0xff]  ;;  %v2825_v9 = vld [vmem:[#allocation20 + $0xff8] sm:$0xff] }
 0x3fb   :  { %3067 = vmatpush.msra.mxu2 %v2579_v14  ;;  %3087 = vmatpush.msra.mxu3 %v2675_v15  ;;  %v2831_v6 = vld [vmem:[#allocation20 + $0x1028] sm:$0xff]  ;;  %v2406_v14 = vld [vmem:[#allocation20 + $0x2e0] sm:$0xff] }
 0x3fc   :  { %2960 = vmatmul.f32.vlgmr.msra.gmra.mxu0 %v4680_v17  ;;  %2980 = vmatmul.f32.vlgmr.msra.gmra.mxu1 %v4682_v18  ;;  %v2507_v10 = vld [vmem:[#allocation20 + $0x608] sm:$0xff]  ;;  %v2502_v15 = vld [vmem:[#allocation20 + $0x5e0] sm:$0xff] }
 0x3fd   :  { %3068 = vmatpush.msra.mxu2 %v2573_v22  ;;  %3088 = vmatpush.msra.mxu3 %v2669_v23  ;;  %v2265_v29 = vpop.f32.mrf.mxu0  ;;  %v2285_v30 = vpop.f32.mrf.mxu1  ;;  %v2603_v11 = vld [vmem:[#allocation20 + $0x908] sm:$0xff]  ;;  %v2717_v22 = vld [vmem:[#allocation20 + $0xc98] sm:$0xff] }
 0x3fe   :  { %3104 = vmatpush.msra.mxu0 %v2789_v24  ;;  %3124 = vmatpush.msra.mxu1 %v2885_v25  ;;  %v2266_v21 = vadd.f32 %v2265_v29, %v2141_v52  ;;  %v2286_v31 = vadd.f32 %v2285_v30, %v2161_v54  ;;  %v2855_v52 = vld [vmem:[#allocation20 + $0x10e8] sm:$0xff]  ;;  %v2537_v54 = vld [vmem:[#allocation20 + $0x6f8] sm:$0xff]  ;;  %v2400_v24 = vld [vmem:[#allocation20 + $0x2b0] sm:$0xff] }
 0x3ff   :  { %3069 = vmatpush.msra.mxu2 %v2567_v28  ;;  %3089 = vmatpush.msra.mxu3 %v2663_v3  ;;  %v2723_v53 = vld [vmem:[#allocation20 + $0xcc8] sm:$0xff]  ;;  %v2813_v23 = vld [vmem:[#allocation20 + $0xf98] sm:$0xff]  ;;  %v2496_v25 = vld [vmem:[#allocation20 + $0x5b0] sm:$0xff] }
 0x400   :  { %v2306_v36 = vadd.f32 %v2294_v26, %v2266_v21  ;;  %v2307_v37 = vadd.f32 %v2295_v27, %v2286_v31  ;;  %3105 = vmatpush.msra.mxu0 %v2783_v20  ;;  %3125 = vmatpush.msra.mxu1 %v2879_v40  ;;  %v2819_v13 = vld [vmem:[#allocation20 + $0xfc8] sm:$0xff]  ;;  %v2394_v28 = vld [vmem:[#allocation20 + $0x280] sm:$0xff]  ;;  %v2705_v29 = vld [vmem:[#allocation20 + $0xc38] sm:$0xff] }
 0x401   :  { %3070 = vmatpush.msra.mxu2 %v2561_v32  ;;  %3090 = vmatpush.msra.mxu3 %v2657_v33  ;;  %v2711_v26 = vld [vmem:[#allocation20 + $0xc68] sm:$0xff]  ;;  %v2490_v3 = vld [vmem:[#allocation20 + $0x580] sm:$0xff]  ;;  %v2801_v30 = vld [vmem:[#allocation20 + $0xf38] sm:$0xff] }
 0x402   :  { %v4688_v43 = vmax.f32 %v2306_v36, 0.0  ;;  %v4690_v41 = vmax.f32 %v2307_v37, 0.0  ;;  %3106 = vmatpush.msra.mxu0 %v2777_v34  ;;  %3126 = vmatpush.msra.mxu1 %v2873_v35  ;;  %v2807_v27 = vld [vmem:[#allocation20 + $0xf68] sm:$0xff]  ;;  %v2388_v20 = vld [vmem:[#allocation20 + $0x250] sm:$0xff]  ;;  %v2382_v32 = vld [vmem:[#allocation20 + $0x220] sm:$0xff] }
 0x403   :  { %3071 = vmatpush.msra.mxu2 %v2555_v12  ;;  %3091 = vmatpush.msra.mxu3 %v2651_v38  ;;  %v2484_v40 = vld [vmem:[#allocation20 + $0x550] sm:$0xff]  ;;  %v2699_v21 = vld [vmem:[#allocation20 + $0xc08] sm:$0xff]  ;;  %v2478_v33 = vld [vmem:[#allocation20 + $0x520] sm:$0xff] }
 0x404   :  { %3107 = vmatpush.msra.mxu0 %v2771_v39  ;;  %3127 = vmatpush.msra.mxu1 %v2867_v42  ;;  %v2795_v31 = vld [vmem:[#allocation20 + $0xf08] sm:$0xff]  ;;  %v2598_v34 = vld [vmem:[#allocation20 + $0x8e0] sm:$0xff]  ;;  %v2376_v36 = vld [vmem:[#allocation20 + $0x1f0] sm:$0xff] }
 0x405   :  { %3000 = vmatmul.f32.vlgmr.msrb.gmra.mxu2 %v4688_v43  ;;  %3020 = vmatmul.f32.vlgmr.msrb.gmra.mxu3 %v4690_v41  ;;  %v2694_v35 = vld [vmem:[#allocation20 + $0xbe0] sm:$0xff]  ;;  %v2472_v37 = vld [vmem:[#allocation20 + $0x4f0] sm:$0xff] }
 0x406   :  { %3040 = vmatmul.f32.vlgmr.msrb.gmra.mxu0 %v4672_v62  ;;  %3060 = vmatmul.f32.vlgmr.msrb.gmra.mxu1 %v4674_v63  ;;  %v2592_v12 = vld [vmem:[#allocation20 + $0x8b0] sm:$0xff]  ;;  %v2370_v39 = vld [vmem:[#allocation20 + $0x1c0] sm:$0xff] }
 0x407   :  { %3072 = vmatpush.msra.mxu2 %v2549_v45  ;;  %3092 = vmatpush.msra.mxu3 %v2645_v46  ;;  %v2688_v38 = vld [vmem:[#allocation20 + $0xbb0] sm:$0xff]  ;;  %v2466_v42 = vld [vmem:[#allocation20 + $0x4c0] sm:$0xff] }
 0x408   :  { %3108 = vmatpush.msra.mxu0 %v2765_v47  ;;  %3128 = vmatpush.msra.mxu1 %v2861_v49  ;;  %v2586_v45 = vld [vmem:[#allocation20 + $0x880] sm:$0xff]  ;;  %v2364_v47 = vld [vmem:[#allocation20 + $0x190] sm:$0xff] }
 0x409   :  { %3073 = vmatpush.msra.mxu2 %v2543_v50  ;;  %3093 = vmatpush.msra.mxu3 %v2639_v48  ;;  %v2682_v46 = vld [vmem:[#allocation20 + $0xb80] sm:$0xff]  ;;  %v2460_v49 = vld [vmem:[#allocation20 + $0x490] sm:$0xff] }
 0x40a   :  { %3109 = vmatpush.msra.mxu0 %v2759_v51  ;;  %3129 = vmatpush.msra.mxu1 %v2855_v52  ;;  %v2580_v50 = vld [vmem:[#allocation20 + $0x850] sm:$0xff]  ;;  %v2358_v51 = vld [vmem:[#allocation20 + $0x160] sm:$0xff] }
 0x40b   :  { %3074 = vmatpush.msra.mxu2 %v2537_v54  ;;  %3094 = vmatpush.msra.mxu3 %v2633_v16  ;;  %v2676_v48 = vld [vmem:[#allocation20 + $0xb50] sm:$0xff]  ;;  %v2454_v52 = vld [vmem:[#allocation20 + $0x460] sm:$0xff] }
 0x40c   :  { %3110 = vmatpush.msra.mxu0 %v2753_v55  ;;  %3130 = vmatpush.msra.mxu1 %v2849_v56  ;;  %v2574_v54 = vld [vmem:[#allocation20 + $0x820] sm:$0xff]  ;;  %v2352_v55 = vld [vmem:[#allocation20 + $0x130] sm:$0xff] }
 0x40d   :  { %3075 = vmatpush.msra.mxu2 %v2531_v57  ;;  %3095 = vmatpush.msra.mxu3 %v2627_v44  ;;  %v2670_v16 = vld [vmem:[#allocation20 + $0xb20] sm:$0xff]  ;;  %v2448_v56 = vld [vmem:[#allocation20 + $0x430] sm:$0xff] }
 0x40e   :  { %3111 = vmatpush.msra.mxu0 %v2747_v59  ;;  %3131 = vmatpush.msra.mxu1 %v2843_v60  ;;  %v2568_v57 = vld [vmem:[#allocation20 + $0x7f0] sm:$0xff]  ;;  %v2346_v59 = vld [vmem:[#allocation20 + $0x100] sm:$0xff] }
 0x40f   :  { %3076 = vmatpush.msra.mxu2 %v2525_v61  ;;  %3096 = vmatpush.msra.mxu3 %v2621_v58  ;;  %v2664_v44 = vld [vmem:[#allocation20 + $0xaf0] sm:$0xff]  ;;  %v2442_v60 = vld [vmem:[#allocation20 + $0x400] sm:$0xff] }
 0x410   :  { %3112 = vmatpush.msra.mxu0 %v2741_v0  ;;  %3132 = vmatpush.msra.mxu1 %v2837_v1  ;;  %v2562_v61 = vld [vmem:[#allocation20 + $0x7c0] sm:$0xff]  ;;  %v2340_v0 = vld [vmem:[#allocation20 + $0xd0] sm:$0xff] }
 0x411   :  { %3077 = vmatpush.msra.mxu2 %v2519_v2  ;;  %3097 = vmatpush.msra.mxu3 %v2615_v4  ;;  %v2658_v58 = vld [vmem:[#allocation20 + $0xac0] sm:$0xff]  ;;  %v2436_v1 = vld [vmem:[#allocation20 + $0x3d0] sm:$0xff] }
 0x412   :  { %3113 = vmatpush.msra.mxu0 %v2735_v5  ;;  %3133 = vmatpush.msra.mxu1 %v2831_v6  ;;  %v2556_v2 = vld [vmem:[#allocation20 + $0x790] sm:$0xff]  ;;  %v2334_v5 = vld [vmem:[#allocation20 + $0xa0] sm:$0xff] }
 0x413   :  { %3078 = vmatpush.msra.mxu2 %v2513_v7  ;;  %3098 = vmatpush.msra.mxu3 %v2609_v19  ;;  %v2652_v4 = vld [vmem:[#allocation20 + $0xa90] sm:$0xff]  ;;  %v2430_v6 = vld [vmem:[#allocation20 + $0x3a0] sm:$0xff] }
 0x414   :  { %3114 = vmatpush.msra.mxu0 %v2729_v8  ;;  %3134 = vmatpush.msra.mxu1 %v2825_v9  ;;  %v2550_v7 = vld [vmem:[#allocation20 + $0x760] sm:$0xff]  ;;  %v2328_v8 = vld [vmem:[#allocation20 + $0x70] sm:$0xff] }
 0x415   :  { %3079 = vmatpush.msra.mxu2 %v2507_v10  ;;  %3099 = vmatpush.msra.mxu3 %v2603_v11  ;;  %v2646_v19 = vld [vmem:[#allocation20 + $0xa60] sm:$0xff]  ;;  %v2424_v9 = vld [vmem:[#allocation20 + $0x370] sm:$0xff] }
 0x416   :  { %3115 = vmatpush.msra.mxu0 %v2723_v53  ;;  %3135 = vmatpush.msra.mxu1 %v2819_v13  ;;  %v2544_v10 = vld [vmem:[#allocation20 + $0x730] sm:$0xff]  ;;  %v2322_v53 = vld [vmem:[#allocation20 + $0x40] sm:$0xff] }
 0x417   :  { %3080 = vmatmul.f32.vlgmr.msra.gmra.mxu2 %v4680_v17  ;;  %3100 = vmatmul.f32.vlgmr.msra.gmra.mxu3 %v4682_v18  ;;  %v2640_v11 = vld [vmem:[#allocation20 + $0xa30] sm:$0xff]  ;;  %v2418_v13 = vld [vmem:[#allocation20 + $0x340] sm:$0xff] }
 0x418   :  { %3144 = vmatpush.msrb.mxu2 %v2406_v14  ;;  %3164 = vmatpush.msrb.mxu3 %v2502_v15  ;;  %v2538_v14 = vld [vmem:[#allocation20 + $0x700] sm:$0xff] }
 0x419   :  { %3116 = vmatpush.msra.mxu0 %v2717_v22  ;;  %3136 = vmatpush.msra.mxu1 %v2813_v23  ;;  %v2634_v15 = vld [vmem:[#allocation20 + $0xa00] sm:$0xff]  ;;  %v2316_v22 = vld [vmem:[#allocation20 + $0x10] sm:$0xff] }
 0x41a   :  { %3145 = vmatpush.msrb.mxu2 %v2400_v24  ;;  %3165 = vmatpush.msrb.mxu3 %v2496_v25  ;;  %v2412_v23 = vld [vmem:[#allocation20 + $0x310] sm:$0xff] }
 0x41b   :  { %3117 = vmatpush.msra.mxu0 %v2711_v26  ;;  %3137 = vmatpush.msra.mxu1 %v2807_v27  ;;  %v2532_v24 = vld [vmem:[#allocation20 + $0x6d0] sm:$0xff]  ;;  %v2790_v26 = vld [vmem:[#allocation20 + $0xee0] sm:$0xff] }
 0x41c   :  { %3146 = vmatpush.msrb.mxu2 %v2394_v28  ;;  %3166 = vmatpush.msrb.mxu3 %v2490_v3  ;;  %v2628_v25 = vld [vmem:[#allocation20 + $0x9d0] sm:$0xff]  ;;  %v2886_v27 = vld [vmem:[#allocation20 + $0x11e0] sm:$0xff] }
 0x41d   :  { %3118 = vmatpush.msra.mxu0 %v2705_v29  ;;  %3138 = vmatpush.msra.mxu1 %v2801_v30  ;;  %v2526_v28 = vld [vmem:[#allocation20 + $0x6a0] sm:$0xff]  ;;  %v2784_v29 = vld [vmem:[#allocation20 + $0xeb0] sm:$0xff] }
 0x41e   :  { %3147 = vmatpush.msrb.mxu2 %v2388_v20  ;;  %3167 = vmatpush.msrb.mxu3 %v2484_v40  ;;  %v2622_v3 = vld [vmem:[#allocation20 + $0x9a0] sm:$0xff]  ;;  %v2880_v30 = vld [vmem:[#allocation20 + $0x11b0] sm:$0xff] }
 0x41f   :  { %3119 = vmatpush.msra.mxu0 %v2699_v21  ;;  %3139 = vmatpush.msra.mxu1 %v2795_v31  ;;  %v2520_v20 = vld [vmem:[#allocation20 + $0x670] sm:$0xff]  ;;  %v2778_v21 = vld [vmem:[#allocation20 + $0xe80] sm:$0xff] }
 0x420   :  { %3120 = vmatmul.f32.vlgmr.msra.gmra.mxu0 %v4688_v43  ;;  %3140 = vmatmul.f32.vlgmr.msra.gmra.mxu1 %v4690_v41  ;;  %v2616_v40 = vld [vmem:[#allocation20 + $0x970] sm:$0xff]  ;;  %v2874_v31 = vld [vmem:[#allocation20 + $0x1180] sm:$0xff] }
 0x421   :  { %3148 = vmatpush.msrb.mxu2 %v2382_v32  ;;  %3168 = vmatpush.msrb.mxu3 %v2478_v33  ;;  %v2514_v32 = vld [vmem:[#allocation20 + $0x640] sm:$0xff] }
 0x422   :  { %3184 = vmatpush.msrb.mxu0 %v2598_v34  ;;  %3204 = vmatpush.msrb.mxu1 %v2694_v35  ;;  %v2610_v33 = vld [vmem:[#allocation20 + $0x940] sm:$0xff]  ;;  %v2772_v34 = vld [vmem:[#allocation20 + $0xe50] sm:$0xff] }
 0x423   :  { %3149 = vmatpush.msrb.mxu2 %v2376_v36  ;;  %3169 = vmatpush.msrb.mxu3 %v2472_v37  ;;  %v2868_v35 = vld [vmem:[#allocation20 + $0x1150] sm:$0xff] }
 0x424   :  { %3185 = vmatpush.msrb.mxu0 %v2592_v12  ;;  %3205 = vmatpush.msrb.mxu1 %v2688_v38  ;;  %v2508_v36 = vld [vmem:[#allocation20 + $0x610] sm:$0xff]  ;;  %v2766_v12 = vld [vmem:[#allocation20 + $0xe20] sm:$0xff] }
 0x425   :  { %3150 = vmatpush.msrb.mxu2 %v2370_v39  ;;  %3170 = vmatpush.msrb.mxu3 %v2466_v42  ;;  %v2604_v37 = vld [vmem:[#allocation20 + $0x910] sm:$0xff]  ;;  %v2862_v38 = vld [vmem:[#allocation20 + $0x1120] sm:$0xff]  ;;  %v2407_v39 = vld [vmem:[#allocation20 + $0x2e8] sm:$0xff] }
 0x426   :  { %3186 = vmatpush.msrb.mxu0 %v2586_v45  ;;  %3206 = vmatpush.msrb.mxu1 %v2682_v46  ;;  %v2503_v42 = vld [vmem:[#allocation20 + $0x5e8] sm:$0xff]  ;;  %v2760_v45 = vld [vmem:[#allocation20 + $0xdf0] sm:$0xff] }
 0x427   :  { %3151 = vmatpush.msrb.mxu2 %v2364_v47  ;;  %3171 = vmatpush.msrb.mxu3 %v2460_v49  ;;  %v2856_v46 = vld [vmem:[#allocation20 + $0x10f0] sm:$0xff]  ;;  %v2401_v47 = vld [vmem:[#allocation20 + $0x2b8] sm:$0xff] }
 0x428   :  { %3187 = vmatpush.msrb.mxu0 %v2580_v50  ;;  %3207 = vmatpush.msrb.mxu1 %v2676_v48  ;;  %v2497_v49 = vld [vmem:[#allocation20 + $0x5b8] sm:$0xff]  ;;  %v2754_v50 = vld [vmem:[#allocation20 + $0xdc0] sm:$0xff] }
 0x429   :  { %3152 = vmatpush.msrb.mxu2 %v2358_v51  ;;  %3172 = vmatpush.msrb.mxu3 %v2454_v52  ;;  %v2850_v48 = vld [vmem:[#allocation20 + $0x10c0] sm:$0xff]  ;;  %v2395_v51 = vld [vmem:[#allocation20 + $0x288] sm:$0xff] }
 0x42a   :  { %3188 = vmatpush.msrb.mxu0 %v2574_v54  ;;  %3208 = vmatpush.msrb.mxu1 %v2670_v16  ;;  %v2491_v52 = vld [vmem:[#allocation20 + $0x588] sm:$0xff]  ;;  %v2748_v54 = vld [vmem:[#allocation20 + $0xd90] sm:$0xff] }
 0x42b   :  { %3153 = vmatpush.msrb.mxu2 %v2352_v55  ;;  %3173 = vmatpush.msrb.mxu3 %v2448_v56  ;;  %v2844_v16 = vld [vmem:[#allocation20 + $0x1090] sm:$0xff]  ;;  %v2389_v55 = vld [vmem:[#allocation20 + $0x258] sm:$0xff] }
 0x42c   :  { %3189 = vmatpush.msrb.mxu0 %v2568_v57  ;;  %3209 = vmatpush.msrb.mxu1 %v2664_v44  ;;  %v2485_v56 = vld [vmem:[#allocation20 + $0x558] sm:$0xff]  ;;  %v2742_v57 = vld [vmem:[#allocation20 + $0xd60] sm:$0xff] }
 0x42d   :  { %3154 = vmatpush.msrb.mxu2 %v2346_v59  ;;  %3174 = vmatpush.msrb.mxu3 %v2442_v60  ;;  %v2838_v44 = vld [vmem:[#allocation20 + $0x1060] sm:$0xff]  ;;  %v2383_v59 = vld [vmem:[#allocation20 + $0x228] sm:$0xff] }
 0x42e   :  { %3190 = vmatpush.msrb.mxu0 %v2562_v61  ;;  %3210 = vmatpush.msrb.mxu1 %v2658_v58  ;;  %v2479_v60 = vld [vmem:[#allocation20 + $0x528] sm:$0xff]  ;;  %v2736_v61 = vld [vmem:[#allocation20 + $0xd30] sm:$0xff] }
 0x42f   :  { %3155 = vmatpush.msrb.mxu2 %v2340_v0  ;;  %3175 = vmatpush.msrb.mxu3 %v2436_v1  ;;  %v2832_v58 = vld [vmem:[#allocation20 + $0x1030] sm:$0xff]  ;;  %v2377_v0 = vld [vmem:[#allocation20 + $0x1f8] sm:$0xff] }
 0x430   :  { %3191 = vmatpush.msrb.mxu0 %v2556_v2  ;;  %3211 = vmatpush.msrb.mxu1 %v2652_v4  ;;  %v2473_v1 = vld [vmem:[#allocation20 + $0x4f8] sm:$0xff]  ;;  %v2730_v2 = vld [vmem:[#allocation20 + $0xd00] sm:$0xff] }
 0x431   :  { %3156 = vmatpush.msrb.mxu2 %v2334_v5  ;;  %3176 = vmatpush.msrb.mxu3 %v2430_v6  ;;  %v2826_v4 = vld [vmem:[#allocation20 + $0x1000] sm:$0xff]  ;;  %v2371_v5 = vld [vmem:[#allocation20 + $0x1c8] sm:$0xff] }
 0x432   :  { %3192 = vmatpush.msrb.mxu0 %v2550_v7  ;;  %3212 = vmatpush.msrb.mxu1 %v2646_v19  ;;  %v2467_v6 = vld [vmem:[#allocation20 + $0x4c8] sm:$0xff]  ;;  %v2724_v7 = vld [vmem:[#allocation20 + $0xcd0] sm:$0xff] }
 0x433   :  { %3157 = vmatpush.msrb.mxu2 %v2328_v8  ;;  %3177 = vmatpush.msrb.mxu3 %v2424_v9  ;;  %v2820_v19 = vld [vmem:[#allocation20 + $0xfd0] sm:$0xff]  ;;  %v2365_v8 = vld [vmem:[#allocation20 + $0x198] sm:$0xff] }
 0x434   :  { %3193 = vmatpush.msrb.mxu0 %v2544_v10  ;;  %3213 = vmatpush.msrb.mxu1 %v2640_v11  ;;  %v2461_v9 = vld [vmem:[#allocation20 + $0x498] sm:$0xff]  ;;  %v2718_v10 = vld [vmem:[#allocation20 + $0xca0] sm:$0xff] }
 0x435   :  { %3158 = vmatpush.msrb.mxu2 %v2322_v53  ;;  %3178 = vmatpush.msrb.mxu3 %v2418_v13  ;;  %v2814_v11 = vld [vmem:[#allocation20 + $0xfa0] sm:$0xff]  ;;  %v2359_v53 = vld [vmem:[#allocation20 + $0x168] sm:$0xff] }
 0x436   :  { %3194 = vmatpush.msrb.mxu0 %v2538_v14  ;;  %3214 = vmatpush.msrb.mxu1 %v2634_v15  ;;  %v2455_v13 = vld [vmem:[#allocation20 + $0x468] sm:$0xff]  ;;  %v2712_v14 = vld [vmem:[#allocation20 + $0xc70] sm:$0xff] }
 0x437   :  { %3159 = vmatpush.msrb.mxu2 %v2316_v22  ;;  %3179 = vmatpush.msrb.mxu3 %v2412_v23  ;;  %v2808_v15 = vld [vmem:[#allocation20 + $0xf70] sm:$0xff]  ;;  %v2353_v22 = vld [vmem:[#allocation20 + $0x138] sm:$0xff] }
 0x438   :  { %3195 = vmatpush.msrb.mxu0 %v2532_v24  ;;  %3215 = vmatpush.msrb.mxu1 %v2628_v25  ;;  %v2449_v23 = vld [vmem:[#allocation20 + $0x438] sm:$0xff]  ;;  %v2706_v24 = vld [vmem:[#allocation20 + $0xc40] sm:$0xff] }
 0x439   :  { %3160 = vmatmul.f32.vlgmr.msrb.gmra.mxu2 %v4672_v62  ;;  %3180 = vmatmul.f32.vlgmr.msrb.gmra.mxu3 %v4674_v63  ;;  %v2802_v25 = vld [vmem:[#allocation20 + $0xf40] sm:$0xff] }
 0x43a   :  { %3224 = vmatpush.msra.mxu2 %v2790_v26  ;;  %3244 = vmatpush.msra.mxu3 %v2886_v27  ;;  %v2347_v26 = vld [vmem:[#allocation20 + $0x108] sm:$0xff] }
 0x43b   :  { %3196 = vmatpush.msrb.mxu0 %v2526_v28  ;;  %3216 = vmatpush.msrb.mxu1 %v2622_v3  ;;  %v2443_v27 = vld [vmem:[#allocation20 + $0x408] sm:$0xff]  ;;  %v2700_v28 = vld [vmem:[#allocation20 + $0xc10] sm:$0xff] }
 0x43c   :  { %3225 = vmatpush.msra.mxu2 %v2784_v29  ;;  %3245 = vmatpush.msra.mxu3 %v2880_v30  ;;  %v2796_v3 = vld [vmem:[#allocation20 + $0xf10] sm:$0xff]  ;;  %v2341_v29 = vld [vmem:[#allocation20 + $0xd8] sm:$0xff] }
 0x43d   :  { %3197 = vmatpush.msrb.mxu0 %v2520_v20  ;;  %3217 = vmatpush.msrb.mxu1 %v2616_v40  ;;  %v2437_v30 = vld [vmem:[#allocation20 + $0x3d8] sm:$0xff]  ;;  %v2599_v20 = vld [vmem:[#allocation20 + $0x8e8] sm:$0xff] }
 0x43e   :  { %3226 = vmatpush.msra.mxu2 %v2778_v21  ;;  %3246 = vmatpush.msra.mxu3 %v2874_v31  ;;  %v2695_v40 = vld [vmem:[#allocation20 + $0xbe8] sm:$0xff] }
 0x43f   :  { %3198 = vmatpush.msrb.mxu0 %v2514_v32  ;;  %3218 = vmatpush.msrb.mxu1 %v2610_v33  ;;  %v2335_v21 = vld [vmem:[#allocation20 + $0xa8] sm:$0xff]  ;;  %v2593_v32 = vld [vmem:[#allocation20 + $0x8b8] sm:$0xff] }
 0x440   :  { %3227 = vmatpush.msra.mxu2 %v2772_v34  ;;  %3247 = vmatpush.msra.mxu3 %v2868_v35  ;;  %v2431_v31 = vld [vmem:[#allocation20 + $0x3a8] sm:$0xff]  ;;  %v2689_v33 = vld [vmem:[#allocation20 + $0xbb8] sm:$0xff] }
 0x441   :  { %3199 = vmatpush.msrb.mxu0 %v2508_v36  ;;  %3219 = vmatpush.msrb.mxu1 %v2604_v37  ;;  %v2329_v34 = vld [vmem:[#allocation20 + $0x78] sm:$0xff]  ;;  %v2587_v36 = vld [vmem:[#allocation20 + $0x888] sm:$0xff] }
 0x442   :  { %3200 = vmatmul.f32.vlgmr.msrb.gmra.mxu0 %v4680_v17  ;;  %3220 = vmatmul.f32.vlgmr.msrb.gmra.mxu1 %v4682_v18  ;;  %v2425_v35 = vld [vmem:[#allocation20 + $0x378] sm:$0xff]  ;;  %v2683_v37 = vld [vmem:[#allocation20 + $0xb88] sm:$0xff] }
 0x443   :  { %3228 = vmatpush.msra.mxu2 %v2766_v12  ;;  %3248 = vmatpush.msra.mxu3 %v2862_v38  ;;  %v2323_v12 = vld [vmem:[#allocation20 + $0x48] sm:$0xff] }
 0x444   :  { %3264 = vmatpush.msra.mxu0 %v2407_v39  ;;  %3284 = vmatpush.msra.mxu1 %v2503_v42  ;;  %v2419_v38 = vld [vmem:[#allocation20 + $0x348] sm:$0xff]  ;;  %v2581_v39 = vld [vmem:[#allocation20 + $0x858] sm:$0xff] }
 0x445   :  { %3229 = vmatpush.msra.mxu2 %v2760_v45  ;;  %3249 = vmatpush.msra.mxu3 %v2856_v46  ;;  %v2677_v42 = vld [vmem:[#allocation20 + $0xb58] sm:$0xff] }
 0x446   :  { %3265 = vmatpush.msra.mxu0 %v2401_v47  ;;  %3285 = vmatpush.msra.mxu1 %v2497_v49  ;;  %v2317_v45 = vld [vmem:[#allocation20 + $0x18] sm:$0xff]  ;;  %v2575_v47 = vld [vmem:[#allocation20 + $0x828] sm:$0xff] }
 0x447   :  { %3230 = vmatpush.msra.mxu2 %v2754_v50  ;;  %3250 = vmatpush.msra.mxu3 %v2850_v48  ;;  %v2413_v46 = vld [vmem:[#allocation20 + $0x318] sm:$0xff]  ;;  %v2671_v49 = vld [vmem:[#allocation20 + $0xb28] sm:$0xff] }
 0x448   :  { %3266 = vmatpush.msra.mxu0 %v2395_v51  ;;  %3286 = vmatpush.msra.mxu1 %v2491_v52  ;;  %v2791_v50 = vld [vmem:[#allocation20 + $0xee8] sm:$0xff]  ;;  %v2569_v51 = vld [vmem:[#allocation20 + $0x7f8] sm:$0xff] }
 0x449   :  { %3231 = vmatpush.msra.mxu2 %v2748_v54  ;;  %3251 = vmatpush.msra.mxu3 %v2844_v16  ;;  %v2887_v48 = vld [vmem:[#allocation20 + $0x11e8] sm:$0xff]  ;;  %v2665_v52 = vld [vmem:[#allocation20 + $0xaf8] sm:$0xff] }
 0x44a   :  { %3267 = vmatpush.msra.mxu0 %v2389_v55  ;;  %3287 = vmatpush.msra.mxu1 %v2485_v56  ;;  %v2785_v54 = vld [vmem:[#allocation20 + $0xeb8] sm:$0xff]  ;;  %v2563_v55 = vld [vmem:[#allocation20 + $0x7c8] sm:$0xff] }
 0x44b   :  { %3232 = vmatpush.msra.mxu2 %v2742_v57  ;;  %3252 = vmatpush.msra.mxu3 %v2838_v44  ;;  %v2881_v16 = vld [vmem:[#allocation20 + $0x11b8] sm:$0xff]  ;;  %v2659_v56 = vld [vmem:[#allocation20 + $0xac8] sm:$0xff] }
 0x44c   :  { %3268 = vmatpush.msra.mxu0 %v2383_v59  ;;  %3288 = vmatpush.msra.mxu1 %v2479_v60  ;;  %v2779_v57 = vld [vmem:[#allocation20 + $0xe88] sm:$0xff]  ;;  %v2557_v59 = vld [vmem:[#allocation20 + $0x798] sm:$0xff] }
 0x44d   :  { %3233 = vmatpush.msra.mxu2 %v2736_v61  ;;  %3253 = vmatpush.msra.mxu3 %v2832_v58  ;;  %v2875_v44 = vld [vmem:[#allocation20 + $0x1188] sm:$0xff]  ;;  %v2653_v60 = vld [vmem:[#allocation20 + $0xa98] sm:$0xff] }
 0x44e   :  { %3269 = vmatpush.msra.mxu0 %v2377_v0  ;;  %3289 = vmatpush.msra.mxu1 %v2473_v1  ;;  %v2773_v61 = vld [vmem:[#allocation20 + $0xe58] sm:$0xff]  ;;  %v2551_v0 = vld [vmem:[#allocation20 + $0x768] sm:$0xff] }
 0x44f   :  { %3234 = vmatpush.msra.mxu2 %v2730_v2  ;;  %3254 = vmatpush.msra.mxu3 %v2826_v4  ;;  %v2869_v58 = vld [vmem:[#allocation20 + $0x1158] sm:$0xff]  ;;  %v2647_v1 = vld [vmem:[#allocation20 + $0xa68] sm:$0xff] }
 0x450   :  { %3270 = vmatpush.msra.mxu0 %v2371_v5  ;;  %3290 = vmatpush.msra.mxu1 %v2467_v6  ;;  %v2767_v2 = vld [vmem:[#allocation20 + $0xe28] sm:$0xff]  ;;  %v2545_v5 = vld [vmem:[#allocation20 + $0x738] sm:$0xff] }
 0x451   :  { %3235 = vmatpush.msra.mxu2 %v2724_v7  ;;  %3255 = vmatpush.msra.mxu3 %v2820_v19  ;;  %v2863_v4 = vld [vmem:[#allocation20 + $0x1128] sm:$0xff]  ;;  %v2641_v6 = vld [vmem:[#allocation20 + $0xa38] sm:$0xff] }
 0x452   :  { %3271 = vmatpush.msra.mxu0 %v2365_v8  ;;  %3291 = vmatpush.msra.mxu1 %v2461_v9  ;;  %v2761_v7 = vld [vmem:[#allocation20 + $0xdf8] sm:$0xff]  ;;  %v2539_v8 = vld [vmem:[#allocation20 + $0x708] sm:$0xff] }
 0x453   :  { %3236 = vmatpush.msra.mxu2 %v2718_v10  ;;  %3256 = vmatpush.msra.mxu3 %v2814_v11  ;;  %v2857_v19 = vld [vmem:[#allocation20 + $0x10f8] sm:$0xff]  ;;  %v2635_v9 = vld [vmem:[#allocation20 + $0xa08] sm:$0xff] }
 0x454   :  { %3272 = vmatpush.msra.mxu0 %v2359_v53  ;;  %3292 = vmatpush.msra.mxu1 %v2455_v13  ;;  %v2755_v10 = vld [vmem:[#allocation20 + $0xdc8] sm:$0xff]  ;;  %v2533_v53 = vld [vmem:[#allocation20 + $0x6d8] sm:$0xff] }
 0x455   :  { %3237 = vmatpush.msra.mxu2 %v2712_v14  ;;  %3257 = vmatpush.msra.mxu3 %v2808_v15  ;;  %v2851_v11 = vld [vmem:[#allocation20 + $0x10c8] sm:$0xff]  ;;  %v2629_v13 = vld [vmem:[#allocation20 + $0x9d8] sm:$0xff] }
 0x456   :  { %3273 = vmatpush.msra.mxu0 %v2353_v22  ;;  %3293 = vmatpush.msra.mxu1 %v2449_v23  ;;  %v2749_v14 = vld [vmem:[#allocation20 + $0xd98] sm:$0xff]  ;;  %v2527_v22 = vld [vmem:[#allocation20 + $0x6a8] sm:$0xff] }
 0x457   :  { %3238 = vmatpush.msra.mxu2 %v2706_v24  ;;  %3258 = vmatpush.msra.mxu3 %v2802_v25  ;;  %v2845_v15 = vld [vmem:[#allocation20 + $0x1098] sm:$0xff]  ;;  %v2623_v23 = vld [vmem:[#allocation20 + $0x9a8] sm:$0xff] }
 0x458   :  { %3274 = vmatpush.msra.mxu0 %v2347_v26  ;;  %3294 = vmatpush.msra.mxu1 %v2443_v27  ;;  %v2743_v24 = vld [vmem:[#allocation20 + $0xd68] sm:$0xff]  ;;  %v2521_v26 = vld [vmem:[#allocation20 + $0x678] sm:$0xff] }
 0x459   :  { %3239 = vmatpush.msra.mxu2 %v2700_v28  ;;  %3259 = vmatpush.msra.mxu3 %v2796_v3  ;;  %v2839_v25 = vld [vmem:[#allocation20 + $0x1068] sm:$0xff]  ;;  %v2617_v27 = vld [vmem:[#allocation20 + $0x978] sm:$0xff] }
 0x45a   :  { %3275 = vmatpush.msra.mxu0 %v2341_v29  ;;  %3295 = vmatpush.msra.mxu1 %v2437_v30  ;;  %v2737_v28 = vld [vmem:[#allocation20 + $0xd38] sm:$0xff]  ;;  %v2515_v29 = vld [vmem:[#allocation20 + $0x648] sm:$0xff] }
 0x45b   :  { %3240 = vmatmul.f32.vlgmr.msra.gmra.mxu2 %v4688_v43  ;;  %3260 = vmatmul.f32.vlgmr.msra.gmra.mxu3 %v4690_v41  ;;  %v2833_v3 = vld [vmem:[#allocation20 + $0x1038] sm:$0xff]  ;;  %v2611_v30 = vld [vmem:[#allocation20 + $0x948] sm:$0xff] }
 0x45c   :  { %3304 = vmatpush.msrb.mxu2 %v2599_v20  ;;  %3324 = vmatpush.msrb.mxu3 %v2695_v40  ;;  %v2731_v20 = vld [vmem:[#allocation20 + $0xd08] sm:$0xff] }
 0x45d   :  { %3276 = vmatpush.msra.mxu0 %v2335_v21  ;;  %3296 = vmatpush.msra.mxu1 %v2431_v31  ;;  %v2827_v40 = vld [vmem:[#allocation20 + $0x1008] sm:$0xff]  ;;  %v2509_v21 = vld [vmem:[#allocation20 + $0x618] sm:$0xff] }
 0x45e   :  { %3305 = vmatpush.msrb.mxu2 %v2593_v32  ;;  %3325 = vmatpush.msrb.mxu3 %v2689_v33  ;;  %v2605_v31 = vld [vmem:[#allocation20 + $0x918] sm:$0xff] }
 0x45f   :  { %3277 = vmatpush.msra.mxu0 %v2329_v34  ;;  %3297 = vmatpush.msra.mxu1 %v2425_v35  ;;  %v2725_v32 = vld [vmem:[#allocation20 + $0xcd8] sm:$0xff]  ;;  %v2408_v34 = vld [vmem:[#allocation20 + $0x2f0] sm:$0xff] }
 0x460   :  { %3306 = vmatpush.msrb.mxu2 %v2587_v36  ;;  %3326 = vmatpush.msrb.mxu3 %v2683_v37  ;;  %v2821_v33 = vld [vmem:[#allocation20 + $0xfd8] sm:$0xff]  ;;  %v2504_v35 = vld [vmem:[#allocation20 + $0x5f0] sm:$0xff]  ;;  %v2719_v36 = vld [vmem:[#allocation20 + $0xca8] sm:$0xff] }
 0x461   :  { %3278 = vmatpush.msra.mxu0 %v2323_v12  ;;  %3298 = vmatpush.msra.mxu1 %v2419_v38  ;;  %v2815_v37 = vld [vmem:[#allocation20 + $0xfa8] sm:$0xff]  ;;  %v2402_v12 = vld [vmem:[#allocation20 + $0x2c0] sm:$0xff] }
 0x462   :  { %3307 = vmatpush.msrb.mxu2 %v2581_v39  ;;  %3327 = vmatpush.msrb.mxu3 %v2677_v42  ;;  %v2498_v38 = vld [vmem:[#allocation20 + $0x5c0] sm:$0xff]  ;;  %v2713_v39 = vld [vmem:[#allocation20 + $0xc78] sm:$0xff] }
 0x463   :  { %3279 = vmatpush.msra.mxu0 %v2317_v45  ;;  %3299 = vmatpush.msra.mxu1 %v2413_v46  ;;  %v2809_v42 = vld [vmem:[#allocation20 + $0xf78] sm:$0xff]  ;;  %v2396_v45 = vld [vmem:[#allocation20 + $0x290] sm:$0xff] }
 0x464   :  { %3280 = vmatmul.f32.vlgmr.msra.gmra.mxu0 %v4672_v62  ;;  %3300 = vmatmul.f32.vlgmr.msra.gmra.mxu1 %v4674_v63  ;;  %v2492_v46 = vld [vmem:[#allocation20 + $0x590] sm:$0xff] }
 0x465   :  { %3308 = vmatpush.msrb.mxu2 %v2575_v47  ;;  %3328 = vmatpush.msrb.mxu3 %v2671_v49  ;;  %v2707_v47 = vld [vmem:[#allocation20 + $0xc48] sm:$0xff] }
 0x466   :  { %3344 = vmatpush.msrb.mxu0 %v2791_v50  ;;  %3364 = vmatpush.msrb.mxu1 %v2887_v48  ;;  %v2803_v49 = vld [vmem:[#allocation20 + $0xf48] sm:$0xff]  ;;  %v2390_v50 = vld [vmem:[#allocation20 + $0x260] sm:$0xff] }
 0x467   :  { %3309 = vmatpush.msrb.mxu2 %v2569_v51  ;;  %3329 = vmatpush.msrb.mxu3 %v2665_v52  ;;  %v2486_v48 = vld [vmem:[#allocation20 + $0x560] sm:$0xff]  ;;  %v2701_v51 = vld [vmem:[#allocation20 + $0xc18] sm:$0xff] }
 0x468   :  { %3345 = vmatpush.msrb.mxu0 %v2785_v54  ;;  %3365 = vmatpush.msrb.mxu1 %v2881_v16  ;;  %v2797_v52 = vld [vmem:[#allocation20 + $0xf18] sm:$0xff]  ;;  %v2384_v54 = vld [vmem:[#allocation20 + $0x230] sm:$0xff] }
 0x469   :  { %3310 = vmatpush.msrb.mxu2 %v2563_v55  ;;  %3330 = vmatpush.msrb.mxu3 %v2659_v56  ;;  %v2480_v16 = vld [vmem:[#allocation20 + $0x530] sm:$0xff] }
 0x46a   :  { %3346 = vmatpush.msrb.mxu0 %v2779_v57  ;;  %3366 = vmatpush.msrb.mxu1 %v2875_v44  ;;  %v2600_v55 = vld [vmem:[#allocation20 + $0x8f0] sm:$0xff]  ;;  %v2378_v57 = vld [vmem:[#allocation20 + $0x200] sm:$0xff] }
 0x46b   :  { %3311 = vmatpush.msrb.mxu2 %v2557_v59  ;;  %3331 = vmatpush.msrb.mxu3 %v2653_v60  ;;  %v2696_v56 = vld [vmem:[#allocation20 + $0xbf0] sm:$0xff]  ;;  %v2474_v44 = vld [vmem:[#allocation20 + $0x500] sm:$0xff] }
 0x46c   :  { %3347 = vmatpush.msrb.mxu0 %v2773_v61  ;;  %3367 = vmatpush.msrb.mxu1 %v2869_v58  ;;  %v2594_v59 = vld [vmem:[#allocation20 + $0x8c0] sm:$0xff]  ;;  %v2372_v61 = vld [vmem:[#allocation20 + $0x1d0] sm:$0xff] }
 0x46d   :  { %3312 = vmatpush.msrb.mxu2 %v2551_v0  ;;  %3332 = vmatpush.msrb.mxu3 %v2647_v1  ;;  %v2690_v60 = vld [vmem:[#allocation20 + $0xbc0] sm:$0xff]  ;;  %v2468_v58 = vld [vmem:[#allocation20 + $0x4d0] sm:$0xff] }
 0x46e   :  { %3348 = vmatpush.msrb.mxu0 %v2767_v2  ;;  %3368 = vmatpush.msrb.mxu1 %v2863_v4  ;;  %v2588_v0 = vld [vmem:[#allocation20 + $0x890] sm:$0xff]  ;;  %v2366_v2 = vld [vmem:[#allocation20 + $0x1a0] sm:$0xff] }
 0x46f   :  { %3313 = vmatpush.msrb.mxu2 %v2545_v5  ;;  %3333 = vmatpush.msrb.mxu3 %v2641_v6  ;;  %v2684_v1 = vld [vmem:[#allocation20 + $0xb90] sm:$0xff]  ;;  %v2462_v4 = vld [vmem:[#allocation20 + $0x4a0] sm:$0xff] }
 0x470   :  { %3349 = vmatpush.msrb.mxu0 %v2761_v7  ;;  %3369 = vmatpush.msrb.mxu1 %v2857_v19  ;;  %v2582_v5 = vld [vmem:[#allocation20 + $0x860] sm:$0xff]  ;;  %v2360_v7 = vld [vmem:[#allocation20 + $0x170] sm:$0xff] }
 0x471   :  { %3314 = vmatpush.msrb.mxu2 %v2539_v8  ;;  %3334 = vmatpush.msrb.mxu3 %v2635_v9  ;;  %v2678_v6 = vld [vmem:[#allocation20 + $0xb60] sm:$0xff]  ;;  %v2456_v19 = vld [vmem:[#allocation20 + $0x470] sm:$0xff] }
 0x472   :  { %3350 = vmatpush.msrb.mxu0 %v2755_v10  ;;  %3370 = vmatpush.msrb.mxu1 %v2851_v11  ;;  %v2576_v8 = vld [vmem:[#allocation20 + $0x830] sm:$0xff]  ;;  %v2354_v10 = vld [vmem:[#allocation20 + $0x140] sm:$0xff] }
 0x473   :  { %3315 = vmatpush.msrb.mxu2 %v2533_v53  ;;  %3335 = vmatpush.msrb.mxu3 %v2629_v13  ;;  %v2672_v9 = vld [vmem:[#allocation20 + $0xb30] sm:$0xff]  ;;  %v2450_v11 = vld [vmem:[#allocation20 + $0x440] sm:$0xff] }
 0x474   :  { %3351 = vmatpush.msrb.mxu0 %v2749_v14  ;;  %3371 = vmatpush.msrb.mxu1 %v2845_v15  ;;  %v2570_v53 = vld [vmem:[#allocation20 + $0x800] sm:$0xff]  ;;  %v2348_v14 = vld [vmem:[#allocation20 + $0x110] sm:$0xff] }
 0x475   :  { %3316 = vmatpush.msrb.mxu2 %v2527_v22  ;;  %3336 = vmatpush.msrb.mxu3 %v2623_v23  ;;  %v2666_v13 = vld [vmem:[#allocation20 + $0xb00] sm:$0xff]  ;;  %v2444_v15 = vld [vmem:[#allocation20 + $0x410] sm:$0xff] }
 0x476   :  { %3352 = vmatpush.msrb.mxu0 %v2743_v24  ;;  %3372 = vmatpush.msrb.mxu1 %v2839_v25  ;;  %v2564_v22 = vld [vmem:[#allocation20 + $0x7d0] sm:$0xff]  ;;  %v2342_v24 = vld [vmem:[#allocation20 + $0xe0] sm:$0xff] }
 0x477   :  { %3317 = vmatpush.msrb.mxu2 %v2521_v26  ;;  %3337 = vmatpush.msrb.mxu3 %v2617_v27  ;;  %v2660_v23 = vld [vmem:[#allocation20 + $0xad0] sm:$0xff]  ;;  %v2438_v25 = vld [vmem:[#allocation20 + $0x3e0] sm:$0xff] }
 0x478   :  { %3353 = vmatpush.msrb.mxu0 %v2737_v28  ;;  %3373 = vmatpush.msrb.mxu1 %v2833_v3  ;;  %v2558_v26 = vld [vmem:[#allocation20 + $0x7a0] sm:$0xff]  ;;  %v2336_v28 = vld [vmem:[#allocation20 + $0xb0] sm:$0xff] }
 0x479   :  { %3318 = vmatpush.msrb.mxu2 %v2515_v29  ;;  %3338 = vmatpush.msrb.mxu3 %v2611_v30  ;;  %v2654_v27 = vld [vmem:[#allocation20 + $0xaa0] sm:$0xff]  ;;  %v2432_v3 = vld [vmem:[#allocation20 + $0x3b0] sm:$0xff] }
 0x47a   :  { %3354 = vmatpush.msrb.mxu0 %v2731_v20  ;;  %3374 = vmatpush.msrb.mxu1 %v2827_v40  ;;  %v2552_v29 = vld [vmem:[#allocation20 + $0x770] sm:$0xff]  ;;  %v2330_v20 = vld [vmem:[#allocation20 + $0x80] sm:$0xff] }
 0x47b   :  { %3319 = vmatpush.msrb.mxu2 %v2509_v21  ;;  %3339 = vmatpush.msrb.mxu3 %v2605_v31  ;;  %v2648_v30 = vld [vmem:[#allocation20 + $0xa70] sm:$0xff]  ;;  %v2426_v40 = vld [vmem:[#allocation20 + $0x380] sm:$0xff] }
 0x47c   :  { %3355 = vmatpush.msrb.mxu0 %v2725_v32  ;;  %3375 = vmatpush.msrb.mxu1 %v2821_v33  ;;  %v2546_v21 = vld [vmem:[#allocation20 + $0x740] sm:$0xff]  ;;  %v2324_v32 = vld [vmem:[#allocation20 + $0x50] sm:$0xff] }
 0x47d   :  { %3320 = vmatmul.f32.vlgmr.msrb.gmra.mxu2 %v4680_v17  ;;  %3340 = vmatmul.f32.vlgmr.msrb.gmra.mxu3 %v4682_v18  ;;  %v2642_v31 = vld [vmem:[#allocation20 + $0xa40] sm:$0xff]  ;;  %v2420_v33 = vld [vmem:[#allocation20 + $0x350] sm:$0xff] }
 0x47e   :  { %3384 = vmatpush.msra.mxu2 %v2408_v34  ;;  %3404 = vmatpush.msra.mxu3 %v2504_v35  ;;  %v2540_v34 = vld [vmem:[#allocation20 + $0x710] sm:$0xff] }
 0x47f   :  { %3356 = vmatpush.msrb.mxu0 %v2719_v36  ;;  %3376 = vmatpush.msrb.mxu1 %v2815_v37  ;;  %v2636_v35 = vld [vmem:[#allocation20 + $0xa10] sm:$0xff]  ;;  %v2318_v36 = vld [vmem:[#allocation20 + $0x20] sm:$0xff] }
 0x480   :  { %3385 = vmatpush.msra.mxu2 %v2402_v12  ;;  %3405 = vmatpush.msra.mxu3 %v2498_v38  ;;  %v2414_v37 = vld [vmem:[#allocation20 + $0x320] sm:$0xff] }
 0x481   :  { %3357 = vmatpush.msrb.mxu0 %v2713_v39  ;;  %3377 = vmatpush.msrb.mxu1 %v2809_v42  ;;  %v2534_v12 = vld [vmem:[#allocation20 + $0x6e0] sm:$0xff]  ;;  %v2792_v39 = vld [vmem:[#allocation20 + $0xef0] sm:$0xff] }
 0x482   :  { %3386 = vmatpush.msra.mxu2 %v2396_v45  ;;  %3406 = vmatpush.msra.mxu3 %v2492_v46  ;;  %v2630_v38 = vld [vmem:[#allocation20 + $0x9e0] sm:$0xff]  ;;  %v2888_v42 = vld [vmem:[#allocation20 + $0x11f0] sm:$0xff] }
 0x483   :  { %3358 = vmatpush.msrb.mxu0 %v2707_v47  ;;  %3378 = vmatpush.msrb.mxu1 %v2803_v49  ;;  %v2528_v45 = vld [vmem:[#allocation20 + $0x6b0] sm:$0xff]  ;;  %v2786_v47 = vld [vmem:[#allocation20 + $0xec0] sm:$0xff] }
 0x484   :  { %3387 = vmatpush.msra.mxu2 %v2390_v50  ;;  %3407 = vmatpush.msra.mxu3 %v2486_v48  ;;  %v2624_v46 = vld [vmem:[#allocation20 + $0x9b0] sm:$0xff]  ;;  %v2882_v49 = vld [vmem:[#allocation20 + $0x11c0] sm:$0xff] }
 0x485   :  { %3359 = vmatpush.msrb.mxu0 %v2701_v51  ;;  %3379 = vmatpush.msrb.mxu1 %v2797_v52  ;;  %v2522_v50 = vld [vmem:[#allocation20 + $0x680] sm:$0xff]  ;;  %v2780_v51 = vld [vmem:[#allocation20 + $0xe90] sm:$0xff] }
 0x486   :  { %3360 = vmatmul.f32.vlgmr.msrb.gmra.mxu0 %v4688_v43  ;;  %3380 = vmatmul.f32.vlgmr.msrb.gmra.mxu1 %v4690_v41  ;;  %v2618_v48 = vld [vmem:[#allocation20 + $0x980] sm:$0xff]  ;;  %v2876_v52 = vld [vmem:[#allocation20 + $0x1190] sm:$0xff] }
 0x487   :  { %3388 = vmatpush.msra.mxu2 %v2384_v54  ;;  %3408 = vmatpush.msra.mxu3 %v2480_v16  ;;  %v2516_v54 = vld [vmem:[#allocation20 + $0x650] sm:$0xff] }
 0x488   :  { %3424 = vmatpush.msra.mxu0 %v2600_v55  ;;  %3444 = vmatpush.msra.mxu1 %v2696_v56  ;;  %v2612_v16 = vld [vmem:[#allocation20 + $0x950] sm:$0xff]  ;;  %v2774_v55 = vld [vmem:[#allocation20 + $0xe60] sm:$0xff] }
 0x489   :  { %3389 = vmatpush.msra.mxu2 %v2378_v57  ;;  %3409 = vmatpush.msra.mxu3 %v2474_v44  ;;  %v2870_v56 = vld [vmem:[#allocation20 + $0x1160] sm:$0xff] }
 0x48a   :  { %3425 = vmatpush.msra.mxu0 %v2594_v59  ;;  %3445 = vmatpush.msra.mxu1 %v2690_v60  ;;  %v2510_v57 = vld [vmem:[#allocation20 + $0x620] sm:$0xff]  ;;  %v2768_v59 = vld [vmem:[#allocation20 + $0xe30] sm:$0xff] }
 0x48b   :  { %3390 = vmatpush.msra.mxu2 %v2372_v61  ;;  %3410 = vmatpush.msra.mxu3 %v2468_v58  ;;  %v2606_v44 = vld [vmem:[#allocation20 + $0x920] sm:$0xff]  ;;  %v2864_v60 = vld [vmem:[#allocation20 + $0x1130] sm:$0xff]  ;;  %v2409_v61 = vld [vmem:[#allocation20 + $0x2f8] sm:$0xff] }
 0x48c   :  { %3426 = vmatpush.msra.mxu0 %v2588_v0  ;;  %3446 = vmatpush.msra.mxu1 %v2684_v1  ;;  %v2505_v58 = vld [vmem:[#allocation20 + $0x5f8] sm:$0xff]  ;;  %v2762_v0 = vld [vmem:[#allocation20 + $0xe00] sm:$0xff] }
 0x48d   :  { %3391 = vmatpush.msra.mxu2 %v2366_v2  ;;  %3411 = vmatpush.msra.mxu3 %v2462_v4  ;;  %v2858_v1 = vld [vmem:[#allocation20 + $0x1100] sm:$0xff]  ;;  %v2403_v2 = vld [vmem:[#allocation20 + $0x2c8] sm:$0xff] }
 0x48e   :  { %3427 = vmatpush.msra.mxu0 %v2582_v5  ;;  %3447 = vmatpush.msra.mxu1 %v2678_v6  ;;  %v2499_v4 = vld [vmem:[#allocation20 + $0x5c8] sm:$0xff]  ;;  %v2756_v5 = vld [vmem:[#allocation20 + $0xdd0] sm:$0xff] }
 0x48f   :  { %3392 = vmatpush.msra.mxu2 %v2360_v7  ;;  %3412 = vmatpush.msra.mxu3 %v2456_v19  ;;  %v2852_v6 = vld [vmem:[#allocation20 + $0x10d0] sm:$0xff]  ;;  %v2397_v7 = vld [vmem:[#allocation20 + $0x298] sm:$0xff] }
 0x490   :  { %3428 = vmatpush.msra.mxu0 %v2576_v8  ;;  %3448 = vmatpush.msra.mxu1 %v2672_v9  ;;  %v2493_v19 = vld [vmem:[#allocation20 + $0x598] sm:$0xff]  ;;  %v2750_v8 = vld [vmem:[#allocation20 + $0xda0] sm:$0xff] }
 0x491   :  { %3393 = vmatpush.msra.mxu2 %v2354_v10  ;;  %3413 = vmatpush.msra.mxu3 %v2450_v11  ;;  %v2846_v9 = vld [vmem:[#allocation20 + $0x10a0] sm:$0xff]  ;;  %v2391_v10 = vld [vmem:[#allocation20 + $0x268] sm:$0xff] }
 0x492   :  { %3429 = vmatpush.msra.mxu0 %v2570_v53  ;;  %3449 = vmatpush.msra.mxu1 %v2666_v13  ;;  %v2487_v11 = vld [vmem:[#allocation20 + $0x568] sm:$0xff]  ;;  %v2744_v53 = vld [vmem:[#allocation20 + $0xd70] sm:$0xff] }
 0x493   :  { %3394 = vmatpush.msra.mxu2 %v2348_v14  ;;  %3414 = vmatpush.msra.mxu3 %v2444_v15  ;;  %v2840_v13 = vld [vmem:[#allocation20 + $0x1070] sm:$0xff]  ;;  %v2385_v14 = vld [vmem:[#allocation20 + $0x238] sm:$0xff] }
 0x494   :  { %3430 = vmatpush.msra.mxu0 %v2564_v22  ;;  %3450 = vmatpush.msra.mxu1 %v2660_v23  ;;  %v2481_v15 = vld [vmem:[#allocation20 + $0x538] sm:$0xff]  ;;  %v2738_v22 = vld [vmem:[#allocation20 + $0xd40] sm:$0xff] }
 0x495   :  { %3395 = vmatpush.msra.mxu2 %v2342_v24  ;;  %3415 = vmatpush.msra.mxu3 %v2438_v25  ;;  %v2834_v23 = vld [vmem:[#allocation20 + $0x1040] sm:$0xff]  ;;  %v2379_v24 = vld [vmem:[#allocation20 + $0x208] sm:$0xff] }
 0x496   :  { %3431 = vmatpush.msra.mxu0 %v2558_v26  ;;  %3451 = vmatpush.msra.mxu1 %v2654_v27  ;;  %v2475_v25 = vld [vmem:[#allocation20 + $0x508] sm:$0xff]  ;;  %v2732_v26 = vld [vmem:[#allocation20 + $0xd10] sm:$0xff] }
 0x497   :  { %3396 = vmatpush.msra.mxu2 %v2336_v28  ;;  %3416 = vmatpush.msra.mxu3 %v2432_v3  ;;  %v2828_v27 = vld [vmem:[#allocation20 + $0x1010] sm:$0xff]  ;;  %v2373_v28 = vld [vmem:[#allocation20 + $0x1d8] sm:$0xff] }
 0x498   :  { %3432 = vmatpush.msra.mxu0 %v2552_v29  ;;  %3452 = vmatpush.msra.mxu1 %v2648_v30  ;;  %v2469_v3 = vld [vmem:[#allocation20 + $0x4d8] sm:$0xff]  ;;  %v2726_v29 = vld [vmem:[#allocation20 + $0xce0] sm:$0xff] }
 0x499   :  { %3397 = vmatpush.msra.mxu2 %v2330_v20  ;;  %3417 = vmatpush.msra.mxu3 %v2426_v40  ;;  %v2822_v30 = vld [vmem:[#allocation20 + $0xfe0] sm:$0xff]  ;;  %v2367_v20 = vld [vmem:[#allocation20 + $0x1a8] sm:$0xff] }
 0x49a   :  { %3433 = vmatpush.msra.mxu0 %v2546_v21  ;;  %3453 = vmatpush.msra.mxu1 %v2642_v31  ;;  %v2463_v40 = vld [vmem:[#allocation20 + $0x4a8] sm:$0xff]  ;;  %v2720_v21 = vld [vmem:[#allocation20 + $0xcb0] sm:$0xff] }
 0x49b   :  { %3398 = vmatpush.msra.mxu2 %v2324_v32  ;;  %3418 = vmatpush.msra.mxu3 %v2420_v33  ;;  %v2816_v31 = vld [vmem:[#allocation20 + $0xfb0] sm:$0xff]  ;;  %v2361_v32 = vld [vmem:[#allocation20 + $0x178] sm:$0xff] }
 0x49c   :  { %3434 = vmatpush.msra.mxu0 %v2540_v34  ;;  %3454 = vmatpush.msra.mxu1 %v2636_v35  ;;  %v2457_v33 = vld [vmem:[#allocation20 + $0x478] sm:$0xff]  ;;  %v2714_v34 = vld [vmem:[#allocation20 + $0xc80] sm:$0xff] }
 0x49d   :  { %3399 = vmatpush.msra.mxu2 %v2318_v36  ;;  %3419 = vmatpush.msra.mxu3 %v2414_v37  ;;  %v2810_v35 = vld [vmem:[#allocation20 + $0xf80] sm:$0xff]  ;;  %v2355_v36 = vld [vmem:[#allocation20 + $0x148] sm:$0xff] }
 0x49e   :  { %3435 = vmatpush.msra.mxu0 %v2534_v12  ;;  %3455 = vmatpush.msra.mxu1 %v2630_v38  ;;  %v2451_v37 = vld [vmem:[#allocation20 + $0x448] sm:$0xff]  ;;  %v2708_v12 = vld [vmem:[#allocation20 + $0xc50] sm:$0xff] }
 0x49f   :  { %3400 = vmatmul.f32.vlgmr.msra.gmra.mxu2 %v4672_v62  ;;  %3420 = vmatmul.f32.vlgmr.msra.gmra.mxu3 %v4674_v63  ;;  %v2804_v38 = vld [vmem:[#allocation20 + $0xf50] sm:$0xff] }
 0x4a0   :  { %3464 = vmatpush.msrb.mxu2 %v2792_v39  ;;  %3484 = vmatpush.msrb.mxu3 %v2888_v42  ;;  %v2349_v39 = vld [vmem:[#allocation20 + $0x118] sm:$0xff] }
 0x4a1   :  { %3436 = vmatpush.msra.mxu0 %v2528_v45  ;;  %3456 = vmatpush.msra.mxu1 %v2624_v46  ;;  %v2445_v42 = vld [vmem:[#allocation20 + $0x418] sm:$0xff]  ;;  %v2702_v45 = vld [vmem:[#allocation20 + $0xc20] sm:$0xff] }
 0x4a2   :  { %3465 = vmatpush.msrb.mxu2 %v2786_v47  ;;  %3485 = vmatpush.msrb.mxu3 %v2882_v49  ;;  %v2798_v46 = vld [vmem:[#allocation20 + $0xf20] sm:$0xff]  ;;  %v2343_v47 = vld [vmem:[#allocation20 + $0xe8] sm:$0xff] }
 0x4a3   :  { %3437 = vmatpush.msra.mxu0 %v2522_v50  ;;  %3457 = vmatpush.msra.mxu1 %v2618_v48  ;;  %v2439_v49 = vld [vmem:[#allocation20 + $0x3e8] sm:$0xff]  ;;  %v2601_v50 = vld [vmem:[#allocation20 + $0x8f8] sm:$0xff] }
 0x4a4   :  { %3466 = vmatpush.msrb.mxu2 %v2780_v51  ;;  %3486 = vmatpush.msrb.mxu3 %v2876_v52  ;;  %v2697_v48 = vld [vmem:[#allocation20 + $0xbf8] sm:$0xff] }
 0x4a5   :  { %3438 = vmatpush.msra.mxu0 %v2516_v54  ;;  %3458 = vmatpush.msra.mxu1 %v2612_v16  ;;  %v2337_v51 = vld [vmem:[#allocation20 + $0xb8] sm:$0xff]  ;;  %v2595_v54 = vld [vmem:[#allocation20 + $0x8c8] sm:$0xff] }
 0x4a6   :  { %3467 = vmatpush.msrb.mxu2 %v2774_v55  ;;  %3487 = vmatpush.msrb.mxu3 %v2870_v56  ;;  %v2433_v52 = vld [vmem:[#allocation20 + $0x3b8] sm:$0xff]  ;;  %v2691_v16 = vld [vmem:[#allocation20 + $0xbc8] sm:$0xff] }
 0x4a7   :  { %3439 = vmatpush.msra.mxu0 %v2510_v57  ;;  %3459 = vmatpush.msra.mxu1 %v2606_v44  ;;  %v2331_v55 = vld [vmem:[#allocation20 + $0x88] sm:$0xff]  ;;  %v2589_v57 = vld [vmem:[#allocation20 + $0x898] sm:$0xff] }
 0x4a8   :  { %3440 = vmatmul.f32.vlgmr.msra.gmra.mxu0 %v4680_v17  ;;  %3460 = vmatmul.f32.vlgmr.msra.gmra.mxu1 %v4682_v18  ;;  %v2427_v56 = vld [vmem:[#allocation20 + $0x388] sm:$0xff]  ;;  %v2685_v44 = vld [vmem:[#allocation20 + $0xb98] sm:$0xff] }
 0x4a9   :  { %3468 = vmatpush.msrb.mxu2 %v2768_v59  ;;  %3488 = vmatpush.msrb.mxu3 %v2864_v60  ;;  %v2325_v59 = vld [vmem:[#allocation20 + $0x58] sm:$0xff] }
 0x4aa   :  { %3504 = vmatpush.msrb.mxu0 %v2409_v61  ;;  %3524 = vmatpush.msrb.mxu1 %v2505_v58  ;;  %v2421_v60 = vld [vmem:[#allocation20 + $0x358] sm:$0xff]  ;;  %v2583_v61 = vld [vmem:[#allocation20 + $0x868] sm:$0xff] }
 0x4ab   :  { %3469 = vmatpush.msrb.mxu2 %v2762_v0  ;;  %3489 = vmatpush.msrb.mxu3 %v2858_v1  ;;  %v2679_v58 = vld [vmem:[#allocation20 + $0xb68] sm:$0xff] }
 0x4ac   :  { %3505 = vmatpush.msrb.mxu0 %v2403_v2  ;;  %3525 = vmatpush.msrb.mxu1 %v2499_v4  ;;  %v2319_v0 = vld [vmem:[#allocation20 + $0x28] sm:$0xff]  ;;  %v2577_v2 = vld [vmem:[#allocation20 + $0x838] sm:$0xff] }
 0x4ad   :  { %3470 = vmatpush.msrb.mxu2 %v2756_v5  ;;  %3490 = vmatpush.msrb.mxu3 %v2852_v6  ;;  %v2415_v1 = vld [vmem:[#allocation20 + $0x328] sm:$0xff]  ;;  %v2673_v4 = vld [vmem:[#allocation20 + $0xb38] sm:$0xff] }
 0x4ae   :  { %3506 = vmatpush.msrb.mxu0 %v2397_v7  ;;  %3526 = vmatpush.msrb.mxu1 %v2493_v19  ;;  %v2793_v5 = vld [vmem:[#allocation20 + $0xef8] sm:$0xff]  ;;  %v2571_v7 = vld [vmem:[#allocation20 + $0x808] sm:$0xff] }
 0x4af   :  { %3471 = vmatpush.msrb.mxu2 %v2750_v8  ;;  %3491 = vmatpush.msrb.mxu3 %v2846_v9  ;;  %v2889_v6 = vld [vmem:[#allocation20 + $0x11f8] sm:$0xff]  ;;  %v2667_v19 = vld [vmem:[#allocation20 + $0xb08] sm:$0xff] }
 0x4b0   :  { %3507 = vmatpush.msrb.mxu0 %v2391_v10  ;;  %3527 = vmatpush.msrb.mxu1 %v2487_v11  ;;  %v2787_v8 = vld [vmem:[#allocation20 + $0xec8] sm:$0xff]  ;;  %v2565_v10 = vld [vmem:[#allocation20 + $0x7d8] sm:$0xff] }
 0x4b1   :  { %3472 = vmatpush.msrb.mxu2 %v2744_v53  ;;  %3492 = vmatpush.msrb.mxu3 %v2840_v13  ;;  %v2883_v9 = vld [vmem:[#allocation20 + $0x11c8] sm:$0xff]  ;;  %v2661_v11 = vld [vmem:[#allocation20 + $0xad8] sm:$0xff] }
 0x4b2   :  { %3508 = vmatpush.msrb.mxu0 %v2385_v14  ;;  %3528 = vmatpush.msrb.mxu1 %v2481_v15  ;;  %v2781_v53 = vld [vmem:[#allocation20 + $0xe98] sm:$0xff]  ;;  %v2559_v14 = vld [vmem:[#allocation20 + $0x7a8] sm:$0xff] }
 0x4b3   :  { %3473 = vmatpush.msrb.mxu2 %v2738_v22  ;;  %3493 = vmatpush.msrb.mxu3 %v2834_v23  ;;  %v2877_v13 = vld [vmem:[#allocation20 + $0x1198] sm:$0xff]  ;;  %v2871_v15 = vld [vmem:[#allocation20 + $0x1168] sm:$0xff] }
 0x4b4   :  { %3509 = vmatpush.msrb.mxu0 %v2379_v24  ;;  %3529 = vmatpush.msrb.mxu1 %v2475_v25  ;;  %v2553_v22 = vld [vmem:[#allocation20 + $0x778] sm:$0xff] }
 0x4b5   :  { %3474 = vmatpush.msrb.mxu2 %v2732_v26  ;;  %3494 = vmatpush.msrb.mxu3 %v2828_v27  ;;  %v2649_v23 = vld [vmem:[#allocation20 + $0xa78] sm:$0xff]  ;;  %v2547_v26 = vld [vmem:[#allocation20 + $0x748] sm:$0xff] }
 0x4b6   :  { %3510 = vmatpush.msrb.mxu0 %v2373_v28  ;;  %3530 = vmatpush.msrb.mxu1 %v2469_v3  ;;  %v2769_v24 = vld [vmem:[#allocation20 + $0xe38] sm:$0xff]  ;;  %v2643_v27 = vld [vmem:[#allocation20 + $0xa48] sm:$0xff] }
 0x4b7   :  { %3475 = vmatpush.msrb.mxu2 %v2726_v29  ;;  %3495 = vmatpush.msrb.mxu3 %v2822_v30  ;;  %v2865_v25 = vld [vmem:[#allocation20 + $0x1138] sm:$0xff]  ;;  %v2763_v28 = vld [vmem:[#allocation20 + $0xe08] sm:$0xff] }
 0x4b8   :  { %3511 = vmatpush.msrb.mxu0 %v2367_v20  ;;  %3531 = vmatpush.msrb.mxu1 %v2463_v40  ;;  %v2859_v3 = vld [vmem:[#allocation20 + $0x1108] sm:$0xff]  ;;  %v2541_v29 = vld [vmem:[#allocation20 + $0x718] sm:$0xff] }
 0x4b9   :  { %3476 = vmatpush.msrb.mxu2 %v2720_v21  ;;  %3496 = vmatpush.msrb.mxu3 %v2816_v31  ;;  %v2637_v30 = vld [vmem:[#allocation20 + $0xa18] sm:$0xff]  ;;  %v4720_v21 = vpop.f32.mrf.mxu0  ;;  %v2535_v31 = vld [vmem:[#allocation20 + $0x6e8] sm:$0xff] }
 0x4ba   :  { %3512 = vmatpush.msrb.mxu0 %v2361_v32  ;;  %3532 = vmatpush.msrb.mxu1 %v2457_v33  ;;  %v2757_v20 = vld [vmem:[#allocation20 + $0xdd8] sm:$0xff]  ;;  %v2631_v32 = vld [vmem:[#allocation20 + $0x9e8] sm:$0xff] }
 0x4bb   :  { %3477 = vmatpush.msrb.mxu2 %v2714_v34  ;;  %3497 = vmatpush.msrb.mxu3 %v2810_v35  ;;  %v2853_v40 = vld [vmem:[#allocation20 + $0x10d8] sm:$0xff]  ;;  %v2751_v33 = vld [vmem:[#allocation20 + $0xda8] sm:$0xff]  ;;  %v4722_v35 = vpop.f32.mrf.mxu2 }
 0x4bc   :  { %3513 = vmatpush.msrb.mxu0 %v2355_v36  ;;  %3533 = vmatpush.msrb.mxu1 %v2451_v37  ;;  %v2847_v34 = vld [vmem:[#allocation20 + $0x10a8] sm:$0xff]  ;;  %v2529_v36 = vld [vmem:[#allocation20 + $0x6b8] sm:$0xff] }
 0x4bd   :  { %3478 = vmatpush.msrb.mxu2 %v2708_v12  ;;  %3498 = vmatpush.msrb.mxu3 %v2804_v38  ;;  %v2625_v37 = vld [vmem:[#allocation20 + $0x9b8] sm:$0xff] }
 0x4be   :  { %3514 = vmatpush.msrb.mxu0 %v2349_v39  ;;  %3534 = vmatpush.msrb.mxu1 %v2445_v42  ;;  %v2745_v12 = vld [vmem:[#allocation20 + $0xd78] sm:$0xff]  ;;  %v4724_v39 = vpop.f32.mrf.mxu3  ;;  %v2523_v42 = vld [vmem:[#allocation20 + $0x688] sm:$0xff] }
 0x4bf   :  { %3479 = vmatpush.msrb.mxu2 %v2702_v45  ;;  %3499 = vmatpush.msrb.mxu3 %v2798_v46  ;;  %v2841_v38 = vld [vmem:[#allocation20 + $0x1078] sm:$0xff]  ;;  %v2619_v45 = vld [vmem:[#allocation20 + $0x988] sm:$0xff] }
 0x4c0   :  { %3515 = vmatpush.msrb.mxu0 %v2343_v47  ;;  %3535 = vmatpush.msrb.mxu1 %v2439_v49  ;;  %v2739_v46 = vld [vmem:[#allocation20 + $0xd48] sm:$0xff]  ;;  %v4726_v49 = vpop.f32.mrf.mxu1 }
 0x4c1   :  { %3480 = vmatmul.f32.vlgmr.msrb.gmra.mxu2 %v4688_v43  ;;  %3500 = vmatmul.f32.vlgmr.msrb.gmra.mxu3 %v4690_v41  ;;  %v2835_v47 = vld [vmem:[#allocation20 + $0x1048] sm:$0xff] }
 0x4c2   :  { %3544 = vmatpush.msra.mxu2 %v2601_v50  ;;  %3564 = vmatpush.msra.mxu3 %v2697_v48  ;;  %v2517_v50 = vld [vmem:[#allocation20 + $0x658] sm:$0xff] }
 0x4c3   :  { %3516 = vmatpush.msrb.mxu0 %v2337_v51  ;;  %3536 = vmatpush.msrb.mxu1 %v2433_v52  ;;  %v2613_v48 = vld [vmem:[#allocation20 + $0x958] sm:$0xff] }
 0x4c4   :  { %3545 = vmatpush.msra.mxu2 %v2595_v54  ;;  %3565 = vmatpush.msra.mxu3 %v2691_v16  ;;  %v2733_v51 = vld [vmem:[#allocation20 + $0xd18] sm:$0xff]  ;;  %v2511_v54 = vld [vmem:[#allocation20 + $0x628] sm:$0xff] }
 0x4c5   :  { %3517 = vmatpush.msrb.mxu0 %v2331_v55  ;;  %3537 = vmatpush.msrb.mxu1 %v2427_v56  ;;  %v2829_v52 = vld [vmem:[#allocation20 + $0x1018] sm:$0xff]  ;;  %v2607_v16 = vld [vmem:[#allocation20 + $0x928] sm:$0xff] }
 0x4c6   :  { %3546 = vmatpush.msra.mxu2 %v2589_v57  ;;  %3566 = vmatpush.msra.mxu3 %v2685_v44  ;;  %v2727_v55 = vld [vmem:[#allocation20 + $0xce8] sm:$0xff]  ;;  %v3041_v57 = vpop.f32.mrf.mxu0  ;;  %v4728_v44 = vpop.f32.mrf.mxu2 }
 0x4c7   :  { %3518 = vmatpush.msrb.mxu0 %v2325_v59  ;;  %3538 = vmatpush.msrb.mxu1 %v2421_v60  ;;  %v2823_v56 = vld [vmem:[#allocation20 + $0xfe8] sm:$0xff]  ;;  %v3645_v59 = vld [vmem:[#allocation23 + $0x78] sm:$0xff] }
 0x4c8   :  { %3547 = vmatpush.msra.mxu2 %v2583_v61  ;;  %3567 = vmatpush.msra.mxu3 %v2679_v58  ;;  %v3661_v60 = vld [vmem:[#allocation23 + $0xf8] sm:$0xff]  ;;  %v4730_v61 = vpop.f32.mrf.mxu3 }
 0x4c9   :  { %3519 = vmatpush.msrb.mxu0 %v2319_v0  ;;  %3539 = vmatpush.msrb.mxu1 %v2415_v1  ;;  %v2721_v58 = vld [vmem:[#allocation20 + $0xcb8] sm:$0xff] }
 0x4ca   :  { %3520 = vmatmul.f32.vlgmr.msrb.gmra.mxu0 %v4672_v62  ;;  %3540 = vmatmul.f32.vlgmr.msrb.gmra.mxu1 %v4674_v63  ;;  %v2655_v62 = vld [vmem:[#allocation20 + $0xaa8] sm:$0xff]  ;;  %v2817_v0 = vld [vmem:[#allocation20 + $0xfb8] sm:$0xff] }
 0x4cb   :  { %3548 = vmatpush.msra.mxu2 %v2577_v2  ;;  %3568 = vmatpush.msra.mxu3 %v2673_v4  ;;  %v2775_v63 = vld [vmem:[#allocation20 + $0xe68] sm:$0xff]  ;;  %v3644_v1 = vld [vmem:[#allocation23 + $0x70] sm:$0xff] }
 0x4cc   :  { %3584 = vmatpush.msra.mxu0 %v2793_v5  ;;  %3604 = vmatpush.msra.mxu1 %v2889_v6  ;;  %v3660_v2 = vld [vmem:[#allocation23 + $0xf0] sm:$0xff]  ;;  %v2715_v4 = vld [vmem:[#allocation20 + $0xc88] sm:$0xff]  ;;  %v4734_v6 = vld [vmem:[#allocation22] sm:$0x3f] }
 0x4cd   :  { %3549 = vmatpush.msra.mxu2 %v2571_v7  ;;  %3569 = vmatpush.msra.mxu3 %v2667_v19  ;;  %v2811_v5 = vld [vmem:[#allocation20 + $0xf88] sm:$0xff] }
 0x4ce   :  { %3585 = vmatpush.msra.mxu0 %v2787_v8  ;;  %3605 = vmatpush.msra.mxu1 %v2883_v9  ;;  %v3643_v7 = vld [vmem:[#allocation23 + $0x68] sm:$0xff]  ;;  %v3061_v8 = vpop.f32.mrf.mxu1  ;;  %v2709_v9 = vld [vmem:[#allocation20 + $0xc58] sm:$0xff] }
 0x4cf   :  { %3550 = vmatpush.msra.mxu2 %v2565_v10  ;;  %3570 = vmatpush.msra.mxu3 %v2661_v11  ;;  %v3659_v19 = vld [vmem:[#allocation23 + $0xe8] sm:$0xff]  ;;  %v2805_v10 = vld [vmem:[#allocation20 + $0xf58] sm:$0xff]  ;;  %v2892_v11 = vperm.slane %v4734_v6, 0 }
 0x4d0   :  { %3586 = vmatpush.msra.mxu0 %v2781_v53  ;;  %3606 = vmatpush.msra.mxu1 %v2877_v13  ;;  %v3081_v53 = vpop.f32.mrf.mxu2  ;;  %v4737_v13 = vpop.f32.mrf.mxu0 }
 0x4d1   :  { %3551 = vmatpush.msra.mxu2 %v2559_v14  ;;  %3571 = vmatpush.msra.mxu3 %v2655_v62  ;;  %v2703_v14 = vld [vmem:[#allocation20 + $0xc28] sm:$0xff] }
 0x4d2   :  { %3587 = vmatpush.msra.mxu0 %v2775_v63  ;;  %3607 = vmatpush.msra.mxu1 %v2871_v15  ;;  %v2799_v62 = vld [vmem:[#allocation20 + $0xf28] sm:$0xff]  ;;  %v2893_v63 = vperm.slane %v4734_v6, 1  ;;  %v4740_v15 = vpop.f32.mrf.mxu3 }
 0x4d3   :  { %3552 = vmatpush.msra.mxu2 %v2553_v22  ;;  %3572 = vmatpush.msra.mxu3 %v2649_v23  ;;  %v3641_v22 = vld [vmem:[#allocation23 + $0x58] sm:$0xff] }
 0x4d4   :  { %3588 = vmatpush.msra.mxu0 %v2769_v24  ;;  %3608 = vmatpush.msra.mxu1 %v2865_v25  ;;  %v3657_v23 = vld [vmem:[#allocation23 + $0xd8] sm:$0xff] }
 0x4d5   :  { %3553 = vmatpush.msra.mxu2 %v2547_v26  ;;  %3573 = vmatpush.msra.mxu3 %v2643_v27  ;;  %v3677_v24 = vld [vmem:[#allocation23 + $0x178] sm:$0xff]  ;;  %v2922_v26 = vadd.f32 %v4722_v35, %v2892_v11  ;;  %v3640_v27 = vld [vmem:[#allocation23 + $0x50] sm:$0xff]  ;;  %v3638_v35 = vld [vmem:[#allocation23 + $0x40] sm:$0xff] }
 0x4d6   :  { %3589 = vmatpush.msra.mxu0 %v2763_v28  ;;  %3609 = vmatpush.msra.mxu1 %v2859_v3  ;;  %v3693_v25 = vld [vmem:[#allocation23 + $0x1f8] sm:$0xff]  ;;  %v3656_v28 = vld [vmem:[#allocation23 + $0xd0] sm:$0xff]  ;;  %v3042_v3 = vadd.f32 %v3041_v57, %v2893_v63 }
 0x4d7   :  { %3554 = vmatpush.msra.mxu2 %v2541_v29  ;;  %3574 = vmatpush.msra.mxu3 %v2637_v30  ;;  %v3676_v29 = vld [vmem:[#allocation23 + $0x170] sm:$0xff]  ;;  %v3633_v11 = vld [vmem:[#allocation23 + $0x18] sm:$0xff] }
 0x4d8   :  { %3590 = vmatpush.msra.mxu0 %v2757_v20  ;;  %3610 = vmatpush.msra.mxu1 %v2853_v40  ;;  %v3692_v30 = vld [vmem:[#allocation23 + $0x1f0] sm:$0xff]  ;;  %v4745_v20 = vpop.f32.mrf.mxu1  ;;  %v3639_v40 = vld [vmem:[#allocation23 + $0x48] sm:$0xff]  ;;  %v3685_v63 = vld [vmem:[#allocation23 + $0x1b8] sm:$0xff] }
 0x4d9   :  { %3555 = vmatpush.msra.mxu2 %v2535_v31  ;;  %3575 = vmatpush.msra.mxu3 %v2631_v32  ;;  %v3655_v31 = vld [vmem:[#allocation23 + $0xc8] sm:$0xff] }
 0x4da   :  { %3591 = vmatpush.msra.mxu0 %v2751_v33  ;;  %3611 = vmatpush.msra.mxu1 %v2847_v34  ;;  %v3675_v32 = vld [vmem:[#allocation23 + $0x168] sm:$0xff]  ;;  %v4748_v34 = vpop.f32.mrf.mxu0 }
 0x4db   :  { %3556 = vmatpush.msra.mxu2 %v2529_v36  ;;  %3576 = vmatpush.msra.mxu3 %v2625_v37  ;;  %v3691_v33 = vld [vmem:[#allocation23 + $0x1e8] sm:$0xff]  ;;  %v3654_v36 = vld [vmem:[#allocation23 + $0xc0] sm:$0xff]  ;;  %v3062_v37 = vadd.f32 %v3061_v8, %v3042_v3 }
 0x4dc   :  { %3592 = vmatpush.msra.mxu0 %v2745_v12  ;;  %3612 = vmatpush.msra.mxu1 %v2841_v38  ;;  %v2894_v12 = vperm.slane %v4734_v6, 2  ;;  %v3674_v38 = vld [vmem:[#allocation23 + $0x160] sm:$0xff] }
 0x4dd   :  { %3557 = vmatpush.msra.mxu2 %v2523_v42  ;;  %3577 = vmatpush.msra.mxu3 %v2619_v45  ;;  %v3690_v42 = vld [vmem:[#allocation23 + $0x1e0] sm:$0xff]  ;;  %v3181_v45 = vpop.f32.mrf.mxu3 }
 0x4de   :  { %3593 = vmatpush.msra.mxu0 %v2739_v46  ;;  %3613 = vmatpush.msra.mxu1 %v2835_v47  ;;  %v3637_v46 = vld [vmem:[#allocation23 + $0x38] sm:$0xff] }
 0x4df   :  { %3558 = vmatpush.msra.mxu2 %v2517_v50  ;;  %3578 = vmatpush.msra.mxu3 %v2613_v48  ;;  %v3653_v47 = vld [vmem:[#allocation23 + $0xb8] sm:$0xff] }
 0x4e0   :  { %3594 = vmatpush.msra.mxu0 %v2733_v51  ;;  %3614 = vmatpush.msra.mxu1 %v2829_v52  ;;  %v3673_v50 = vld [vmem:[#allocation23 + $0x158] sm:$0xff]  ;;  %v3636_v52 = vld [vmem:[#allocation23 + $0x30] sm:$0xff]  ;;  %v3221_v57 = vpop.f32.mrf.mxu1 }
 0x4e1   :  { %3559 = vmatpush.msra.mxu2 %v2511_v54  ;;  %3579 = vmatpush.msra.mxu3 %v2607_v16  ;;  %v3689_v48 = vld [vmem:[#allocation23 + $0x1d8] sm:$0xff]  ;;  %v3652_v54 = vld [vmem:[#allocation23 + $0xb0] sm:$0xff] }
 0x4e2   :  { %3595 = vmatpush.msra.mxu0 %v2727_v55  ;;  %3615 = vmatpush.msra.mxu1 %v2823_v56  ;;  %v3672_v55 = vld [vmem:[#allocation23 + $0x150] sm:$0xff] }
 0x4e3   :  { %3560 = vmatmul.f32.vlgmr.msra.gmra.mxu2 %v4680_v17  ;;  %3580 = vmatmul.f32.vlgmr.msra.gmra.mxu3 %v4682_v18  ;;  %v3642_v17 = vld [vmem:[#allocation23 + $0x60] sm:$0xff]  ;;  %v3688_v56 = vld [vmem:[#allocation23 + $0x1d0] sm:$0xff] }
 0x4e4   :  { %3730 = vmatpush.msrb.mxu2 %v3645_v59  ;;  %3750 = vmatpush.msrb.mxu3 %v3661_v60  ;;  %v3658_v18 = vld [vmem:[#allocation23 + $0xe0] sm:$0xff]  ;;  %v3635_v59 = vld [vmem:[#allocation23 + $0x28] sm:$0xff] }
 0x4e5   :  { %3596 = vmatpush.msra.mxu0 %v2721_v58  ;;  %3616 = vmatpush.msra.mxu1 %v2817_v0  ;;  %v3651_v60 = vld [vmem:[#allocation23 + $0xa8] sm:$0xff]  ;;  %v2895_v0 = vperm.slane %v4734_v6, 3 }
 0x4e6   :  { %3731 = vmatpush.msrb.mxu2 %v3644_v1  ;;  %3751 = vmatpush.msrb.mxu3 %v3660_v2  ;;  %v3687_v1 = vld [vmem:[#allocation23 + $0x1c8] sm:$0xff] }
 0x4e7   :  { %3597 = vmatpush.msra.mxu0 %v2715_v4  ;;  %3617 = vmatpush.msra.mxu1 %v2811_v5  ;;  %v3281_v5 = vpop.f32.mrf.mxu0 }
 0x4e8   :  { %3732 = vmatpush.msrb.mxu2 %v3643_v7  ;;  %3752 = vmatpush.msrb.mxu3 %v3659_v19  ;;  %v3634_v7 = vld [vmem:[#allocation23 + $0x20] sm:$0xff] }
 0x4e9   :  { %3598 = vmatpush.msra.mxu0 %v2709_v9  ;;  %3618 = vmatpush.msra.mxu1 %v2805_v10  ;;  %v3650_v19 = vld [vmem:[#allocation23 + $0xa0] sm:$0xff] }
 0x4ea   :  { %3733 = vmatpush.msrb.mxu2 %v3642_v17  ;;  %3753 = vmatpush.msrb.mxu3 %v3658_v18  ;;  %v3670_v9 = vld [vmem:[#allocation23 + $0x140] sm:$0xff]  ;;  %v4756_v18 = vpop.f32.mrf.mxu3 }
 0x4eb   :  { %3599 = vmatpush.msra.mxu0 %v2703_v14  ;;  %3619 = vmatpush.msra.mxu1 %v2799_v62  ;;  %v3686_v10 = vld [vmem:[#allocation23 + $0x1c0] sm:$0xff]  ;;  %v3282_v14 = vadd.f32 %v3281_v5, %v2895_v0  ;;  %v3669_v62 = vld [vmem:[#allocation23 + $0x138] sm:$0xff]  ;;  %v3700_v5 = vld [vmem:[#allocation23 + $0x230] sm:$0xff] }
 0x4ec   :  { %3600 = vmatmul.f32.vlgmr.msra.gmra.mxu0 %v4688_v43  ;;  %3620 = vmatmul.f32.vlgmr.msra.gmra.mxu1 %v4690_v41  ;;  %v2942_v43 = vadd.f32 %v4724_v39, %v2922_v26  ;;  %v3161_v41 = vpop.f32.mrf.mxu2  ;;  %v3082_v39 = vadd.f32 %v3081_v53, %v3062_v37  ;;  %v3649_v53 = vld [vmem:[#allocation23 + $0x98] sm:$0xff]  ;;  %v3301_v26 = vpop.f32.mrf.mxu1 }
 0x4ed   :  { %3734 = vmatpush.msrb.mxu2 %v3641_v22  ;;  %3754 = vmatpush.msrb.mxu3 %v3657_v23  ;;  %v3162_v16 = vadd.f32 %v3161_v41, %v2894_v12  ;;  %v3648_v22 = vld [vmem:[#allocation23 + $0x90] sm:$0xff]  ;;  %v3302_v3 = vadd.f32 %v3301_v26, %v3282_v14  ;;  %v3665_v37 = vld [vmem:[#allocation23 + $0x118] sm:$0xff] }
 0x4ee   :  { %3770 = vmatpush.msrb.mxu0 %v3677_v24  ;;  %3790 = vmatpush.msrb.mxu1 %v3693_v25  ;;  %v2962_v51 = vadd.f32 %v4720_v21, %v2942_v43  ;;  %v3102_v58 = vadd.f32 %v4740_v15, %v3082_v39  ;;  %v3671_v21 = vld [vmem:[#allocation23 + $0x148] sm:$0xff]  ;;  %v3632_v15 = vld [vmem:[#allocation23 + $0x10] sm:$0xff]  ;;  %v3705_v0 = vld [vmem:[#allocation23 + $0x258] sm:$0xff] }
 0x4ef   :  { %3735 = vmatpush.msrb.mxu2 %v3640_v27  ;;  %3755 = vmatpush.msrb.mxu3 %v3656_v28  ;;  %v3182_v8 = vadd.f32 %v3181_v45, %v3162_v16  ;;  %v3684_v24 = vld [vmem:[#allocation23 + $0x1b0] sm:$0xff]  ;;  %v3647_v27 = vld [vmem:[#allocation23 + $0x88] sm:$0xff]  ;;  %v3709_v16 = vld [vmem:[#allocation23 + $0x278] sm:$0xff] }
 0x4f0   :  { %3771 = vmatpush.msrb.mxu0 %v3676_v29  ;;  %3791 = vmatpush.msrb.mxu1 %v3692_v30  ;;  %v2982_v2 = vadd.f32 %v4726_v49, %v2962_v51  ;;  %v3122_v49 = vadd.f32 %v4737_v13, %v3102_v58  ;;  %v3631_v13 = vld [vmem:[#allocation23 + $0x8] sm:$0xff]  ;;  %v3664_v45 = vld [vmem:[#allocation23 + $0x110] sm:$0xff]  ;;  %v3706_v58 = vld [vmem:[#allocation23 + $0x260] sm:$0xff] }
 0x4f1   :  { %3736 = vmatpush.msrb.mxu2 %v3639_v40  ;;  %3756 = vmatpush.msrb.mxu3 %v3655_v31  ;;  %v3202_v23 = vadd.f32 %v4748_v34, %v3182_v8  ;;  %v3667_v29 = vld [vmem:[#allocation23 + $0x128] sm:$0xff]  ;;  %v3630_v40 = vld [vmem:[#allocation23] sm:$0xff]  ;;  %v3680_v39 = vld [vmem:[#allocation23 + $0x190] sm:$0xff] }
 0x4f2   :  { %3772 = vmatpush.msrb.mxu0 %v3675_v32  ;;  %3792 = vmatpush.msrb.mxu1 %v3691_v33  ;;  %v3002_v17 = vadd.f32 %v4728_v44, %v2982_v2  ;;  %v3668_v44 = vld [vmem:[#allocation23 + $0x130] sm:$0xff]  ;;  %v3142_v28 = vadd.f32 %v4745_v20, %v3122_v49  ;;  %v3683_v30 = vld [vmem:[#allocation23 + $0x1a8] sm:$0xff]  ;;  %v3646_v31 = vld [vmem:[#allocation23 + $0x80] sm:$0xff] }
 0x4f3   :  { %3737 = vmatpush.msrb.mxu2 %v3638_v35  ;;  %3757 = vmatpush.msrb.mxu3 %v3654_v36  ;;  %v3222_v33 = vadd.f32 %v3221_v57, %v3202_v23  ;;  %v3682_v20 = vld [vmem:[#allocation23 + $0x1a0] sm:$0xff]  ;;  %v3697_v8 = vld [vmem:[#allocation23 + $0x218] sm:$0xff] }
 0x4f4   :  { %3773 = vmatpush.msrb.mxu0 %v3674_v38  ;;  %3793 = vmatpush.msrb.mxu1 %v3690_v42  ;;  %v3241_v4 = vpop.f32.mrf.mxu2  ;;  %v3022_v25 = vadd.f32 %v4730_v61, %v3002_v17  ;;  %v3666_v61 = vld [vmem:[#allocation23 + $0x120] sm:$0xff]  ;;  %v3625_v35 = vmax.f32 %v3142_v28, 0.0  ;;  %v3681_v42 = vld [vmem:[#allocation23 + $0x198] sm:$0xff] }
 0x4f5   :  { %3738 = vmatpush.msrb.mxu2 %v3637_v46  ;;  %3758 = vmatpush.msrb.mxu3 %v3653_v47  ;;  %v3242_v36 = vadd.f32 %v3241_v4, %v3222_v33  ;;  %v3678_v57 = vld [vmem:[#allocation23 + $0x180] sm:$0xff]  ;;  %v3701_v4 = vld [vmem:[#allocation23 + $0x238] sm:$0xff]  ;;  %v3715_v33 = vld [vmem:[#allocation23 + $0x2a8] sm:$0xff] }
 0x4f6   :  { %3774 = vmatpush.msrb.mxu0 %v3673_v50  ;;  %3794 = vmatpush.msrb.mxu1 %v3689_v48  ;;  %v3624_v41 = vmax.f32 %v3022_v25, 0.0  ;;  %v3663_v48 = vld [vmem:[#allocation23 + $0x108] sm:$0xff]  ;;  %v3702_v2 = vld [vmem:[#allocation23 + $0x240] sm:$0xff]  ;;  %v3725_v17 = vld [vmem:[#allocation23 + $0x2f8] sm:$0xff] }
 0x4f7   :  { %3739 = vmatpush.msrb.mxu2 %v3636_v52  ;;  %3759 = vmatpush.msrb.mxu3 %v3652_v54  ;;  %v3262_v50 = vadd.f32 %v4756_v18, %v3242_v36  ;;  %v3679_v52 = vld [vmem:[#allocation23 + $0x188] sm:$0xff]  ;;  %v3662_v54 = vld [vmem:[#allocation23 + $0x100] sm:$0xff]  ;;  %v3724_v18 = vld [vmem:[#allocation23 + $0x2f0] sm:$0xff]  ;;  %v2897_v36 = vperm.slane %v4734_v6, 5 }
 0x4f8   :  { %3775 = vmatpush.msrb.mxu0 %v3672_v55  ;;  %3795 = vmatpush.msrb.mxu1 %v3688_v56  ;;  %v3708_v55 = vld [vmem:[#allocation23 + $0x270] sm:$0xff]  ;;  %v3722_v49 = vld [vmem:[#allocation23 + $0x2e0] sm:$0xff]  ;;  %v3721_v14 = vld [vmem:[#allocation23 + $0x2d8] sm:$0xff] }
 0x4f9   :  { %3740 = vmatpush.msrb.mxu2 %v3635_v59  ;;  %3760 = vmatpush.msrb.mxu3 %v3651_v60  ;;  %v3626_v59 = vmax.f32 %v3262_v50, 0.0  ;;  %v3707_v60 = vld [vmem:[#allocation23 + $0x268] sm:$0xff] }
 0x4fa   :  { %3776 = vmatpush.msrb.mxu0 %v3671_v21  ;;  %3796 = vmatpush.msrb.mxu1 %v3687_v1  ;;  %v3704_v21 = vld [vmem:[#allocation23 + $0x250] sm:$0xff]  ;;  %v3703_v1 = vld [vmem:[#allocation23 + $0x248] sm:$0xff] }
 0x4fb   :  { %3741 = vmatpush.msrb.mxu2 %v3634_v7  ;;  %3761 = vmatpush.msrb.mxu3 %v3650_v19  ;;  %v3699_v7 = vld [vmem:[#allocation23 + $0x228] sm:$0xff]  ;;  %v3698_v19 = vld [vmem:[#allocation23 + $0x220] sm:$0xff] }
 0x4fc   :  { %3777 = vmatpush.msrb.mxu0 %v3670_v9  ;;  %3797 = vmatpush.msrb.mxu1 %v3686_v10  ;;  %v3696_v9 = vld [vmem:[#allocation23 + $0x210] sm:$0xff]  ;;  %v3695_v10 = vld [vmem:[#allocation23 + $0x208] sm:$0xff] }
 0x4fd   :  { %3742 = vmatpush.msrb.mxu2 %v3633_v11  ;;  %3762 = vmatpush.msrb.mxu3 %v3649_v53  ;;  %v3694_v11 = vld [vmem:[#allocation23 + $0x200] sm:$0xff]  ;;  %v3723_v53 = vld [vmem:[#allocation23 + $0x2e8] sm:$0xff] }
 0x4fe   :  { %3778 = vmatpush.msrb.mxu0 %v3669_v62  ;;  %3798 = vmatpush.msrb.mxu1 %v3685_v63  ;;  %v2896_v62 = vperm.slane %v4734_v6, 4  ;;  %v3720_v63 = vld [vmem:[#allocation23 + $0x2d0] sm:$0xff]  ;;  %v3946_v6 = vld [vmem:[#allocation25] ss:$0 sm:$0xff] }
 0x4ff   :  { %3743 = vmatpush.msrb.mxu2 %v3632_v15  ;;  %3763 = vmatpush.msrb.mxu3 %v3648_v22  ;;  %v3719_v22 = vld [vmem:[#allocation23 + $0x2c8] sm:$0xff] }
 0x500   :  { %3779 = vmatpush.msrb.mxu0 %v3668_v44  ;;  %3799 = vmatpush.msrb.mxu1 %v3684_v24  ;;  %v3321_v32 = vpop.f32.mrf.mxu2  ;;  %v3341_v34 = vpop.f32.mrf.mxu3  ;;  %v3718_v44 = vld [vmem:[#allocation23 + $0x2c0] sm:$0xff]  ;;  %v3717_v24 = vld [vmem:[#allocation23 + $0x2b8] sm:$0xff] }
 0x501   :  { %3744 = vmatpush.msrb.mxu2 %v3631_v13  ;;  %3764 = vmatpush.msrb.mxu3 %v3647_v27  ;;  %v3322_v43 = vadd.f32 %v3321_v32, %v3302_v3  ;;  %v3716_v13 = vld [vmem:[#allocation23 + $0x2b0] sm:$0xff] }
 0x502   :  { %3780 = vmatpush.msrb.mxu0 %v3667_v29  ;;  %3800 = vmatpush.msrb.mxu1 %v3683_v30 }
 0x503   :  { %3745 = vmatpush.msrb.mxu2 %v3630_v40  ;;  %3765 = vmatpush.msrb.mxu3 %v3646_v31  ;;  %v3342_v12 = vadd.f32 %v3341_v34, %v3322_v43  ;;  %v3361_v38 = vpop.f32.mrf.mxu0  ;;  %v3381_v47 = vpop.f32.mrf.mxu1  ;;  %v3714_v43 = vld [vmem:[#allocation23 + $0x2a0] sm:$0xff]  ;;  %v3712_v34 = vld [vmem:[#allocation23 + $0x290] sm:$0xff] }
 0x504   :  { %3781 = vmatpush.msrb.mxu0 %v3666_v61  ;;  %3746 = vmatmul.f32.vlgmr.msrb.gmra.mxu2 %v3624_v41  ;;  %v3713_v41 = vld [vmem:[#allocation23 + $0x298] sm:$0xff] }
 0x505   :  { %3766 = vmatmul.f32.vlgmr.msrb.gmra.mxu3 %v3625_v35  ;;  %v3362_v46 = vadd.f32 %v3361_v38, %v3342_v12  ;;  %3801 = vmatpush.msrb.mxu1 %v3682_v20  ;;  %v3711_v20 = vld [vmem:[#allocation23 + $0x288] sm:$0xff]  ;;  %v3710_v35 = vld [vmem:[#allocation23 + $0x280] sm:$0xff] }
 0x506   :  { %3782 = vmatpush.msrb.mxu0 %v3665_v37  ;;  %3810 = vmatpush.msra.mxu2 %v3709_v16 }
 0x507   :  { %v3382_v51 = vadd.f32 %v3381_v47, %v3362_v46  ;;  %3802 = vmatpush.msrb.mxu1 %v3681_v42  ;;  %3830 = vmatpush.msra.mxu3 %v3725_v17 }
 0x508   :  { %3783 = vmatpush.msrb.mxu0 %v3664_v45  ;;  %3811 = vmatpush.msra.mxu2 %v3708_v55 }
 0x509   :  { %3803 = vmatpush.msrb.mxu1 %v3680_v39  ;;  %v3627_v56 = vmax.f32 %v3382_v51, 0.0  ;;  %3831 = vmatpush.msra.mxu3 %v3724_v18 }
 0x50a   :  { %3784 = vmatpush.msrb.mxu0 %v3663_v48  ;;  %3812 = vmatpush.msra.mxu2 %v3707_v60 }
 0x50b   :  { %3804 = vmatpush.msrb.mxu1 %v3679_v52  ;;  %3832 = vmatpush.msra.mxu3 %v3723_v53 }
 0x50c   :  { %3785 = vmatpush.msrb.mxu0 %v3662_v54  ;;  %3813 = vmatpush.msra.mxu2 %v3706_v58 }
 0x50d   :  { %3786 = vmatmul.f32.vlgmr.msrb.gmra.mxu0 %v3626_v59  ;;  %3805 = vmatpush.msrb.mxu1 %v3678_v57 }
 0x50e   :  { %3806 = vmatmul.f32.vlgmr.msrb.gmra.mxu1 %v3627_v56  ;;  %3814 = vmatpush.msra.mxu2 %v3705_v0 }
 0x50f   :  { %3833 = vmatpush.msra.mxu3 %v3722_v49 }
 0x510   :  { %3815 = vmatpush.msra.mxu2 %v3704_v21 }
 0x511   :  { %3834 = vmatpush.msra.mxu3 %v3721_v14 }
 0x512   :  { %3816 = vmatpush.msra.mxu2 %v3703_v1 }
 0x513   :  { %3835 = vmatpush.msra.mxu3 %v3720_v63 }
 0x514   :  { %3817 = vmatpush.msra.mxu2 %v3702_v2 }
 0x515   :  { %3836 = vmatpush.msra.mxu3 %v3719_v22 }
 0x516   :  { %3818 = vmatpush.msra.mxu2 %v3701_v4 }
 0x517   :  { %3837 = vmatpush.msra.mxu3 %v3718_v44 }
 0x518   :  { %3819 = vmatpush.msra.mxu2 %v3700_v5 }
 0x519   :  { %3838 = vmatpush.msra.mxu3 %v3717_v24 }
 0x51a   :  { %3820 = vmatpush.msra.mxu2 %v3699_v7 }
 0x51b   :  { %3839 = vmatpush.msra.mxu3 %v3716_v13 }
 0x51c   :  { %3821 = vmatpush.msra.mxu2 %v3698_v19 }
 0x51d   :  { %3840 = vmatpush.msra.mxu3 %v3715_v33 }
 0x51e   :  { %3822 = vmatpush.msra.mxu2 %v3697_v8 }
 0x51f   :  { %3841 = vmatpush.msra.mxu3 %v3714_v43 }
 0x520   :  { %3823 = vmatpush.msra.mxu2 %v3696_v9 }
 0x521   :  { %3842 = vmatpush.msra.mxu3 %v3713_v41 }
 0x522   :  { %3824 = vmatpush.msra.mxu2 %v3695_v10  ;;  %v3401_v15 = vpop.f32.mrf.mxu2  ;;  %v3421_v25 = vpop.f32.mrf.mxu3 }
 0x523   :  { %v3402_v23 = vadd.f32 %v3401_v15, %v2896_v62  ;;  %3843 = vmatpush.msra.mxu3 %v3712_v34 }
 0x524   :  { %3825 = vmatpush.msra.mxu2 %v3694_v11 }
 0x525   :  { %v3422_v26 = vadd.f32 %v3421_v25, %v3402_v23  ;;  %v3441_v27 = vpop.f32.mrf.mxu0  ;;  %v3461_v3 = vpop.f32.mrf.mxu1  ;;  %3844 = vmatpush.msra.mxu3 %v3711_v20 }
 0x527   :  { %v3442_v28 = vadd.f32 %v3441_v27, %v3422_v26  ;;  %3845 = vmatpush.msra.mxu3 %v3710_v35 }
 0x529   :  { %v3462_v29 = vadd.f32 %v3461_v3, %v3442_v28 }
 0x544   :  { %v3481_v30 = vpop.f32.mrf.mxu2  ;;  %v3501_v31 = vpop.f32.mrf.mxu3 }
 0x545   :  { %v3482_v40 = vadd.f32 %v3481_v30, %v3462_v29 }
 0x547   :  { %v3502_v32 = vadd.f32 %v3501_v31, %v3482_v40  ;;  %v3521_v37 = vpop.f32.mrf.mxu0  ;;  %v3541_v38 = vpop.f32.mrf.mxu1 }
 0x548   :  { %v3522_v12 = vadd.f32 %v3521_v37, %v2897_v36 }
 0x549   :  { %v3628_v61 = vmax.f32 %v3502_v32, 0.0 }
 0x54a   :  { %v3542_v42 = vadd.f32 %v3541_v38, %v3522_v12 }
 0x54b   :  { %3826 = vmatmul.f32.vlgmr.msra.gmra.mxu2 %v3628_v61 }
 0x566   :  { %v3561_v45 = vpop.f32.mrf.mxu2  ;;  %v3581_v47 = vpop.f32.mrf.mxu3 }
 0x567   :  { %v3562_v46 = vadd.f32 %v3561_v45, %v3542_v42 }
 0x569   :  { %v3582_v39 = vadd.f32 %v3581_v47, %v3562_v46  ;;  %v3601_v50 = vpop.f32.mrf.mxu0  ;;  %v3621_v51 = vpop.f32.mrf.mxu1 }
 0x56b   :  { %v3602_v48 = vadd.f32 %v3601_v50, %v3582_v39 }
 0x56d   :  { %v3622_v52 = vadd.f32 %v3621_v51, %v3602_v48 }
 0x56f   :  { %v3629_v54 = vmax.f32 %v3622_v52, 0.0 }
 0x571   :  { %3846 = vmatmul.f32.vlgmr.msra.gmra.mxu3 %v3629_v54 }
 0x587   :  { %v3747_v16 = vpop.f32.mrf.mxu2 }
 0x588   :  { %v3748_v55 = vadd.f32 %v3946_v6, %v3747_v16  ;;  %v3767_v56 = vpop.f32.mrf.mxu3 }
 0x58a   :  { %v3768_v57 = vadd.f32 %v3767_v56, %v3748_v55  ;;  %v3787_v59 = vpop.f32.mrf.mxu0 }
 0x58b   :  { %v3807_v60 = vpop.f32.mrf.mxu1 }
 0x58c   :  { %v3788_v58 = vadd.f32 %v3787_v59, %v3768_v57 }
 0x58e   :  { %v3808_v21 = vadd.f32 %v3807_v60, %v3788_v58 }
 0x5ce   :  { %v3827_v0 = vpop.f32.mrf.mxu2 }
 0x5cf   :  { %v3828_v1 = vadd.f32 %v3827_v0, %v3808_v21 }
 0x5f4   :  { %v3847_v2 = vpop.f32.mrf.mxu3 }
 0x5f5   :  { %v3848_v4 = vadd.f32 %v3847_v2, %v3828_v1 }
 0x5f7   :  { %3949 = vtanh.f32 %v3848_v4 }
 0x5fd   :  { %v3950_v5 = vpop.eup %3949 }
 0x5fe   :  { %3851 = vst [vmem:[#allocation26] sm:$0xff] %v3950_v5 }
 0x5ff   :  { %3862 = dma.vmem_to_hbm [thread:$0]  %s3858_s29, 128, %s3860_s18, [#allocation4]  }
 0x600   :  { %4375 = dma.done.wait [#allocation4], 128  }
 0x601   :  { %4376 = vsyncadd [#allocation4], 4294967168 }
 0x602   :  { %4377 = dma.done.wait [#allocation28], 128  }
 0x603   :  { %4378 = vsyncadd [#allocation28], 4294967168 }
 0x604   :  { %3882 = vsyncpa [#allocation3], 1 }
 0x605   :  { %3883 = vsyncpa [#allocation6], 1 }
 0x606   :  { %3884 = vsyncpa [#allocation9], 1 }
 0x607   :  { %3885 = vsyncpa [#allocation12], 1 }
 0x608   :  { %3886 = vsyncpa [#allocation15], 1 }
 0x609   :  { %3887 = vsyncpa [#allocation18], 1 }
 0x60a   :  { %3888 = vsyncpa [#allocation21], 1 }
 0x60b   :  { %3889 = vsyncpa [#allocation24], 1 }
 0x60c   :  { %3890 = vsyncpa [#allocation4], 1 }
 0x60d   :  { %3891 = vsyncpa [#allocation28], 1 }

</bundles_post_ra>
